<compile_context>
chip_gen: v7x
topology: tpu7x:2x2x1
jax: 0.10.0
libtpu: 0.0.40
codegen_flags: <defaults>
</compile_context>

<pallas_src>
import functools

import jax
import jax.numpy as jnp
from jax import lax
from jax.experimental import pallas as pl
from jax.experimental.pallas import tpu as pltpu

LANE = 128


def _round_up(x, m):
    return (x + m - 1) // m * m


def _pick_row_tile(h, cap=32):
    for t in range(min(h, cap), 0, -1):
        if h % t == 0:
            return t
    return h


# ----------------------------- Pallas kernels ------------------------------

def _conv3x3_bn_kernel(H, W, th, apply_act, *refs):
    """Direct 3x3 conv (pad=1) + bias on one (th x W) output row tile.

    Inputs: row tile + 1-row top/bottom halo views of the width-padded NHWC input,
    (3,3,Cin,tc) weight slice, (1,tc) bias; optionally (1,Cin) scale/shift of the
    *previous* BatchNorm, which is applied (with ReLU) to the input tile before the
    dots (fused prologue).  Outputs: width-padded pre-BN conv tile, and (sum, sum^2)
    partials for this tile's contribution to the next BatchNorm's batch statistics.
    """
    if apply_act:
        x_top, x_mid, x_bot, w_ref, b_ref, s_ref, t_ref, y_ref, st_ref = refs
    else:
        x_top, x_mid, x_bot, w_ref, b_ref, y_ref, st_ref = refs

    r = pl.program_id(1)
    Wp = W + 2
    tc = y_ref.shape[-1]

    # Assemble the (th+2, Wp, Cin) halo'd input tile in f32.
    xh = jnp.concatenate([x_top[0], x_mid[0], x_bot[0]], axis=0).astype(jnp.float32)
    cin = xh.shape[-1]

    if apply_act:
        # Previous stage's BatchNorm affine + ReLU, fused into this conv's prologue.
        scale = s_ref[...].reshape(1, 1, cin)
        shift = t_ref[...].reshape(1, 1, cin)
        xh = jnp.maximum(xh * scale + shift, 0.0)

    # Zero the conv-padding positions (boundary halo rows and the two padded
    # columns).  Must happen *after* the fused activation so padding stays 0.
    row_ids = lax.broadcasted_iota(jnp.int32, xh.shape, 0) + r * th
    col_ids = lax.broadcasted_iota(jnp.int32, xh.shape, 1)
    valid = (row_ids >= 1) & (row_ids <= H) & (col_ids >= 1) & (col_ids <= W)
    xh = jnp.where(valid, xh, 0.0).astype(jnp.bfloat16)

    # 9 accumulating MXU dots (one per tap), bf16 inputs, f32 accumulation.
    acc = jnp.zeros((th * W, tc), jnp.float32)
    for dy in range(3):
        for dx in range(3):
            a = xh[dy:dy + th, dx:dx + W, :].reshape(th * W, cin)
            acc = acc + lax.dot_general(
                a, w_ref[dy, dx],
                dimension_numbers=(((1,), (0,)), ((), ())),
                preferred_element_type=jnp.float32)

    y2d = acc + b_ref[...].reshape(1, tc)          # pre-BN conv output (f32)

    # Partial batch-norm statistics for this tile (interior pixels only).
    s1 = jnp.sum(y2d, axis=0, keepdims=True)        # (1, tc)
    s2 = jnp.sum(y2d * y2d, axis=0, keepdims=True)  # (1, tc)
    st_ref[0, 0] = jnp.concatenate([s1, s2], axis=0)

    # Store width-padded so the next conv consumes it directly.
    y3 = y2d.reshape(th, W, tc)
    y_ref[...] = jnp.zeros(y_ref.shape, y_ref.dtype)
    y_ref[0, :, 1:W + 1, :] = y3.astype(y_ref.dtype)


def _bn_relu_kernel(W, x_ref, s_ref, t_ref, o_ref):
    # x_ref: (1, th, W+2, C)  s/t: (1, C)  o_ref: (1, th, W, C)   (C multiple of 128)
    c = o_ref.shape[-1]
    x = x_ref[0][:, 1:W + 1, :].astype(jnp.float32)   # drop the padded columns
    scale = s_ref[...].reshape(1, 1, c)
    shift = t_ref[...].reshape(1, 1, c)
    o_ref[0] = jnp.maximum(x * scale + shift, 0.0)


# ------------------------- Pallas call wrappers -----------------------------

def conv3x3_bn(x_wp, w, b, scale=None, shift=None, out_dtype=jnp.float32):
    """x_wp: (N, H, W+2, Cin) width-padded NHWC (Cin multiple of 128).
       w: (3,3,Cin,Cout) bf16 (Cout multiple of 128);  b: (1, Cout) f32.
       Optional scale/shift (1, Cin): previous BN affine + ReLU fused as prologue.
       Returns (y_wp (N,H,W+2,Cout) out_dtype, stats (N,Rt,2,Cout) f32)."""
    N, H, Wp, Cin = x_wp.shape
    W = Wp - 2
    Cout = w.shape[-1]
    th = _pick_row_tile(H)
    tc = LANE
    Rt, Ct = H // th, Cout // tc
    apply_act = scale is not None

    in_specs = [
        pl.BlockSpec((1, 1, Wp, Cin),
                     lambda n, r, c: (n, jnp.maximum(r * th - 1, 0), 0, 0)),
        pl.BlockSpec((1, th, Wp, Cin), lambda n, r, c: (n, r, 0, 0)),
        pl.BlockSpec((1, 1, Wp, Cin),
                     lambda n, r, c: (n, jnp.minimum(r * th + th, H - 1), 0, 0)),
        pl.BlockSpec((3, 3, Cin, tc), lambda n, r, c: (0, 0, 0, c)),
        pl.BlockSpec((1, tc), lambda n, r, c: (0, c)),
    ]
    inputs = [x_wp, x_wp, x_wp, w, b]
    if apply_act:
        in_specs += [pl.BlockSpec((1, Cin), lambda n, r, c: (0, 0)),
                     pl.BlockSpec((1, Cin), lambda n, r, c: (0, 0))]
        inputs += [scale, shift]

    out_shape = (jax.ShapeDtypeStruct((N, H, Wp, Cout), out_dtype),
                 jax.ShapeDtypeStruct((N, Rt, 2, Cout), jnp.float32))
    out_specs = [pl.BlockSpec((1, th, Wp, tc), lambda n, r, c: (n, r, 0, c)),
                 pl.BlockSpec((1, 1, 2, tc), lambda n, r, c: (n, r, 0, c))]

    flops = 2 * N * H * W * 9 * Cin * Cout
    bytes_accessed = int(
        Ct * x_wp.size * x_wp.dtype.itemsize            # input (re-read per Cout tile)
        + N * Rt * w.size * w.dtype.itemsize            # weights
        + N * H * Wp * Cout * jnp.dtype(out_dtype).itemsize
        + N * Rt * 2 * Cout * 4)

    kernel = functools.partial(_conv3x3_bn_kernel, H, W, th, apply_act)
    y, st = pl.pallas_call(
        kernel,
        out_shape=out_shape,
        grid_spec=pltpu.PrefetchScalarGridSpec(
            num_scalar_prefetch=0,
            grid=(N, Rt, Ct),
            in_specs=in_specs,
            out_specs=out_specs),
        compiler_params=pltpu.CompilerParams(
            dimension_semantics=("parallel", "parallel", "parallel"),
            vmem_limit_bytes=32 * 1024 * 1024),
        cost_estimate=pl.CostEstimate(
            flops=flops, transcendentals=0, bytes_accessed=bytes_accessed),
    )(*inputs)
    return y, st


def bn_relu(y_wp, scale, shift):
    """Final BN affine + ReLU.  y_wp: (N, H, W+2, C) -> (N, H, W, C) f32."""
    N, H, Wp, C = y_wp.shape
    W = Wp - 2
    th = _pick_row_tile(H)
    Rt = H // th
    return pl.pallas_call(
        functools.partial(_bn_relu_kernel, W),
        out_shape=jax.ShapeDtypeStruct((N, H, W, C), jnp.float32),
        grid_spec=pltpu.PrefetchScalarGridSpec(
            num_scalar_prefetch=0,
            grid=(N, Rt),
            in_specs=[pl.BlockSpec((1, th, Wp, C), lambda n, r: (n, r, 0, 0)),
                      pl.BlockSpec((1, C), lambda n, r: (0, 0)),
                      pl.BlockSpec((1, C), lambda n, r: (0, 0))],
            out_specs=pl.BlockSpec((1, th, W, C), lambda n, r: (n, r, 0, 0))),
        compiler_params=pltpu.CompilerParams(
            dimension_semantics=("parallel", "parallel")),
    )(y_wp, scale, shift)


# ------------------------------ JAX glue -----------------------------------

def bilinear_upsample_x2_align_corners(x):
    """x: (N,H,W,C) -> (N,2H,2W,C); matches nn.Upsample(2,'bilinear',align_corners=True)."""
    N, H, W, C = x.shape
    Ho, Wo = 2 * H, 2 * W

    def coords(n_in, n_out):
        if n_in == 1 or n_out == 1:
            z = jnp.zeros((n_out,), jnp.int32)
            return z, z, jnp.zeros((n_out,), jnp.float32)
        src = jnp.arange(n_out, dtype=jnp.float32) * (n_in - 1) / (n_out - 1)
        i0 = jnp.clip(jnp.floor(src).astype(jnp.int32), 0, n_in - 1)
        i1 = jnp.clip(i0 + 1, 0, n_in - 1)
        w = src - i0.astype(jnp.float32)
        return i0, i1, w

    i0, i1, wh = coords(H, Ho)
    xh = (x[:, i0, :, :] * (1.0 - wh)[None, :, None, None]
          + x[:, i1, :, :] * wh[None, :, None, None])
    j0, j1, ww = coords(W, Wo)
    out = (xh[:, :, j0, :] * (1.0 - ww)[None, None, :, None]
           + xh[:, :, j1, :] * ww[None, None, :, None])
    return out


def _bn_scale_shift(stats, gamma, beta, count, eps=1e-5):
    """Reduce per-tile (sum, sum^2) partials -> training-mode BN scale/shift."""
    s = jnp.sum(stats, axis=(0, 1))                   # (2, C)
    mean = s[0] / count
    var = jnp.maximum(s[1] / count - mean * mean, 0.0)
    scale = gamma / jnp.sqrt(var + eps)
    shift = beta - mean * scale
    return scale[None, :], shift[None, :]


def _pad_conv_params(w, b, gamma, beta, cin_p, cout_p):
    kh, kw, cin, cout = w.shape
    wp = jnp.zeros((kh, kw, cin_p, cout_p), jnp.bfloat16)
    wp = wp.at[:, :, :cin, :cout].set(w.astype(jnp.bfloat16))
    bp = jnp.zeros((1, cout_p), jnp.float32).at[0, :cout].set(b.astype(jnp.float32))
    gp = jnp.zeros((cout_p,), jnp.float32).at[:cout].set(gamma.astype(jnp.float32))
    betap = jnp.zeros((cout_p,), jnp.float32).at[:cout].set(beta.astype(jnp.float32))
    return wp, bp, gp, betap


def up_forward(params, x1_nchw, x2_nchw):
    """Equivalent of Up.forward(x1, x2) (bilinear=True, training-mode BN). NCHW in/out."""
    x1 = jnp.transpose(x1_nchw, (0, 2, 3, 1)).astype(jnp.float32)
    x2 = jnp.transpose(x2_nchw, (0, 2, 3, 1)).astype(jnp.float32)

    x1 = bilinear_upsample_x2_align_corners(x1)
    diffY = x2.shape[1] - x1.shape[1]
    diffX = x2.shape[2] - x1.shape[2]
    x1 = jnp.pad(x1, ((0, 0),
                      (diffY // 2, diffY - diffY // 2),
                      (diffX // 2, diffX - diffX // 2),
                      (0, 0)))
    x = jnp.concatenate([x2, x1], axis=-1)            # torch.cat([x2, x1], dim=1)
    # TODO(synk): the upsample/pad/concat stays XLA glue; it could be folded into the
    # first conv's contraction (two accumulating K-chunks) to save one round trip.

    N, H, W, cin = x.shape
    cout1 = params["w1"].shape[-1]
    cout2 = params["w2"].shape[-1]
    cin_p = _round_up(cin, LANE)
    c1_p = _round_up(cout1, LANE)
    c2_p = _round_up(cout2, LANE)
    count = N * H * W

    # Channel-pad to a lane-dense multiple of 128, width-pad for the 3x3 conv,
    # and cast to bf16 for the MXU.
    x_wp = jnp.zeros((N, H, W + 2, cin_p), jnp.bfloat16)
    x_wp = x_wp.at[:, :, 1:W + 1, :cin].set(x.astype(jnp.bfloat16))

    w1, b1, g1, be1 = _pad_conv_params(params["w1"], params["b1"],
                                       params["g1"], params["be1"], cin_p, c1_p)
    w2, b2, g2, be2 = _pad_conv_params(params["w2"], params["b2"],
                                       params["g2"], params["be2"], c1_p, c2_p)

    # conv1 + bias, emitting BN1 partial stats (intermediate could be bf16 to halve
    # HBM bytes; kept f32 here for accuracy headroom).
    y1_wp, st1 = conv3x3_bn(x_wp, w1, b1, out_dtype=jnp.float32)
    s1, t1 = _bn_scale_shift(st1, g1, be1, count)

    # conv2 with BN1 affine + ReLU fused into its input prologue; emits BN2 stats.
    y2_wp, st2 = conv3x3_bn(y1_wp, w2, b2, scale=s1, shift=t1,
                            out_dtype=jnp.float32)
    s2, t2 = _bn_scale_shift(st2, g2, be2, count)

    # Final BN affine + ReLU (standalone lane-dense eltwise kernel).
    y = bn_relu(y2_wp, s2, t2)                        # (N, H, W, c2_p) f32
    y = y[:, :, :, :cout2]
    return jnp.transpose(y, (0, 3, 1, 2))             # back to NCHW


# -------------------------- pure-JAX reference ------------------------------

def _ref_conv_bn_relu(x, w, b, gamma, beta, eps=1e-5):
    y = jax.lax.conv_general_dilated(
        x, w, window_strides=(1, 1), padding="SAME",
        dimension_numbers=("NHWC", "HWIO", "NHWC")) + b
    mean = jnp.mean(y, axis=(0, 1, 2))
    var = jnp.var(y, axis=(0, 1, 2))
    y = (y - mean) / jnp.sqrt(var + eps) * gamma + beta
    return jnp.maximum(y, 0.0)


def ref_up_forward(params, x1_nchw, x2_nchw):
    x1 = jnp.transpose(x1_nchw, (0, 2, 3, 1)).astype(jnp.float32)
    x2 = jnp.transpose(x2_nchw, (0, 2, 3, 1)).astype(jnp.float32)
    x1 = bilinear_upsample_x2_align_corners(x1)
    diffY = x2.shape[1] - x1.shape[1]
    diffX = x2.shape[2] - x1.shape[2]
    x1 = jnp.pad(x1, ((0, 0),
                      (diffY // 2, diffY - diffY // 2),
                      (diffX // 2, diffX - diffX // 2),
                      (0, 0)))
    x = jnp.concatenate([x2, x1], axis=-1)
    y = _ref_conv_bn_relu(x, params["w1"], params["b1"], params["g1"], params["be1"])
    y = _ref_conv_bn_relu(y, params["w2"], params["b2"], params["g2"], params["be2"])
    return jnp.transpose(y, (0, 3, 1, 2))


# --------------------------------- main -------------------------------------

if __name__ == "__main__":
    # Up(in_channels=8, out_channels=4, bilinear=True)
    IN_CH, OUT_CH = 8, 4
    N, H, W = 2, 8, 8                     # x1 is half-resolution with IN_CH // 2 channels

    key = jax.random.PRNGKey(0)
    k1, k2, k3, k4, kx1, kx2 = jax.random.split(key, 6)

    params = {
        # DoubleConv conv1: Conv2d(IN_CH, OUT_CH, 3, padding=1) -> stored (kh,kw,Cin,Cout)
        "w1": (0.1 * jax.random.normal(k1, (3, 3, IN_CH, OUT_CH))).astype(jnp.float32),
        "b1": (0.1 * jax.random.normal(k2, (OUT_CH,))).astype(jnp.float32),
        "g1": jnp.ones((OUT_CH,), jnp.float32),      # BatchNorm2d weight
        "be1": jnp.zeros((OUT_CH,), jnp.float32),    # BatchNorm2d bias
        # DoubleConv conv2: Conv2d(OUT_CH, OUT_CH, 3, padding=1)
        "w2": (0.1 * jax.random.normal(k3, (3, 3, OUT_CH, OUT_CH))).astype(jnp.float32),
        "b2": (0.1 * jax.random.normal(k4, (OUT_CH,))).astype(jnp.float32),
        "g2": jnp.ones((OUT_CH,), jnp.float32),
        "be2": jnp.zeros((OUT_CH,), jnp.float32),
    }

    x1 = jax.random.normal(kx1, (N, IN_CH // 2, H, W), dtype=jnp.float32)           # NCHW
    x2 = jax.random.normal(kx2, (N, IN_CH // 2, 2 * H, 2 * W), dtype=jnp.float32)   # NCHW

    out = jax.jit(up_forward)(params, x1, x2)
    out = jax.block_until_ready(out)

    ref = jax.block_until_ready(jax.jit(ref_up_forward)(params, x1, x2))
    assert out.shape == (N, OUT_CH, 2 * H, 2 * W), out.shape
    max_err = float(jnp.max(jnp.abs(out - ref)))
    # bf16 MXU inputs (f32 accumulation / f32 BN stats) -> slightly looser tolerance.
    assert jnp.allclose(out, ref, rtol=2e-2, atol=2e-2), max_err

    print("KERNEL_OK")
</pallas_src>

<mosaic_0001>
module attributes {stable_mosaic.version = 11 : i64} {
  func.func @_conv3x3_bn_kernel(%arg0: i32, %arg1: i32, %arg2: i32, %arg3: memref<1x1x18x128xf32, #tpu.memory_space<vmem>>, %arg4: memref<1x16x18x128xf32, #tpu.memory_space<vmem>>, %arg5: memref<1x1x18x128xf32, #tpu.memory_space<vmem>>, %arg6: memref<3x3x128x128xbf16, #tpu.memory_space<vmem>>, %arg7: memref<1x128xf32, #tpu.memory_space<vmem>>, %arg8: memref<1x128xf32, #tpu.memory_space<vmem>>, %arg9: memref<1x128xf32, #tpu.memory_space<vmem>>, %arg10: memref<1x16x18x128xf32, #tpu.memory_space<vmem>>, %arg11: memref<1x1x2x128xf32, #tpu.memory_space<vmem>>) attributes {dimension_semantics = [#tpu.dimension_semantics<parallel>, #tpu.dimension_semantics<parallel>, #tpu.dimension_semantics<parallel>], iteration_bounds = array<i64: 2, 1, 1>, scalar_prefetch = 0 : i64, scratch_operands = 0 : i64, tpu.core_type = #tpu.core_type<tc>, window_params = [{transform_indices = @transform_0, window_bounds = array<i64: 1, 1, 18, 128>}, {transform_indices = @transform_1, window_bounds = array<i64: 1, 16, 18, 128>}, {transform_indices = @transform_2, window_bounds = array<i64: 1, 1, 18, 128>}, {transform_indices = @transform_3, window_bounds = array<i64: 3, 3, 128, 128>}, {transform_indices = @transform_4, window_bounds = array<i64: 1, 128>}, {pipeline_mode = #tpu.pipeline_mode<synchronous>, transform_indices = @transform_5, window_bounds = array<i64: 1, 128>}, {pipeline_mode = #tpu.pipeline_mode<synchronous>, transform_indices = @transform_6, window_bounds = array<i64: 1, 128>}, {transform_indices = @transform_7, window_bounds = array<i64: 1, 16, 18, 128>}, {transform_indices = @transform_8, window_bounds = array<i64: 1, 1, 2, 128>}]} {
    %c0 = arith.constant 0 : index
    %c0_0 = arith.constant 0 : index
    %c0_1 = arith.constant 0 : index
    %c0_2 = arith.constant 0 : index
    %0 = vector.load %arg3[%c0, %c0_0, %c0_1, %c0_2] : memref<1x1x18x128xf32, #tpu.memory_space<vmem>>, vector<1x1x18x128xf32>
    %1 = vector.shape_cast %0 : vector<1x1x18x128xf32> to vector<1x18x128xf32>
    %c0_3 = arith.constant 0 : index
    %c0_4 = arith.constant 0 : index
    %c0_5 = arith.constant 0 : index
    %c0_6 = arith.constant 0 : index
    %2 = vector.load %arg4[%c0_3, %c0_4, %c0_5, %c0_6] : memref<1x16x18x128xf32, #tpu.memory_space<vmem>>, vector<1x16x18x128xf32>
    %3 = vector.shape_cast %2 : vector<1x16x18x128xf32> to vector<16x18x128xf32>
    %c0_7 = arith.constant 0 : index
    %c0_8 = arith.constant 0 : index
    %c0_9 = arith.constant 0 : index
    %c0_10 = arith.constant 0 : index
    %4 = vector.load %arg5[%c0_7, %c0_8, %c0_9, %c0_10] : memref<1x1x18x128xf32, #tpu.memory_space<vmem>>, vector<1x1x18x128xf32>
    %5 = vector.shape_cast %4 : vector<1x1x18x128xf32> to vector<1x18x128xf32>
    %6 = tpu.concatenate %1, %3, %5 in 0 : vector<1x18x128xf32>, vector<16x18x128xf32>, vector<1x18x128xf32> -> vector<18x18x128xf32>
    %c0_11 = arith.constant 0 : index
    %c0_12 = arith.constant 0 : index
    %7 = vector.load %arg8[%c0_11, %c0_12] : memref<1x128xf32, #tpu.memory_space<vmem>>, vector<1x128xf32>
    %8 = vector.shape_cast %7 : vector<1x128xf32> to vector<1x1x128xf32>
    %c0_13 = arith.constant 0 : index
    %c0_14 = arith.constant 0 : index
    %9 = vector.load %arg9[%c0_13, %c0_14] : memref<1x128xf32, #tpu.memory_space<vmem>>, vector<1x128xf32>
    %10 = vector.shape_cast %9 : vector<1x128xf32> to vector<1x1x128xf32>
    %11 = vector.broadcast %8 : vector<1x1x128xf32> to vector<18x18x128xf32>
    %12 = arith.mulf %6, %11 : vector<18x18x128xf32>
    %13 = vector.broadcast %10 : vector<1x1x128xf32> to vector<18x18x128xf32>
    %14 = arith.addf %12, %13 : vector<18x18x128xf32>
    %cst = arith.constant 0.000000e+00 : f32
    %15 = vector.broadcast %cst : f32 to vector<18x18x128xf32>
    %16 = arith.maximumf %14, %15 : vector<18x18x128xf32>
    %17 = tpu.iota {dimensions = array<i32: 0>} : vector<18x18x128xi32>
    %c16_i32 = arith.constant 16 : i32
    %18 = arith.muli %arg1, %c16_i32 : i32
    %19 = vector.broadcast %18 : i32 to vector<18x18x128xi32>
    %20 = arith.addi %17, %19 : vector<18x18x128xi32>
    %21 = tpu.iota {dimensions = array<i32: 1>} : vector<18x18x128xi32>
    %c1_i32 = arith.constant 1 : i32
    %22 = vector.broadcast %c1_i32 : i32 to vector<18x18x128xi32>
    %23 = arith.cmpi sge, %20, %22 : vector<18x18x128xi32>
    %c16_i32_15 = arith.constant 16 : i32
    %24 = vector.broadcast %c16_i32_15 : i32 to vector<18x18x128xi32>
    %25 = arith.cmpi sle, %20, %24 : vector<18x18x128xi32>
    %26 = arith.andi %23, %25 : vector<18x18x128xi1>
    %c1_i32_16 = arith.constant 1 : i32
    %27 = vector.broadcast %c1_i32_16 : i32 to vector<18x18x128xi32>
    %28 = arith.cmpi sge, %21, %27 : vector<18x18x128xi32>
    %29 = arith.andi %26, %28 : vector<18x18x128xi1>
    %c16_i32_17 = arith.constant 16 : i32
    %30 = vector.broadcast %c16_i32_17 : i32 to vector<18x18x128xi32>
    %31 = arith.cmpi sle, %21, %30 : vector<18x18x128xi32>
    %32 = arith.andi %29, %31 : vector<18x18x128xi1>
    %cst_18 = arith.constant 0.000000e+00 : f32
    %33 = vector.broadcast %cst_18 : f32 to vector<18x18x128xf32>
    %34 = arith.select %32, %16, %33 : vector<18x18x128xi1>, vector<18x18x128xf32>
    %35 = arith.truncf %34 : vector<18x18x128xf32> to vector<18x18x128xbf16>
    %cst_19 = arith.constant 0.000000e+00 : f32
    %36 = vector.broadcast %cst_19 : f32 to vector<256x128xf32>
    %37 = vector.extract_strided_slice %35 {offsets = [0, 0, 0], sizes = [16, 16, 128], strides = [1, 1, 1]} : vector<18x18x128xbf16> to vector<16x16x128xbf16>
    %38 = vector.shape_cast %37 : vector<16x16x128xbf16> to vector<256x128xbf16>
    %c0_20 = arith.constant 0 : index
    %c0_21 = arith.constant 0 : index
    %c0_22 = arith.constant 0 : index
    %c0_23 = arith.constant 0 : index
    %39 = vector.load %arg6[%c0_20, %c0_21, %c0_22, %c0_23] : memref<3x3x128x128xbf16, #tpu.memory_space<vmem>>, vector<1x1x128x128xbf16>
    %40 = vector.shape_cast %39 : vector<1x1x128x128xbf16> to vector<128x128xbf16>
    %cst_24 = arith.constant dense<0.000000e+00> : vector<256x128xf32>
    %41 = tpu.matmul %38, %40, %cst_24 {dimension_numbers = #tpu.dot_dimension_numbers<[1], [0], [0], [1], [0, 0, 1, 1], [], []>} : vector<256x128xbf16>, vector<128x128xbf16>, vector<256x128xf32> -> vector<256x128xf32>
    %42 = arith.addf %36, %41 : vector<256x128xf32>
    %43 = vector.extract_strided_slice %35 {offsets = [0, 1, 0], sizes = [16, 16, 128], strides = [1, 1, 1]} : vector<18x18x128xbf16> to vector<16x16x128xbf16>
    %44 = vector.shape_cast %43 : vector<16x16x128xbf16> to vector<256x128xbf16>
    %c0_25 = arith.constant 0 : index
    %c1 = arith.constant 1 : index
    %c0_26 = arith.constant 0 : index
    %c0_27 = arith.constant 0 : index
    %45 = vector.load %arg6[%c0_25, %c1, %c0_26, %c0_27] : memref<3x3x128x128xbf16, #tpu.memory_space<vmem>>, vector<1x1x128x128xbf16>
    %46 = vector.shape_cast %45 : vector<1x1x128x128xbf16> to vector<128x128xbf16>
    %cst_28 = arith.constant dense<0.000000e+00> : vector<256x128xf32>
    %47 = tpu.matmul %44, %46, %cst_28 {dimension_numbers = #tpu.dot_dimension_numbers<[1], [0], [0], [1], [0, 0, 1, 1], [], []>} : vector<256x128xbf16>, vector<128x128xbf16>, vector<256x128xf32> -> vector<256x128xf32>
    %48 = arith.addf %42, %47 : vector<256x128xf32>
    %49 = vector.extract_strided_slice %35 {offsets = [0, 2, 0], sizes = [16, 16, 128], strides = [1, 1, 1]} : vector<18x18x128xbf16> to vector<16x16x128xbf16>
    %50 = vector.shape_cast %49 : vector<16x16x128xbf16> to vector<256x128xbf16>
    %c0_29 = arith.constant 0 : index
    %c2 = arith.constant 2 : index
    %c0_30 = arith.constant 0 : index
    %c0_31 = arith.constant 0 : index
    %51 = vector.load %arg6[%c0_29, %c2, %c0_30, %c0_31] : memref<3x3x128x128xbf16, #tpu.memory_space<vmem>>, vector<1x1x128x128xbf16>
    %52 = vector.shape_cast %51 : vector<1x1x128x128xbf16> to vector<128x128xbf16>
    %cst_32 = arith.constant dense<0.000000e+00> : vector<256x128xf32>
    %53 = tpu.matmul %50, %52, %cst_32 {dimension_numbers = #tpu.dot_dimension_numbers<[1], [0], [0], [1], [0, 0, 1, 1], [], []>} : vector<256x128xbf16>, vector<128x128xbf16>, vector<256x128xf32> -> vector<256x128xf32>
    %54 = arith.addf %48, %53 : vector<256x128xf32>
    %55 = vector.extract_strided_slice %35 {offsets = [1, 0, 0], sizes = [16, 16, 128], strides = [1, 1, 1]} : vector<18x18x128xbf16> to vector<16x16x128xbf16>
    %56 = vector.shape_cast %55 : vector<16x16x128xbf16> to vector<256x128xbf16>
    %c1_33 = arith.constant 1 : index
    %c0_34 = arith.constant 0 : index
    %c0_35 = arith.constant 0 : index
    %c0_36 = arith.constant 0 : index
    %57 = vector.load %arg6[%c1_33, %c0_34, %c0_35, %c0_36] : memref<3x3x128x128xbf16, #tpu.memory_space<vmem>>, vector<1x1x128x128xbf16>
    %58 = vector.shape_cast %57 : vector<1x1x128x128xbf16> to vector<128x128xbf16>
    %cst_37 = arith.constant dense<0.000000e+00> : vector<256x128xf32>
    %59 = tpu.matmul %56, %58, %cst_37 {dimension_numbers = #tpu.dot_dimension_numbers<[1], [0], [0], [1], [0, 0, 1, 1], [], []>} : vector<256x128xbf16>, vector<128x128xbf16>, vector<256x128xf32> -> vector<256x128xf32>
    %60 = arith.addf %54, %59 : vector<256x128xf32>
    %61 = vector.extract_strided_slice %35 {offsets = [1, 1, 0], sizes = [16, 16, 128], strides = [1, 1, 1]} : vector<18x18x128xbf16> to vector<16x16x128xbf16>
    %62 = vector.shape_cast %61 : vector<16x16x128xbf16> to vector<256x128xbf16>
    %c1_38 = arith.constant 1 : index
    %c1_39 = arith.constant 1 : index
    %c0_40 = arith.constant 0 : index
    %c0_41 = arith.constant 0 : index
    %63 = vector.load %arg6[%c1_38, %c1_39, %c0_40, %c0_41] : memref<3x3x128x128xbf16, #tpu.memory_space<vmem>>, vector<1x1x128x128xbf16>
    %64 = vector.shape_cast %63 : vector<1x1x128x128xbf16> to vector<128x128xbf16>
    %cst_42 = arith.constant dense<0.000000e+00> : vector<256x128xf32>
    %65 = tpu.matmul %62, %64, %cst_42 {dimension_numbers = #tpu.dot_dimension_numbers<[1], [0], [0], [1], [0, 0, 1, 1], [], []>} : vector<256x128xbf16>, vector<128x128xbf16>, vector<256x128xf32> -> vector<256x128xf32>
    %66 = arith.addf %60, %65 : vector<256x128xf32>
    %67 = vector.extract_strided_slice %35 {offsets = [1, 2, 0], sizes = [16, 16, 128], strides = [1, 1, 1]} : vector<18x18x128xbf16> to vector<16x16x128xbf16>
    %68 = vector.shape_cast %67 : vector<16x16x128xbf16> to vector<256x128xbf16>
    %c1_43 = arith.constant 1 : index
    %c2_44 = arith.constant 2 : index
    %c0_45 = arith.constant 0 : index
    %c0_46 = arith.constant 0 : index
    %69 = vector.load %arg6[%c1_43, %c2_44, %c0_45, %c0_46] : memref<3x3x128x128xbf16, #tpu.memory_space<vmem>>, vector<1x1x128x128xbf16>
    %70 = vector.shape_cast %69 : vector<1x1x128x128xbf16> to vector<128x128xbf16>
    %cst_47 = arith.constant dense<0.000000e+00> : vector<256x128xf32>
    %71 = tpu.matmul %68, %70, %cst_47 {dimension_numbers = #tpu.dot_dimension_numbers<[1], [0], [0], [1], [0, 0, 1, 1], [], []>} : vector<256x128xbf16>, vector<128x128xbf16>, vector<256x128xf32> -> vector<256x128xf32>
    %72 = arith.addf %66, %71 : vector<256x128xf32>
    %73 = vector.extract_strided_slice %35 {offsets = [2, 0, 0], sizes = [16, 16, 128], strides = [1, 1, 1]} : vector<18x18x128xbf16> to vector<16x16x128xbf16>
    %74 = vector.shape_cast %73 : vector<16x16x128xbf16> to vector<256x128xbf16>
    %c2_48 = arith.constant 2 : index
    %c0_49 = arith.constant 0 : index
    %c0_50 = arith.constant 0 : index
    %c0_51 = arith.constant 0 : index
    %75 = vector.load %arg6[%c2_48, %c0_49, %c0_50, %c0_51] : memref<3x3x128x128xbf16, #tpu.memory_space<vmem>>, vector<1x1x128x128xbf16>
    %76 = vector.shape_cast %75 : vector<1x1x128x128xbf16> to vector<128x128xbf16>
    %cst_52 = arith.constant dense<0.000000e+00> : vector<256x128xf32>
    %77 = tpu.matmul %74, %76, %cst_52 {dimension_numbers = #tpu.dot_dimension_numbers<[1], [0], [0], [1], [0, 0, 1, 1], [], []>} : vector<256x128xbf16>, vector<128x128xbf16>, vector<256x128xf32> -> vector<256x128xf32>
    %78 = arith.addf %72, %77 : vector<256x128xf32>
    %79 = vector.extract_strided_slice %35 {offsets = [2, 1, 0], sizes = [16, 16, 128], strides = [1, 1, 1]} : vector<18x18x128xbf16> to vector<16x16x128xbf16>
    %80 = vector.shape_cast %79 : vector<16x16x128xbf16> to vector<256x128xbf16>
    %c2_53 = arith.constant 2 : index
    %c1_54 = arith.constant 1 : index
    %c0_55 = arith.constant 0 : index
    %c0_56 = arith.constant 0 : index
    %81 = vector.load %arg6[%c2_53, %c1_54, %c0_55, %c0_56] : memref<3x3x128x128xbf16, #tpu.memory_space<vmem>>, vector<1x1x128x128xbf16>
    %82 = vector.shape_cast %81 : vector<1x1x128x128xbf16> to vector<128x128xbf16>
    %cst_57 = arith.constant dense<0.000000e+00> : vector<256x128xf32>
    %83 = tpu.matmul %80, %82, %cst_57 {dimension_numbers = #tpu.dot_dimension_numbers<[1], [0], [0], [1], [0, 0, 1, 1], [], []>} : vector<256x128xbf16>, vector<128x128xbf16>, vector<256x128xf32> -> vector<256x128xf32>
    %84 = arith.addf %78, %83 : vector<256x128xf32>
    %85 = vector.extract_strided_slice %35 {offsets = [2, 2, 0], sizes = [16, 16, 128], strides = [1, 1, 1]} : vector<18x18x128xbf16> to vector<16x16x128xbf16>
    %86 = vector.shape_cast %85 : vector<16x16x128xbf16> to vector<256x128xbf16>
    %c2_58 = arith.constant 2 : index
    %c2_59 = arith.constant 2 : index
    %c0_60 = arith.constant 0 : index
    %c0_61 = arith.constant 0 : index
    %87 = vector.load %arg6[%c2_58, %c2_59, %c0_60, %c0_61] : memref<3x3x128x128xbf16, #tpu.memory_space<vmem>>, vector<1x1x128x128xbf16>
    %88 = vector.shape_cast %87 : vector<1x1x128x128xbf16> to vector<128x128xbf16>
    %cst_62 = arith.constant dense<0.000000e+00> : vector<256x128xf32>
    %89 = tpu.matmul %86, %88, %cst_62 {dimension_numbers = #tpu.dot_dimension_numbers<[1], [0], [0], [1], [0, 0, 1, 1], [], []>} : vector<256x128xbf16>, vector<128x128xbf16>, vector<256x128xf32> -> vector<256x128xf32>
    %90 = arith.addf %84, %89 : vector<256x128xf32>
    %c0_63 = arith.constant 0 : index
    %c0_64 = arith.constant 0 : index
    %91 = vector.load %arg7[%c0_63, %c0_64] : memref<1x128xf32, #tpu.memory_space<vmem>>, vector<1x128xf32>
    %92 = vector.broadcast %91 : vector<1x128xf32> to vector<256x128xf32>
    %93 = arith.addf %90, %92 : vector<256x128xf32>
    %cst_65 = arith.constant dense<0.000000e+00> : vector<128xf32>
    %94 = vector.multi_reduction <add>, %93, %cst_65 [0] : vector<256x128xf32> to vector<128xf32>
    %95 = vector.shape_cast %94 : vector<128xf32> to vector<1x128xf32>
    %96 = arith.mulf %93, %93 : vector<256x128xf32>
    %cst_66 = arith.constant dense<0.000000e+00> : vector<128xf32>
    %97 = vector.multi_reduction <add>, %96, %cst_66 [0] : vector<256x128xf32> to vector<128xf32>
    %98 = vector.shape_cast %97 : vector<128xf32> to vector<1x128xf32>
    %99 = tpu.concatenate %95, %98 in 0 : vector<1x128xf32>, vector<1x128xf32> -> vector<2x128xf32>
    %c0_67 = arith.constant 0 : index
    %c0_68 = arith.constant 0 : index
    %c0_69 = arith.constant 0 : index
    %c0_70 = arith.constant 0 : index
    %100 = vector.load %arg11[%c0_67, %c0_68, %c0_69, %c0_70] : memref<1x1x2x128xf32, #tpu.memory_space<vmem>>, vector<1x1x2x128xf32>
    %101 = vector.shape_cast %100 : vector<1x1x2x128xf32> to vector<2x128xf32>
    %102 = vector.shape_cast %99 : vector<2x128xf32> to vector<1x1x2x128xf32>
    tpu.vector_store %arg11[%c0_67, %c0_68, %c0_69, %c0_70], %102 {strides = array<i32>} : memref<1x1x2x128xf32, #tpu.memory_space<vmem>>, vector<1x1x2x128xf32>,
    %103 = vector.shape_cast %93 : vector<256x128xf32> to vector<16x16x128xf32>
    %cst_71 = arith.constant 0.000000e+00 : f32
    %104 = vector.broadcast %cst_71 : f32 to vector<1x16x18x128xf32>
    %c0_72 = arith.constant 0 : index
    %c0_73 = arith.constant 0 : index
    %c0_74 = arith.constant 0 : index
    %c0_75 = arith.constant 0 : index
    %105 = vector.load %arg10[%c0_72, %c0_73, %c0_74, %c0_75] : memref<1x16x18x128xf32, #tpu.memory_space<vmem>>, vector<1x16x18x128xf32>
    tpu.vector_store %arg10[%c0_72, %c0_73, %c0_74, %c0_75], %104 {strides = array<i32>} : memref<1x16x18x128xf32, #tpu.memory_space<vmem>>, vector<1x16x18x128xf32>,
    %c0_76 = arith.constant 0 : index
    %c0_77 = arith.constant 0 : index
    %c1_78 = arith.constant 1 : index
    %c0_79 = arith.constant 0 : index
    %106 = vector.load %arg10[%c0_76, %c0_77, %c1_78, %c0_79] : memref<1x16x18x128xf32, #tpu.memory_space<vmem>>, vector<1x16x16x128xf32>
    %107 = vector.shape_cast %106 : vector<1x16x16x128xf32> to vector<16x16x128xf32>
    %108 = vector.shape_cast %103 : vector<16x16x128xf32> to vector<1x16x16x128xf32>
    tpu.vector_store %arg10[%c0_76, %c0_77, %c1_78, %c0_79], %108 {strides = array<i32>} : memref<1x16x18x128xf32, #tpu.memory_space<vmem>>, vector<1x16x16x128xf32>,
    return
  }
  func.func @transform_0(%arg0: i32, %arg1: i32, %arg2: i32) -> (i32, i32, i32, i32) {
    %c16_i32 = arith.constant 16 : i32
    %0 = arith.muli %arg1, %c16_i32 : i32
    %c1_i32 = arith.constant 1 : i32
    %1 = arith.subi %0, %c1_i32 : i32
    %c0_i32 = arith.constant 0 : i32
    %2 = arith.maxsi %1, %c0_i32 : i32
    %c0_i32_0 = arith.constant 0 : i32
    %c0_i32_1 = arith.constant 0 : i32
    %c0_i32_2 = arith.constant 0 : i32
    return %arg0, %2, %c0_i32_0, %c0_i32_1 : i32, i32, i32, i32
  }
  func.func @transform_1(%arg0: i32, %arg1: i32, %arg2: i32) -> (i32, i32, i32, i32) {
    %c0_i32 = arith.constant 0 : i32
    %c0_i32_0 = arith.constant 0 : i32
    %c0_i32_1 = arith.constant 0 : i32
    return %arg0, %arg1, %c0_i32, %c0_i32_0 : i32, i32, i32, i32
  }
  func.func @transform_2(%arg0: i32, %arg1: i32, %arg2: i32) -> (i32, i32, i32, i32) {
    %c16_i32 = arith.constant 16 : i32
    %0 = arith.muli %arg1, %c16_i32 : i32
    %c16_i32_0 = arith.constant 16 : i32
    %1 = arith.addi %0, %c16_i32_0 : i32
    %c15_i32 = arith.constant 15 : i32
    %2 = arith.minsi %1, %c15_i32 : i32
    %c0_i32 = arith.constant 0 : i32
    %c0_i32_1 = arith.constant 0 : i32
    %c0_i32_2 = arith.constant 0 : i32
    return %arg0, %2, %c0_i32, %c0_i32_1 : i32, i32, i32, i32
  }
  func.func @transform_3(%arg0: i32, %arg1: i32, %arg2: i32) -> (i32, i32, i32, i32) {
    %c0_i32 = arith.constant 0 : i32
    %c0_i32_0 = arith.constant 0 : i32
    %c0_i32_1 = arith.constant 0 : i32
    %c0_i32_2 = arith.constant 0 : i32
    return %c0_i32, %c0_i32_0, %c0_i32_1, %arg2 : i32, i32, i32, i32
  }
  func.func @transform_4(%arg0: i32, %arg1: i32, %arg2: i32) -> (i32, i32) {
    %c0_i32 = arith.constant 0 : i32
    %c0_i32_0 = arith.constant 0 : i32
    return %c0_i32, %arg2 : i32, i32
  }
  func.func @transform_5(%arg0: i32, %arg1: i32, %arg2: i32) -> (i32, i32) {
    %c0_i32 = arith.constant 0 : i32
    %c0_i32_0 = arith.constant 0 : i32
    %c0_i32_1 = arith.constant 0 : i32
    return %c0_i32, %c0_i32_0 : i32, i32
  }
  func.func @transform_6(%arg0: i32, %arg1: i32, %arg2: i32) -> (i32, i32) {
    %c0_i32 = arith.constant 0 : i32
    %c0_i32_0 = arith.constant 0 : i32
    %c0_i32_1 = arith.constant 0 : i32
    return %c0_i32, %c0_i32_0 : i32, i32
  }
  func.func @transform_7(%arg0: i32, %arg1: i32, %arg2: i32) -> (i32, i32, i32, i32) {
    %c0_i32 = arith.constant 0 : i32
    %c0_i32_0 = arith.constant 0 : i32
    return %arg0, %arg1, %c0_i32, %arg2 : i32, i32, i32, i32
  }
  func.func @transform_8(%arg0: i32, %arg1: i32, %arg2: i32) -> (i32, i32, i32, i32) {
    %c0_i32 = arith.constant 0 : i32
    %c0_i32_0 = arith.constant 0 : i32
    return %arg0, %arg1, %c0_i32, %arg2 : i32, i32, i32, i32
  }
}

module attributes {stable_mosaic.version = 11 : i64} {
  func.func @_conv3x3_bn_kernel(%arg0: i32, %arg1: i32, %arg2: i32, %arg3: memref<1x1x18x128xbf16, #tpu.memory_space<vmem>>, %arg4: memref<1x16x18x128xbf16, #tpu.memory_space<vmem>>, %arg5: memref<1x1x18x128xbf16, #tpu.memory_space<vmem>>, %arg6: memref<3x3x128x128xbf16, #tpu.memory_space<vmem>>, %arg7: memref<1x128xf32, #tpu.memory_space<vmem>>, %arg8: memref<1x16x18x128xf32, #tpu.memory_space<vmem>>, %arg9: memref<1x1x2x128xf32, #tpu.memory_space<vmem>>) attributes {dimension_semantics = [#tpu.dimension_semantics<parallel>, #tpu.dimension_semantics<parallel>, #tpu.dimension_semantics<parallel>], iteration_bounds = array<i64: 2, 1, 1>, scalar_prefetch = 0 : i64, scratch_operands = 0 : i64, tpu.core_type = #tpu.core_type<tc>, window_params = [{transform_indices = @transform_0, window_bounds = array<i64: 1, 1, 18, 128>}, {transform_indices = @transform_1, window_bounds = array<i64: 1, 16, 18, 128>}, {transform_indices = @transform_2, window_bounds = array<i64: 1, 1, 18, 128>}, {transform_indices = @transform_3, window_bounds = array<i64: 3, 3, 128, 128>}, {transform_indices = @transform_4, window_bounds = array<i64: 1, 128>}, {transform_indices = @transform_5, window_bounds = array<i64: 1, 16, 18, 128>}, {transform_indices = @transform_6, window_bounds = array<i64: 1, 1, 2, 128>}]} {
    %c0 = arith.constant 0 : index
    %c0_0 = arith.constant 0 : index
    %c0_1 = arith.constant 0 : index
    %c0_2 = arith.constant 0 : index
    %0 = vector.load %arg3[%c0, %c0_0, %c0_1, %c0_2] : memref<1x1x18x128xbf16, #tpu.memory_space<vmem>>, vector<1x1x18x128xbf16>
    %1 = vector.shape_cast %0 : vector<1x1x18x128xbf16> to vector<1x18x128xbf16>
    %c0_3 = arith.constant 0 : index
    %c0_4 = arith.constant 0 : index
    %c0_5 = arith.constant 0 : index
    %c0_6 = arith.constant 0 : index
    %2 = vector.load %arg4[%c0_3, %c0_4, %c0_5, %c0_6] : memref<1x16x18x128xbf16, #tpu.memory_space<vmem>>, vector<1x16x18x128xbf16>
    %3 = vector.shape_cast %2 : vector<1x16x18x128xbf16> to vector<16x18x128xbf16>
    %c0_7 = arith.constant 0 : index
    %c0_8 = arith.constant 0 : index
    %c0_9 = arith.constant 0 : index
    %c0_10 = arith.constant 0 : index
    %4 = vector.load %arg5[%c0_7, %c0_8, %c0_9, %c0_10] : memref<1x1x18x128xbf16, #tpu.memory_space<vmem>>, vector<1x1x18x128xbf16>
    %5 = vector.shape_cast %4 : vector<1x1x18x128xbf16> to vector<1x18x128xbf16>
    %6 = tpu.concatenate %1, %3, %5 in 0 : vector<1x18x128xbf16>, vector<16x18x128xbf16>, vector<1x18x128xbf16> -> vector<18x18x128xbf16>
    %7 = arith.extf %6 : vector<18x18x128xbf16> to vector<18x18x128xf32>
    %8 = tpu.iota {dimensions = array<i32: 0>} : vector<18x18x128xi32>
    %c16_i32 = arith.constant 16 : i32
    %9 = arith.muli %arg1, %c16_i32 : i32
    %10 = vector.broadcast %9 : i32 to vector<18x18x128xi32>
    %11 = arith.addi %8, %10 : vector<18x18x128xi32>
    %12 = tpu.iota {dimensions = array<i32: 1>} : vector<18x18x128xi32>
    %c1_i32 = arith.constant 1 : i32
    %13 = vector.broadcast %c1_i32 : i32 to vector<18x18x128xi32>
    %14 = arith.cmpi sge, %11, %13 : vector<18x18x128xi32>
    %c16_i32_11 = arith.constant 16 : i32
    %15 = vector.broadcast %c16_i32_11 : i32 to vector<18x18x128xi32>
    %16 = arith.cmpi sle, %11, %15 : vector<18x18x128xi32>
    %17 = arith.andi %14, %16 : vector<18x18x128xi1>
    %c1_i32_12 = arith.constant 1 : i32
    %18 = vector.broadcast %c1_i32_12 : i32 to vector<18x18x128xi32>
    %19 = arith.cmpi sge, %12, %18 : vector<18x18x128xi32>
    %20 = arith.andi %17, %19 : vector<18x18x128xi1>
    %c16_i32_13 = arith.constant 16 : i32
    %21 = vector.broadcast %c16_i32_13 : i32 to vector<18x18x128xi32>
    %22 = arith.cmpi sle, %12, %21 : vector<18x18x128xi32>
    %23 = arith.andi %20, %22 : vector<18x18x128xi1>
    %cst = arith.constant 0.000000e+00 : f32
    %24 = vector.broadcast %cst : f32 to vector<18x18x128xf32>
    %25 = arith.select %23, %7, %24 : vector<18x18x128xi1>, vector<18x18x128xf32>
    %26 = arith.truncf %25 : vector<18x18x128xf32> to vector<18x18x128xbf16>
    %cst_14 = arith.constant 0.000000e+00 : f32
    %27 = vector.broadcast %cst_14 : f32 to vector<256x128xf32>
    %28 = vector.extract_strided_slice %26 {offsets = [0, 0, 0], sizes = [16, 16, 128], strides = [1, 1, 1]} : vector<18x18x128xbf16> to vector<16x16x128xbf16>
    %29 = vector.shape_cast %28 : vector<16x16x128xbf16> to vector<256x128xbf16>
    %c0_15 = arith.constant 0 : index
    %c0_16 = arith.constant 0 : index
    %c0_17 = arith.constant 0 : index
    %c0_18 = arith.constant 0 : index
    %30 = vector.load %arg6[%c0_15, %c0_16, %c0_17, %c0_18] : memref<3x3x128x128xbf16, #tpu.memory_space<vmem>>, vector<1x1x128x128xbf16>
    %31 = vector.shape_cast %30 : vector<1x1x128x128xbf16> to vector<128x128xbf16>
    %cst_19 = arith.constant dense<0.000000e+00> : vector<256x128xf32>
    %32 = tpu.matmul %29, %31, %cst_19 {dimension_numbers = #tpu.dot_dimension_numbers<[1], [0], [0], [1], [0, 0, 1, 1], [], []>} : vector<256x128xbf16>, vector<128x128xbf16>, vector<256x128xf32> -> vector<256x128xf32>
    %33 = arith.addf %27, %32 : vector<256x128xf32>
    %34 = vector.extract_strided_slice %26 {offsets = [0, 1, 0], sizes = [16, 16, 128], strides = [1, 1, 1]} : vector<18x18x128xbf16> to vector<16x16x128xbf16>
    %35 = vector.shape_cast %34 : vector<16x16x128xbf16> to vector<256x128xbf16>
    %c0_20 = arith.constant 0 : index
    %c1 = arith.constant 1 : index
    %c0_21 = arith.constant 0 : index
    %c0_22 = arith.constant 0 : index
    %36 = vector.load %arg6[%c0_20, %c1, %c0_21, %c0_22] : memref<3x3x128x128xbf16, #tpu.memory_space<vmem>>, vector<1x1x128x128xbf16>
    %37 = vector.shape_cast %36 : vector<1x1x128x128xbf16> to vector<128x128xbf16>
    %cst_23 = arith.constant dense<0.000000e+00> : vector<256x128xf32>
    %38 = tpu.matmul %35, %37, %cst_23 {dimension_numbers = #tpu.dot_dimension_numbers<[1], [0], [0], [1], [0, 0, 1, 1], [], []>} : vector<256x128xbf16>, vector<128x128xbf16>, vector<256x128xf32> -> vector<256x128xf32>
    %39 = arith.addf %33, %38 : vector<256x128xf32>
    %40 = vector.extract_strided_slice %26 {offsets = [0, 2, 0], sizes = [16, 16, 128], strides = [1, 1, 1]} : vector<18x18x128xbf16> to vector<16x16x128xbf16>
    %41 = vector.shape_cast %40 : vector<16x16x128xbf16> to vector<256x128xbf16>
    %c0_24 = arith.constant 0 : index
    %c2 = arith.constant 2 : index
    %c0_25 = arith.constant 0 : index
    %c0_26 = arith.constant 0 : index
    %42 = vector.load %arg6[%c0_24, %c2, %c0_25, %c0_26] : memref<3x3x128x128xbf16, #tpu.memory_space<vmem>>, vector<1x1x128x128xbf16>
    %43 = vector.shape_cast %42 : vector<1x1x128x128xbf16> to vector<128x128xbf16>
    %cst_27 = arith.constant dense<0.000000e+00> : vector<256x128xf32>
    %44 = tpu.matmul %41, %43, %cst_27 {dimension_numbers = #tpu.dot_dimension_numbers<[1], [0], [0], [1], [0, 0, 1, 1], [], []>} : vector<256x128xbf16>, vector<128x128xbf16>, vector<256x128xf32> -> vector<256x128xf32>
    %45 = arith.addf %39, %44 : vector<256x128xf32>
    %46 = vector.extract_strided_slice %26 {offsets = [1, 0, 0], sizes = [16, 16, 128], strides = [1, 1, 1]} : vector<18x18x128xbf16> to vector<16x16x128xbf16>
    %47 = vector.shape_cast %46 : vector<16x16x128xbf16> to vector<256x128xbf16>
    %c1_28 = arith.constant 1 : index
    %c0_29 = arith.constant 0 : index
    %c0_30 = arith.constant 0 : index
    %c0_31 = arith.constant 0 : index
    %48 = vector.load %arg6[%c1_28, %c0_29, %c0_30, %c0_31] : memref<3x3x128x128xbf16, #tpu.memory_space<vmem>>, vector<1x1x128x128xbf16>
    %49 = vector.shape_cast %48 : vector<1x1x128x128xbf16> to vector<128x128xbf16>
    %cst_32 = arith.constant dense<0.000000e+00> : vector<256x128xf32>
    %50 = tpu.matmul %47, %49, %cst_32 {dimension_numbers = #tpu.dot_dimension_numbers<[1], [0], [0], [1], [0, 0, 1, 1], [], []>} : vector<256x128xbf16>, vector<128x128xbf16>, vector<256x128xf32> -> vector<256x128xf32>
    %51 = arith.addf %45, %50 : vector<256x128xf32>
    %52 = vector.extract_strided_slice %26 {offsets = [1, 1, 0], sizes = [16, 16, 128], strides = [1, 1, 1]} : vector<18x18x128xbf16> to vector<16x16x128xbf16>
    %53 = vector.shape_cast %52 : vector<16x16x128xbf16> to vector<256x128xbf16>
    %c1_33 = arith.constant 1 : index
    %c1_34 = arith.constant 1 : index
    %c0_35 = arith.constant 0 : index
    %c0_36 = arith.constant 0 : index
    %54 = vector.load %arg6[%c1_33, %c1_34, %c0_35, %c0_36] : memref<3x3x128x128xbf16, #tpu.memory_space<vmem>>, vector<1x1x128x128xbf16>
    %55 = vector.shape_cast %54 : vector<1x1x128x128xbf16> to vector<128x128xbf16>
    %cst_37 = arith.constant dense<0.000000e+00> : vector<256x128xf32>
    %56 = tpu.matmul %53, %55, %cst_37 {dimension_numbers = #tpu.dot_dimension_numbers<[1], [0], [0], [1], [0, 0, 1, 1], [], []>} : vector<256x128xbf16>, vector<128x128xbf16>, vector<256x128xf32> -> vector<256x128xf32>
    %57 = arith.addf %51, %56 : vector<256x128xf32>
    %58 = vector.extract_strided_slice %26 {offsets = [1, 2, 0], sizes = [16, 16, 128], strides = [1, 1, 1]} : vector<18x18x128xbf16> to vector<16x16x128xbf16>
    %59 = vector.shape_cast %58 : vector<16x16x128xbf16> to vector<256x128xbf16>
    %c1_38 = arith.constant 1 : index
    %c2_39 = arith.constant 2 : index
    %c0_40 = arith.constant 0 : index
    %c0_41 = arith.constant 0 : index
    %60 = vector.load %arg6[%c1_38, %c2_39, %c0_40, %c0_41] : memref<3x3x128x128xbf16, #tpu.memory_space<vmem>>, vector<1x1x128x128xbf16>
    %61 = vector.shape_cast %60 : vector<1x1x128x128xbf16> to vector<128x128xbf16>
    %cst_42 = arith.constant dense<0.000000e+00> : vector<256x128xf32>
    %62 = tpu.matmul %59, %61, %cst_42 {dimension_numbers = #tpu.dot_dimension_numbers<[1], [0], [0], [1], [0, 0, 1, 1], [], []>} : vector<256x128xbf16>, vector<128x128xbf16>, vector<256x128xf32> -> vector<256x128xf32>
    %63 = arith.addf %57, %62 : vector<256x128xf32>
    %64 = vector.extract_strided_slice %26 {offsets = [2, 0, 0], sizes = [16, 16, 128], strides = [1, 1, 1]} : vector<18x18x128xbf16> to vector<16x16x128xbf16>
    %65 = vector.shape_cast %64 : vector<16x16x128xbf16> to vector<256x128xbf16>
    %c2_43 = arith.constant 2 : index
    %c0_44 = arith.constant 0 : index
    %c0_45 = arith.constant 0 : index
    %c0_46 = arith.constant 0 : index
    %66 = vector.load %arg6[%c2_43, %c0_44, %c0_45, %c0_46] : memref<3x3x128x128xbf16, #tpu.memory_space<vmem>>, vector<1x1x128x128xbf16>
    %67 = vector.shape_cast %66 : vector<1x1x128x128xbf16> to vector<128x128xbf16>
    %cst_47 = arith.constant dense<0.000000e+00> : vector<256x128xf32>
    %68 = tpu.matmul %65, %67, %cst_47 {dimension_numbers = #tpu.dot_dimension_numbers<[1], [0], [0], [1], [0, 0, 1, 1], [], []>} : vector<256x128xbf16>, vector<128x128xbf16>, vector<256x128xf32> -> vector<256x128xf32>
    %69 = arith.addf %63, %68 : vector<256x128xf32>
    %70 = vector.extract_strided_slice %26 {offsets = [2, 1, 0], sizes = [16, 16, 128], strides = [1, 1, 1]} : vector<18x18x128xbf16> to vector<16x16x128xbf16>
    %71 = vector.shape_cast %70 : vector<16x16x128xbf16> to vector<256x128xbf16>
    %c2_48 = arith.constant 2 : index
    %c1_49 = arith.constant 1 : index
    %c0_50 = arith.constant 0 : index
    %c0_51 = arith.constant 0 : index
    %72 = vector.load %arg6[%c2_48, %c1_49, %c0_50, %c0_51] : memref<3x3x128x128xbf16, #tpu.memory_space<vmem>>, vector<1x1x128x128xbf16>
    %73 = vector.shape_cast %72 : vector<1x1x128x128xbf16> to vector<128x128xbf16>
    %cst_52 = arith.constant dense<0.000000e+00> : vector<256x128xf32>
    %74 = tpu.matmul %71, %73, %cst_52 {dimension_numbers = #tpu.dot_dimension_numbers<[1], [0], [0], [1], [0, 0, 1, 1], [], []>} : vector<256x128xbf16>, vector<128x128xbf16>, vector<256x128xf32> -> vector<256x128xf32>
    %75 = arith.addf %69, %74 : vector<256x128xf32>
    %76 = vector.extract_strided_slice %26 {offsets = [2, 2, 0], sizes = [16, 16, 128], strides = [1, 1, 1]} : vector<18x18x128xbf16> to vector<16x16x128xbf16>
    %77 = vector.shape_cast %76 : vector<16x16x128xbf16> to vector<256x128xbf16>
    %c2_53 = arith.constant 2 : index
    %c2_54 = arith.constant 2 : index
    %c0_55 = arith.constant 0 : index
    %c0_56 = arith.constant 0 : index
    %78 = vector.load %arg6[%c2_53, %c2_54, %c0_55, %c0_56] : memref<3x3x128x128xbf16, #tpu.memory_space<vmem>>, vector<1x1x128x128xbf16>
    %79 = vector.shape_cast %78 : vector<1x1x128x128xbf16> to vector<128x128xbf16>
    %cst_57 = arith.constant dense<0.000000e+00> : vector<256x128xf32>
    %80 = tpu.matmul %77, %79, %cst_57 {dimension_numbers = #tpu.dot_dimension_numbers<[1], [0], [0], [1], [0, 0, 1, 1], [], []>} : vector<256x128xbf16>, vector<128x128xbf16>, vector<256x128xf32> -> vector<256x128xf32>
    %81 = arith.addf %75, %80 : vector<256x128xf32>
    %c0_58 = arith.constant 0 : index
    %c0_59 = arith.constant 0 : index
    %82 = vector.load %arg7[%c0_58, %c0_59] : memref<1x128xf32, #tpu.memory_space<vmem>>, vector<1x128xf32>
    %83 = vector.broadcast %82 : vector<1x128xf32> to vector<256x128xf32>
    %84 = arith.addf %81, %83 : vector<256x128xf32>
    %cst_60 = arith.constant dense<0.000000e+00> : vector<128xf32>
    %85 = vector.multi_reduction <add>, %84, %cst_60 [0] : vector<256x128xf32> to vector<128xf32>
    %86 = vector.shape_cast %85 : vector<128xf32> to vector<1x128xf32>
    %87 = arith.mulf %84, %84 : vector<256x128xf32>
    %cst_61 = arith.constant dense<0.000000e+00> : vector<128xf32>
    %88 = vector.multi_reduction <add>, %87, %cst_61 [0] : vector<256x128xf32> to vector<128xf32>
    %89 = vector.shape_cast %88 : vector<128xf32> to vector<1x128xf32>
    %90 = tpu.concatenate %86, %89 in 0 : vector<1x128xf32>, vector<1x128xf32> -> vector<2x128xf32>
    %c0_62 = arith.constant 0 : index
    %c0_63 = arith.constant 0 : index
    %c0_64 = arith.constant 0 : index
    %c0_65 = arith.constant 0 : index
    %91 = vector.load %arg9[%c0_62, %c0_63, %c0_64, %c0_65] : memref<1x1x2x128xf32, #tpu.memory_space<vmem>>, vector<1x1x2x128xf32>
    %92 = vector.shape_cast %91 : vector<1x1x2x128xf32> to vector<2x128xf32>
    %93 = vector.shape_cast %90 : vector<2x128xf32> to vector<1x1x2x128xf32>
    tpu.vector_store %arg9[%c0_62, %c0_63, %c0_64, %c0_65], %93 {strides = array<i32>} : memref<1x1x2x128xf32, #tpu.memory_space<vmem>>, vector<1x1x2x128xf32>,
    %94 = vector.shape_cast %84 : vector<256x128xf32> to vector<16x16x128xf32>
    %cst_66 = arith.constant 0.000000e+00 : f32
    %95 = vector.broadcast %cst_66 : f32 to vector<1x16x18x128xf32>
    %c0_67 = arith.constant 0 : index
    %c0_68 = arith.constant 0 : index
    %c0_69 = arith.constant 0 : index
    %c0_70 = arith.constant 0 : index
    %96 = vector.load %arg8[%c0_67, %c0_68, %c0_69, %c0_70] : memref<1x16x18x128xf32, #tpu.memory_space<vmem>>, vector<1x16x18x128xf32>
    tpu.vector_store %arg8[%c0_67, %c0_68, %c0_69, %c0_70], %95 {strides = array<i32>} : memref<1x16x18x128xf32, #tpu.memory_space<vmem>>, vector<1x16x18x128xf32>,
    %c0_71 = arith.constant 0 : index
    %c0_72 = arith.constant 0 : index
    %c1_73 = arith.constant 1 : index
    %c0_74 = arith.constant 0 : index
    %97 = vector.load %arg8[%c0_71, %c0_72, %c1_73, %c0_74] : memref<1x16x18x128xf32, #tpu.memory_space<vmem>>, vector<1x16x16x128xf32>
    %98 = vector.shape_cast %97 : vector<1x16x16x128xf32> to vector<16x16x128xf32>
    %99 = vector.shape_cast %94 : vector<16x16x128xf32> to vector<1x16x16x128xf32>
    tpu.vector_store %arg8[%c0_71, %c0_72, %c1_73, %c0_74], %99 {strides = array<i32>} : memref<1x16x18x128xf32, #tpu.memory_space<vmem>>, vector<1x16x16x128xf32>,
    return
  }
  func.func @transform_0(%arg0: i32, %arg1: i32, %arg2: i32) -> (i32, i32, i32, i32) {
    %c16_i32 = arith.constant 16 : i32
    %0 = arith.muli %arg1, %c16_i32 : i32
    %c1_i32 = arith.constant 1 : i32
    %1 = arith.subi %0, %c1_i32 : i32
    %c0_i32 = arith.constant 0 : i32
    %2 = arith.maxsi %1, %c0_i32 : i32
    %c0_i32_0 = arith.constant 0 : i32
    %c0_i32_1 = arith.constant 0 : i32
    %c0_i32_2 = arith.constant 0 : i32
    return %arg0, %2, %c0_i32_0, %c0_i32_1 : i32, i32, i32, i32
  }
  func.func @transform_1(%arg0: i32, %arg1: i32, %arg2: i32) -> (i32, i32, i32, i32) {
    %c0_i32 = arith.constant 0 : i32
    %c0_i32_0 = arith.constant 0 : i32
    %c0_i32_1 = arith.constant 0 : i32
    return %arg0, %arg1, %c0_i32, %c0_i32_0 : i32, i32, i32, i32
  }
  func.func @transform_2(%arg0: i32, %arg1: i32, %arg2: i32) -> (i32, i32, i32, i32) {
    %c16_i32 = arith.constant 16 : i32
    %0 = arith.muli %arg1, %c16_i32 : i32
    %c16_i32_0 = arith.constant 16 : i32
    %1 = arith.addi %0, %c16_i32_0 : i32
    %c15_i32 = arith.constant 15 : i32
    %2 = arith.minsi %1, %c15_i32 : i32
    %c0_i32 = arith.constant 0 : i32
    %c0_i32_1 = arith.constant 0 : i32
    %c0_i32_2 = arith.constant 0 : i32
    return %arg0, %2, %c0_i32, %c0_i32_1 : i32, i32, i32, i32
  }
  func.func @transform_3(%arg0: i32, %arg1: i32, %arg2: i32) -> (i32, i32, i32, i32) {
    %c0_i32 = arith.constant 0 : i32
    %c0_i32_0 = arith.constant 0 : i32
    %c0_i32_1 = arith.constant 0 : i32
    %c0_i32_2 = arith.constant 0 : i32
    return %c0_i32, %c0_i32_0, %c0_i32_1, %arg2 : i32, i32, i32, i32
  }
  func.func @transform_4(%arg0: i32, %arg1: i32, %arg2: i32) -> (i32, i32) {
    %c0_i32 = arith.constant 0 : i32
    %c0_i32_0 = arith.constant 0 : i32
    return %c0_i32, %arg2 : i32, i32
  }
  func.func @transform_5(%arg0: i32, %arg1: i32, %arg2: i32) -> (i32, i32, i32, i32) {
    %c0_i32 = arith.constant 0 : i32
    %c0_i32_0 = arith.constant 0 : i32
    return %arg0, %arg1, %c0_i32, %arg2 : i32, i32, i32, i32
  }
  func.func @transform_6(%arg0: i32, %arg1: i32, %arg2: i32) -> (i32, i32, i32, i32) {
    %c0_i32 = arith.constant 0 : i32
    %c0_i32_0 = arith.constant 0 : i32
    return %arg0, %arg1, %c0_i32, %arg2 : i32, i32, i32, i32
  }
}

module attributes {stable_mosaic.version = 11 : i64} {
  func.func @_bn_relu_kernel(%arg0: i32, %arg1: i32, %arg2: memref<1x16x18x128xf32, #tpu.memory_space<vmem>>, %arg3: memref<1x128xf32, #tpu.memory_space<vmem>>, %arg4: memref<1x128xf32, #tpu.memory_space<vmem>>, %arg5: memref<1x16x16x128xf32, #tpu.memory_space<vmem>>) attributes {dimension_semantics = [#tpu.dimension_semantics<parallel>, #tpu.dimension_semantics<parallel>], iteration_bounds = array<i64: 2, 1>, scalar_prefetch = 0 : i64, scratch_operands = 0 : i64, tpu.core_type = #tpu.core_type<tc>, window_params = [{transform_indices = @transform_0, window_bounds = array<i64: 1, 16, 18, 128>}, {pipeline_mode = #tpu.pipeline_mode<synchronous>, transform_indices = @transform_1, window_bounds = array<i64: 1, 128>}, {pipeline_mode = #tpu.pipeline_mode<synchronous>, transform_indices = @transform_2, window_bounds = array<i64: 1, 128>}, {transform_indices = @transform_3, window_bounds = array<i64: 1, 16, 16, 128>}]} {
    %c0 = arith.constant 0 : index
    %c0_0 = arith.constant 0 : index
    %c0_1 = arith.constant 0 : index
    %c0_2 = arith.constant 0 : index
    %0 = vector.load %arg2[%c0, %c0_0, %c0_1, %c0_2] : memref<1x16x18x128xf32, #tpu.memory_space<vmem>>, vector<1x16x18x128xf32>
    %1 = vector.shape_cast %0 : vector<1x16x18x128xf32> to vector<16x18x128xf32>
    %2 = vector.extract_strided_slice %1 {offsets = [0, 1, 0], sizes = [16, 16, 128], strides = [1, 1, 1]} : vector<16x18x128xf32> to vector<16x16x128xf32>
    %c0_3 = arith.constant 0 : index
    %c0_4 = arith.constant 0 : index
    %3 = vector.load %arg3[%c0_3, %c0_4] : memref<1x128xf32, #tpu.memory_space<vmem>>, vector<1x128xf32>
    %4 = vector.shape_cast %3 : vector<1x128xf32> to vector<1x1x128xf32>
    %c0_5 = arith.constant 0 : index
    %c0_6 = arith.constant 0 : index
    %5 = vector.load %arg4[%c0_5, %c0_6] : memref<1x128xf32, #tpu.memory_space<vmem>>, vector<1x128xf32>
    %6 = vector.shape_cast %5 : vector<1x128xf32> to vector<1x1x128xf32>
    %7 = vector.broadcast %4 : vector<1x1x128xf32> to vector<16x16x128xf32>
    %8 = arith.mulf %2, %7 : vector<16x16x128xf32>
    %9 = vector.broadcast %6 : vector<1x1x128xf32> to vector<16x16x128xf32>
    %10 = arith.addf %8, %9 : vector<16x16x128xf32>
    %cst = arith.constant 0.000000e+00 : f32
    %11 = vector.broadcast %cst : f32 to vector<16x16x128xf32>
    %12 = arith.maximumf %10, %11 : vector<16x16x128xf32>
    %c0_7 = arith.constant 0 : index
    %c0_8 = arith.constant 0 : index
    %c0_9 = arith.constant 0 : index
    %c0_10 = arith.constant 0 : index
    %13 = vector.load %arg5[%c0_7, %c0_8, %c0_9, %c0_10] : memref<1x16x16x128xf32, #tpu.memory_space<vmem>>, vector<1x16x16x128xf32>
    %14 = vector.shape_cast %13 : vector<1x16x16x128xf32> to vector<16x16x128xf32>
    %15 = vector.shape_cast %12 : vector<16x16x128xf32> to vector<1x16x16x128xf32>
    tpu.vector_store %arg5[%c0_7, %c0_8, %c0_9, %c0_10], %15 {strides = array<i32>} : memref<1x16x16x128xf32, #tpu.memory_space<vmem>>, vector<1x16x16x128xf32>,
    return
  }
  func.func @transform_0(%arg0: i32, %arg1: i32) -> (i32, i32, i32, i32) {
    %c0_i32 = arith.constant 0 : i32
    %c0_i32_0 = arith.constant 0 : i32
    %c0_i32_1 = arith.constant 0 : i32
    return %arg0, %arg1, %c0_i32, %c0_i32_0 : i32, i32, i32, i32
  }
  func.func @transform_1(%arg0: i32, %arg1: i32) -> (i32, i32) {
    %c0_i32 = arith.constant 0 : i32
    %c0_i32_0 = arith.constant 0 : i32
    %c0_i32_1 = arith.constant 0 : i32
    return %c0_i32, %c0_i32_0 : i32, i32
  }
  func.func @transform_2(%arg0: i32, %arg1: i32) -> (i32, i32) {
    %c0_i32 = arith.constant 0 : i32
    %c0_i32_0 = arith.constant 0 : i32
    %c0_i32_1 = arith.constant 0 : i32
    return %c0_i32, %c0_i32_0 : i32, i32
  }
  func.func @transform_3(%arg0: i32, %arg1: i32) -> (i32, i32, i32, i32) {
    %c0_i32 = arith.constant 0 : i32
    %c0_i32_0 = arith.constant 0 : i32
    %c0_i32_1 = arith.constant 0 : i32
    return %arg0, %arg1, %c0_i32, %c0_i32_0 : i32, i32, i32, i32
  }
}

</mosaic_0001>

<bundles_post_ra>
// kernel: up_forward.5
= control target key start
LH: loop header
LB: loop body
LE: loop exit
PB: predicated region body
PF: predicated region fallthrough
CT: control target
= control target key end

     0   :  { %s647_s12 = smov 0   ;;  %s649_s13 = smov 0   ;;  %s886_s0 = inlined_call_operand.vmem [shape: f32[2,16,18,128], index: 0, kind: input, shape index: {}]   ;;  %s887_s1 = inlined_call_operand.vmem [shape: f32[1,128], index: 1, kind: input, shape index: {}]   ;;  %s888_s2 = inlined_call_operand.vmem [shape: f32[1,128], index: 2, kind: input, shape index: {}]   ;;  %s889_s3 = inlined_call_operand.vmem [shape: f32[2,16,16,128], index: 3, kind: output, shape index: {}]  }
   0x1   :  { %s651_s14 = smov 0  }
   0x2 LB: > { %s25_s15 = sadd.s32 1, %s621_s13  ;;  %p569_p0 = scmp.ge.s32.totalorder %s625_s14, 1  ;;  %s625_s14 = sphi %s651_s14, %s13_s14   ;;  %s621_s13 = sphi %s649_s13, %s891_s13   ;;  %s617_s12 = sphi %s647_s12, %s890_s12  }
   0x3   : > { %p27_p1 = scmp.ge.s32.totalorder %s25_s15, 2  ;;  %p159_p2 = scmp.lt.s32.totalorder %s625_s14, 3 }
   0x5   : > { %s893_s15 = smov (%p27_p1, %s25_s15), 0  ;;  %p160_p3 = pnand %p569_p0, %p159_p2 }
   0x6   : > { %p194_p4 = scmp.lt.s32.totalorder (!%p160_p3), %s617_s12, 1  ;;  %v668_v0 = vld [vmem:[%s887_s1] ss:$0 sm:$0xff] (!%p160_p3) }
   0x7   : > { %163 = sbr.rel (%p160_p3) target bundleno = 60 (0x3c), region = 32  ;;  %v678_v1 = vld [vmem:[%s888_s2] ss:$0 sm:$0xff] (!%p160_p3) }
   0xe   : > { %s895_s12 = smov (!%p194_p4, %s617_s12), 1 }
   0xf   : > { %s578_s16 = smul.u32 384, %s895_s12  ;;  %s577_s24 = sshll.u32 %s895_s12, 8 }
  0x10   : > { %s702_s27 = scalar_lea.vmem %s889_s3, %s577_s24 }
  0x11   : > { %s673_s21 = scalar_lea.vmem %s886_s0, %s578_s16 }
  0x12   : > { %v215_v2 = vld [vmem:[%s673_s21] sm:$0xff]  ;;  %v216_v3 = vld [vmem:[%s673_s21 + $0x8] sm:$0xff]  ;;  %v217_v4 = vld [vmem:[%s673_s21 + $0x10] sm:$0x3] }
  0x13   : > { %v271_v5 = vmul.f32 %v668_v0, %v215_v2  ;;  %v272_v6 = vmul.f32 %v668_v0, %v216_v3  ;;  %v273_v7 = vmul.f32 %v668_v0, %v217_v4  ;;  %v218_v8 = vld [vmem:[%s673_s21 + $0x18] sm:$0xff]  ;;  %v219_v9 = vld [vmem:[%s673_s21 + $0x20] sm:$0xff]  ;;  %v220_v10 = vld [vmem:[%s673_s21 + $0x28] sm:$0x3] }
  0x14   : > { %v274_v11 = vmul.f32 %v668_v0, %v218_v8  ;;  %v275_v12 = vmul.f32 %v668_v0, %v219_v9  ;;  %v276_v13 = vmul.f32 %v668_v0, %v220_v10  ;;  %v221_v14 = vld [vmem:[%s673_s21 + $0x30] sm:$0xff]  ;;  %v222_v15 = vld [vmem:[%s673_s21 + $0x38] sm:$0xff]  ;;  %v223_v20 = vld [vmem:[%s673_s21 + $0x40] sm:$0x3] }
  0x15   : > { %v325_v16 = vadd.f32 %v678_v1, %v271_v5  ;;  %v326_v17 = vadd.f32 %v678_v1, %v272_v6  ;;  %v327_v18 = vadd.f32 %v678_v1, %v273_v7  ;;  %v277_v19 = vmul.f32 %v668_v0, %v221_v14  ;;  %v224_v25 = vld [vmem:[%s673_s21 + $0x48] sm:$0xff]  ;;  %v225_v26 = vld [vmem:[%s673_s21 + $0x50] sm:$0xff]  ;;  %v226_v27 = vld [vmem:[%s673_s21 + $0x58] sm:$0x3] }
  0x16   : > { %v328_v21 = vadd.f32 %v678_v1, %v274_v11  ;;  %v329_v22 = vadd.f32 %v678_v1, %v275_v12  ;;  %v330_v23 = vadd.f32 %v678_v1, %v276_v13  ;;  %v278_v24 = vmul.f32 %v668_v0, %v222_v15  ;;  %v227_v32 = vld [vmem:[%s673_s21 + $0x60] sm:$0xff]  ;;  %v228_v33 = vld [vmem:[%s673_s21 + $0x68] sm:$0xff]  ;;  %v229_v38 = vld [vmem:[%s673_s21 + $0x70] sm:$0x3] }
  0x17   : > { %v373_v28 = vmax.f32 %v325_v16, 0.0  ;;  %v374_v29 = vmax.f32 %v326_v17, 0.0  ;;  %v375_v30 = vmax.f32 %v327_v18, 0.0  ;;  %v331_v31 = vadd.f32 %v678_v1, %v277_v19  ;;  %v230_v43 = vld [vmem:[%s673_s21 + $0x78] sm:$0xff]  ;;  %v231_v52 = vld [vmem:[%s673_s21 + $0x80] sm:$0xff]  ;;  %v233_v58 = vld [vmem:[%s673_s21 + $0x90] sm:$0xff] }
  0x18   : > { %v376_v34 = vmax.f32 %v328_v21, 0.0  ;;  %v377_v35 = vmax.f32 %v329_v22, 0.0  ;;  %v378_v36 = vmax.f32 %v330_v23, 0.0  ;;  %v332_v37 = vadd.f32 %v678_v1, %v278_v24  ;;  %v232_v57 = vld [vmem:[%s673_s21 + $0x88] sm:$0x3]  ;;  %v234_v59 = vld [vmem:[%s673_s21 + $0x98] sm:$0xff] }
  0x19   : > { %421 = vst [vmem:[%s702_s27 - $0x1] sm:$0xfe] %v373_v28  ;;  %422 = vst [vmem:[%s702_s27 + $0x7] sm:$0xff] %v374_v29  ;;  %v379_v39 = vmax.f32 %v331_v31, 0.0  ;;  %v279_v40 = vmul.f32 %v668_v0, %v223_v20  ;;  %v280_v41 = vmul.f32 %v668_v0, %v224_v25  ;;  %v281_v42 = vmul.f32 %v668_v0, %v225_v26  ;;  %v235_v2 = vld [vmem:[%s673_s21 + $0xa0] sm:$0x3] }
  0x1a   : > { %423 = vst [vmem:[%s702_s27 + $0xf] sm:$0x1] %v375_v30  ;;  %424 = vst [vmem:[%s702_s27 + $0xf] sm:$0xfe] %v376_v34  ;;  %v380_v44 = vmax.f32 %v332_v37, 0.0  ;;  %v282_v45 = vmul.f32 %v668_v0, %v226_v27  ;;  %v283_v46 = vmul.f32 %v668_v0, %v227_v32  ;;  %v284_v47 = vmul.f32 %v668_v0, %v228_v33  ;;  %v236_v3 = vld [vmem:[%s673_s21 + $0xa8] sm:$0xff] }
  0x1b   : > { %425 = vst [vmem:[%s702_s27 + $0x17] sm:$0xff] %v377_v35  ;;  %426 = vst [vmem:[%s702_s27 + $0x1f] sm:$0x1] %v378_v36  ;;  %v333_v48 = vadd.f32 %v678_v1, %v279_v40  ;;  %v334_v49 = vadd.f32 %v678_v1, %v280_v41  ;;  %v335_v50 = vadd.f32 %v678_v1, %v281_v42  ;;  %v237_v8 = vld [vmem:[%s673_s21 + $0xb0] sm:$0xff]  ;;  %v238_v13 = vld [vmem:[%s673_s21 + $0xb8] sm:$0x3] }
  0x1c   : > { %427 = vst [vmem:[%s702_s27 + $0x1f] sm:$0xfe] %v379_v39  ;;  %v285_v51 = vmul.f32 %v668_v0, %v229_v38  ;;  %428 = vst [vmem:[%s702_s27 + $0x27] sm:$0xff] %v380_v44  ;;  %v336_v53 = vadd.f32 %v678_v1, %v282_v45  ;;  %v337_v54 = vadd.f32 %v678_v1, %v283_v46  ;;  %v239_v22 = vld [vmem:[%s673_s21 + $0xc0] sm:$0xff]  ;;  %v240_v27 = vld [vmem:[%s673_s21 + $0xc8] sm:$0xff] }
  0x1d   : > { %v338_v55 = vadd.f32 %v678_v1, %v284_v47  ;;  %v286_v56 = vmul.f32 %v668_v0, %v230_v43  ;;  %v381_v60 = vmax.f32 %v333_v48, 0.0  ;;  %v382_v61 = vmax.f32 %v334_v49, 0.0  ;;  %v241_v28 = vld [vmem:[%s673_s21 + $0xd0] sm:$0x3]  ;;  %v242_v29 = vld [vmem:[%s673_s21 + $0xd8] sm:$0xff]  ;;  %v243_v34 = vld [vmem:[%s673_s21 + $0xe0] sm:$0xff] }
  0x1e   : > { %v383_v62 = vmax.f32 %v335_v50, 0.0  ;;  %v339_v63 = vadd.f32 %v678_v1, %v285_v51  ;;  %v384_v4 = vmax.f32 %v336_v53, 0.0  ;;  %v385_v5 = vmax.f32 %v337_v54, 0.0  ;;  %v244_v35 = vld [vmem:[%s673_s21 + $0xe8] sm:$0x3]  ;;  %v245_v40 = vld [vmem:[%s673_s21 + $0xf0] sm:$0xff] }
  0x1f   : > { %v386_v6 = vmax.f32 %v338_v55, 0.0  ;;  %v340_v7 = vadd.f32 %v678_v1, %v286_v56  ;;  %429 = vst [vmem:[%s702_s27 + $0x2f] sm:$0x1] %v381_v60  ;;  %430 = vst [vmem:[%s702_s27 + $0x2f] sm:$0xfe] %v382_v61  ;;  %v287_v10 = vmul.f32 %v668_v0, %v231_v52  ;;  %v288_v11 = vmul.f32 %v668_v0, %v232_v57  ;;  %v246_v45 = vld [vmem:[%s673_s21 + $0xf8] sm:$0xff] }
  0x20   : > { %431 = vst [vmem:[%s702_s27 + $0x37] sm:$0xff] %v383_v62  ;;  %v387_v9 = vmax.f32 %v339_v63, 0.0  ;;  %v289_v12 = vmul.f32 %v668_v0, %v233_v58  ;;  %432 = vst [vmem:[%s702_s27 + $0x3f] sm:$0x1] %v384_v4  ;;  %v290_v15 = vmul.f32 %v668_v0, %v234_v59  ;;  %v291_v16 = vmul.f32 %v668_v0, %v235_v2  ;;  %v247_v54 = vld [vmem:[%s673_s21 + $0x100] sm:$0x3] }
  0x21   : > { %433 = vst [vmem:[%s702_s27 + $0x3f] sm:$0xfe] %v385_v5  ;;  %434 = vst [vmem:[%s702_s27 + $0x47] sm:$0xff] %v386_v6  ;;  %v388_v14 = vmax.f32 %v340_v7, 0.0  ;;  %v292_v17 = vmul.f32 %v668_v0, %v236_v3  ;;  %v341_v18 = vadd.f32 %v678_v1, %v287_v10  ;;  %v342_v19 = vadd.f32 %v678_v1, %v288_v11  ;;  %v248_v59 = vld [vmem:[%s673_s21 + $0x108] sm:$0xff]  ;;  %v249_v60 = vld [vmem:[%s673_s21 + $0x110] sm:$0xff] }
  0x22   : > { %435 = vst [vmem:[%s702_s27 + $0x4f] sm:$0x1] %v387_v9  ;;  %v343_v20 = vadd.f32 %v678_v1, %v289_v12  ;;  %v293_v21 = vmul.f32 %v668_v0, %v237_v8  ;;  %v344_v23 = vadd.f32 %v678_v1, %v290_v15  ;;  %v345_v24 = vadd.f32 %v678_v1, %v291_v16  ;;  %v250_v61 = vld [vmem:[%s673_s21 + $0x118] sm:$0x3]  ;;  %v251_v4 = vld [vmem:[%s673_s21 + $0x120] sm:$0xff]  ;;  %v252_v5 = vld [vmem:[%s673_s21 + $0x128] sm:$0xff] }
  0x23   : > { %436 = vst [vmem:[%s702_s27 + $0x4f] sm:$0xfe] %v388_v14  ;;  %v346_v25 = vadd.f32 %v678_v1, %v292_v17  ;;  %v294_v26 = vmul.f32 %v668_v0, %v238_v13  ;;  %v389_v30 = vmax.f32 %v341_v18, 0.0  ;;  %v390_v31 = vmax.f32 %v342_v19, 0.0  ;;  %v253_v10 = vld [vmem:[%s673_s21 + $0x130] sm:$0x3] }
  0x24   : > { %v391_v32 = vmax.f32 %v343_v20, 0.0  ;;  %v347_v33 = vadd.f32 %v678_v1, %v293_v21  ;;  %v392_v36 = vmax.f32 %v344_v23, 0.0  ;;  %v393_v37 = vmax.f32 %v345_v24, 0.0  ;;  %v254_v15 = vld [vmem:[%s673_s21 + $0x138] sm:$0xff]  ;;  %v255_v24 = vld [vmem:[%s673_s21 + $0x140] sm:$0xff] }
  0x25   : > { %v394_v38 = vmax.f32 %v346_v25, 0.0  ;;  %v348_v39 = vadd.f32 %v678_v1, %v294_v26  ;;  %437 = vst [vmem:[%s702_s27 + $0x57] sm:$0xff] %v389_v30  ;;  %438 = vst [vmem:[%s702_s27 + $0x5f] sm:$0x1] %v390_v31  ;;  %v295_v42 = vmul.f32 %v668_v0, %v239_v22  ;;  %v296_v43 = vmul.f32 %v668_v0, %v240_v27  ;;  %v257_v30 = vld [vmem:[%s673_s21 + $0x150] sm:$0xff]  ;;  %v258_v31 = vld [vmem:[%s673_s21 + $0x158] sm:$0xff] }
  0x26   : > { %439 = vst [vmem:[%s702_s27 + $0x5f] sm:$0xfe] %v391_v32  ;;  %v395_v41 = vmax.f32 %v347_v33, 0.0  ;;  %v297_v44 = vmul.f32 %v668_v0, %v241_v28  ;;  %440 = vst [vmem:[%s702_s27 + $0x67] sm:$0xff] %v392_v36  ;;  %v298_v47 = vmul.f32 %v668_v0, %v242_v29  ;;  %v299_v48 = vmul.f32 %v668_v0, %v243_v34  ;;  %v256_v29 = vld [vmem:[%s673_s21 + $0x148] sm:$0x3] }
  0x27   : > { %441 = vst [vmem:[%s702_s27 + $0x6f] sm:$0x1] %v393_v37  ;;  %442 = vst [vmem:[%s702_s27 + $0x6f] sm:$0xfe] %v394_v38  ;;  %v396_v46 = vmax.f32 %v348_v39, 0.0  ;;  %v300_v49 = vmul.f32 %v668_v0, %v244_v35  ;;  %v349_v50 = vadd.f32 %v678_v1, %v295_v42  ;;  %v350_v51 = vadd.f32 %v678_v1, %v296_v43  ;;  %v260_v37 = vld [vmem:[%s673_s21 + $0x168] sm:$0xff] }
  0x28   : > { %443 = vst [vmem:[%s702_s27 + $0x77] sm:$0xff] %v395_v41  ;;  %v351_v52 = vadd.f32 %v678_v1, %v297_v44  ;;  %v301_v53 = vmul.f32 %v668_v0, %v245_v40  ;;  %v352_v55 = vadd.f32 %v678_v1, %v298_v47  ;;  %v353_v56 = vadd.f32 %v678_v1, %v299_v48  ;;  %v259_v36 = vld [vmem:[%s673_s21 + $0x160] sm:$0x3]  ;;  %v261_v42 = vld [vmem:[%s673_s21 + $0x170] sm:$0xff]  ;;  %v262_v47 = vld [vmem:[%s673_s21 + $0x178] sm:$0x3] }
  0x29   : > { %444 = vst [vmem:[%s702_s27 + $0x7f] sm:$0x1] %v396_v46  ;;  %v354_v57 = vadd.f32 %v678_v1, %v300_v49  ;;  %v302_v58 = vmul.f32 %v668_v0, %v246_v45  ;;  %v397_v62 = vmax.f32 %v349_v50, 0.0  ;;  %v398_v63 = vmax.f32 %v350_v51, 0.0 }
  0x2a   : > { %v399_v2 = vmax.f32 %v351_v52, 0.0  ;;  %v355_v3 = vadd.f32 %v678_v1, %v301_v53  ;;  %v400_v6 = vmax.f32 %v352_v55, 0.0  ;;  %v401_v7 = vmax.f32 %v353_v56, 0.0 }
  0x2b   : > { %v402_v8 = vmax.f32 %v354_v57, 0.0  ;;  %v356_v9 = vadd.f32 %v678_v1, %v302_v58  ;;  %445 = vst [vmem:[%s702_s27 + $0x7f] sm:$0xfe] %v397_v62  ;;  %446 = vst [vmem:[%s702_s27 + $0x87] sm:$0xff] %v398_v63  ;;  %v303_v12 = vmul.f32 %v668_v0, %v247_v54  ;;  %v304_v13 = vmul.f32 %v668_v0, %v248_v59 }
  0x2c   : > { %447 = vst [vmem:[%s702_s27 + $0x8f] sm:$0x1] %v399_v2  ;;  %v403_v11 = vmax.f32 %v355_v3, 0.0  ;;  %v305_v14 = vmul.f32 %v668_v0, %v249_v60  ;;  %448 = vst [vmem:[%s702_s27 + $0x8f] sm:$0xfe] %v400_v6  ;;  %v306_v17 = vmul.f32 %v668_v0, %v250_v61  ;;  %v307_v18 = vmul.f32 %v668_v0, %v251_v4 }
  0x2d   : > { %449 = vst [vmem:[%s702_s27 + $0x97] sm:$0xff] %v401_v7  ;;  %450 = vst [vmem:[%s702_s27 + $0x9f] sm:$0x1] %v402_v8  ;;  %v404_v16 = vmax.f32 %v356_v9, 0.0  ;;  %v308_v19 = vmul.f32 %v668_v0, %v252_v5  ;;  %v357_v20 = vadd.f32 %v678_v1, %v303_v12  ;;  %v358_v21 = vadd.f32 %v678_v1, %v304_v13 }
  0x2e   : > { %451 = vst [vmem:[%s702_s27 + $0x9f] sm:$0xfe] %v403_v11  ;;  %v359_v22 = vadd.f32 %v678_v1, %v305_v14  ;;  %v309_v23 = vmul.f32 %v668_v0, %v253_v10  ;;  %v360_v25 = vadd.f32 %v678_v1, %v306_v17  ;;  %v361_v26 = vadd.f32 %v678_v1, %v307_v18 }
  0x2f   : > { %452 = vst [vmem:[%s702_s27 + $0xa7] sm:$0xff] %v404_v16  ;;  %v362_v27 = vadd.f32 %v678_v1, %v308_v19  ;;  %v310_v28 = vmul.f32 %v668_v0, %v254_v15  ;;  %v405_v32 = vmax.f32 %v357_v20, 0.0  ;;  %v406_v33 = vmax.f32 %v358_v21, 0.0 }
  0x30   : > { %v407_v34 = vmax.f32 %v359_v22, 0.0  ;;  %v363_v35 = vadd.f32 %v678_v1, %v309_v23  ;;  %v408_v38 = vmax.f32 %v360_v25, 0.0  ;;  %v409_v39 = vmax.f32 %v361_v26, 0.0 }
  0x31   : > { %v410_v40 = vmax.f32 %v362_v27, 0.0  ;;  %v364_v41 = vadd.f32 %v678_v1, %v310_v28  ;;  %453 = vst [vmem:[%s702_s27 + $0xaf] sm:$0x1] %v405_v32  ;;  %454 = vst [vmem:[%s702_s27 + $0xaf] sm:$0xfe] %v406_v33  ;;  %v311_v44 = vmul.f32 %v668_v0, %v255_v24  ;;  %v312_v45 = vmul.f32 %v668_v0, %v256_v29 }
  0x32   : > { %455 = vst [vmem:[%s702_s27 + $0xb7] sm:$0xff] %v407_v34  ;;  %v411_v43 = vmax.f32 %v363_v35, 0.0  ;;  %v313_v46 = vmul.f32 %v668_v0, %v257_v30  ;;  %456 = vst [vmem:[%s702_s27 + $0xbf] sm:$0x1] %v408_v38  ;;  %v314_v49 = vmul.f32 %v668_v0, %v258_v31  ;;  %v315_v50 = vmul.f32 %v668_v0, %v259_v36 }
  0x33   : > { %457 = vst [vmem:[%s702_s27 + $0xbf] sm:$0xfe] %v409_v39  ;;  %458 = vst [vmem:[%s702_s27 + $0xc7] sm:$0xff] %v410_v40  ;;  %v412_v48 = vmax.f32 %v364_v41, 0.0  ;;  %v316_v51 = vmul.f32 %v668_v0, %v260_v37  ;;  %v365_v52 = vadd.f32 %v678_v1, %v311_v44  ;;  %v366_v53 = vadd.f32 %v678_v1, %v312_v45 }
  0x34   : > { %459 = vst [vmem:[%s702_s27 + $0xcf] sm:$0x1] %v411_v43  ;;  %v367_v54 = vadd.f32 %v678_v1, %v313_v46  ;;  %v317_v55 = vmul.f32 %v668_v0, %v261_v42  ;;  %v368_v56 = vadd.f32 %v678_v1, %v314_v49  ;;  %v369_v57 = vadd.f32 %v678_v1, %v315_v50 }
  0x35   : > { %460 = vst [vmem:[%s702_s27 + $0xcf] sm:$0xfe] %v412_v48  ;;  %v370_v58 = vadd.f32 %v678_v1, %v316_v51  ;;  %v318_v59 = vmul.f32 %v668_v0, %v262_v47  ;;  %v413_v60 = vmax.f32 %v365_v52, 0.0  ;;  %v414_v61 = vmax.f32 %v366_v53, 0.0 }
  0x36   : > { %v415_v62 = vmax.f32 %v367_v54, 0.0  ;;  %v371_v63 = vadd.f32 %v678_v1, %v317_v55  ;;  %v416_v2 = vmax.f32 %v368_v56, 0.0  ;;  %v417_v3 = vmax.f32 %v369_v57, 0.0 }
  0x37   : > { %v418_v4 = vmax.f32 %v370_v58, 0.0  ;;  %v372_v5 = vadd.f32 %v678_v1, %v318_v59  ;;  %461 = vst [vmem:[%s702_s27 + $0xd7] sm:$0xff] %v413_v60  ;;  %462 = vst [vmem:[%s702_s27 + $0xdf] sm:$0x1] %v414_v61 }
  0x38   : > { %463 = vst [vmem:[%s702_s27 + $0xdf] sm:$0xfe] %v415_v62  ;;  %v419_v6 = vmax.f32 %v371_v63, 0.0  ;;  %464 = vst [vmem:[%s702_s27 + $0xe7] sm:$0xff] %v416_v2 }
  0x39   : > { %465 = vst [vmem:[%s702_s27 + $0xef] sm:$0x1] %v417_v3  ;;  %466 = vst [vmem:[%s702_s27 + $0xef] sm:$0xfe] %v418_v4  ;;  %v420_v0 = vmax.f32 %v372_v5, 0.0 }
  0x3a   : > { %467 = vst [vmem:[%s702_s27 + $0xf7] sm:$0xff] %v419_v6 }
  0x3b   : > { %468 = vst [vmem:[%s702_s27 + $0xff] sm:$0x1] %v420_v0 }
  0x3c PF: > { %s13_s14 = sadd.s32 1, %s625_s14   ;;  %s890_s12 = smov %s621_s13 }
  0x3d   : > { %p10_p5 = scmp.ge.s32.totalorder %s13_s14, 4   ;;  %s891_s13 = smov %s893_s15 }
  0x3f   :  { %12 = sbr.rel (!%p10_p5) target bundleno = 2 (0x2), region = 62 }

// kernel: up_forward.4
= control target key start
LH: loop header
LB: loop body
LE: loop exit
PB: predicated region body
PF: predicated region fallthrough
CT: control target
= control target key end

     0   :  { %s5578_s26 = smov 0   ;;  %s5580_s2 = smov 0   ;;  %s6964_s0 = inlined_call_operand.vmem [shape: f32[2,16,18,128], index: 0, kind: input, shape index: {}, may-alias: {0,1,2}]   ;;  %s6965_s1 = inlined_call_operand.vmem [shape: f32[2,16,18,128], index: 1, kind: input, shape index: {}, may-alias: {0,1,2}]   ;;  %s6966_s2 = inlined_call_operand.vmem [shape: f32[2,16,18,128], index: 2, kind: input, shape index: {}, may-alias: {0,1,2}]   ;;  %s6967_s3 = inlined_call_operand.vmem [shape: bf16[3,3,128,128], index: 3, kind: input, shape index: {}]   ;;  %s6968_s4 = inlined_call_operand.vmem [shape: f32[1,128], index: 4, kind: input, shape index: {}]   ;;  %s6969_s5 = inlined_call_operand.vmem [shape: f32[1,128], index: 5, kind: input, shape index: {}]   ;;  %s6970_s6 = inlined_call_operand.vmem [shape: f32[1,128], index: 6, kind: input, shape index: {}]   ;;  %s6971_s7 = inlined_call_operand.vmem [shape: f32[2,16,18,128], index: 7, kind: output, shape index: {0}]   ;;  %s6972_s8 = inlined_call_operand.vmem [shape: f32[2,1,2,128], index: 8, kind: output, shape index: {1}]  }
   0x1   :  { %s5582_s27 = smov 0  }
   0x2 LB: > { %s38_s28 = sadd.s32 1, %s5523_s2  ;;  %p4123_p0 = scmp.ge.s32.totalorder %s5527_s27, 1  ;;  %s5527_s27 = sphi %s5582_s27, %s19_s27   ;;  %s5523_s2 = sphi %s5580_s2, %s7106_s2   ;;  %s5519_s26 = sphi %s5578_s26, %s7105_s26  }
   0x3   : > { %p40_p1 = scmp.ge.s32.totalorder %s38_s28, 2  ;;  %p381_p2 = scmp.lt.s32.totalorder %s5527_s27, 3 }
   0x5   : > { %s7108_s28 = smov (%p40_p1, %s38_s28), 0  ;;  %p382_p3 = pnand %p4123_p0, %p381_p2 }
   0x7   : > { %385 = sbr.rel (%p382_p3) target bundleno = 583 (0x247), region = 48 }
   0xe   : > { %v5423_v0 = vld [vmem:[%s6967_s3 + $0x40] sm:$0xff]   ;;  %v5529_v2 = vmov 0   ;;  %v5425_v4 = vld [vmem:[%s6967_s3 + $0x48] sm:$0xff]   ;;  %p489_p4 = scmp.lt.s32.totalorder %s5519_s26, 1  ;;  %v5427_v6 = vld [vmem:[%s6967_s3 + $0x50] sm:$0xff]   ;;  %v797_v10 = vlaneseq  ;;  %vm1751_vm3 = vcmask 1046528  }
   0xf   : > { %v5424_v1 = vld [vmem:[%s6967_s3 + $0x100] sm:$0xff]   ;;  %v5602_v3 = vrot.slane %v5529_v2, 1  ;;  %4690 = vmatprep.subr.bf16.mxu1 %v5423_v0  ;;  %v5426_v5 = vld [vmem:[%s6967_s3 + $0x108] sm:$0xff]   ;;  %v5428_v7 = vld [vmem:[%s6967_s3 + $0x110] sm:$0xff]   ;;  %vm1075_vm2 = vsmask.f32 7424 }
  0x10   : > { %4882 = vmatprep.subr.bf16.mxu0 %v5424_v1  ;;  %4691 = vmatpush3.bf16.msra.mxu1 %v5423_v0  ;;  %s7110_s26 = smov (!%p489_p4, %s5519_s26), 1  ;;  %v5429_v8 = vld [vmem:[%s6967_s3 + $0x58] sm:$0xff]   ;;  %v5431_v11 = vld [vmem:[%s6967_s3 + $0x60] sm:$0xff]   ;;  %v5639_v13 = vshrl.u32 %v797_v10, 7  ;;  %v5433_v14 = vld [vmem:[%s6967_s3 + $0x68] sm:$0xff]   ;;  %vm5531_vm4 = vmmov 1  }
  0x11   : > { %7029 = vst [vmem:[#allocation2_spill] sm:$0xff] %v5602_v3  ;;  %4883 = vmatpush3.bf16.msra.mxu0 %v5424_v1  ;;  %4692 = vmatprep.subr.bf16.mxu1 %v5425_v4  ;;  %v5430_v9 = vld [vmem:[%s6967_s3 + $0x118] sm:$0xff]   ;;  %s5394_s23 = smul.u32 384, %s7110_s26  ;;  %v5432_v12 = vld [vmem:[%s6967_s3 + $0x120] sm:$0xff]   ;;  %v5434_v18 = vld [vmem:[%s6967_s3 + $0x128] sm:$0xff]   ;;  %s4128_s14 = sshll.u32 %s7110_s26, 1 }
  0x12   : > { %4884 = vmatprep.subr.bf16.mxu0 %v5426_v5  ;;  %4706 = vmatprep.mubr.bf16.mxu1 %v5602_v3  ;;  %v5653_v19 = vld [vmem:[%s6969_s5] ss:$0 sm:$0xff]  ;;  %v5661_v21 = vadd.s32 16, %v5639_v13  ;;  %v5435_v28 = vld [vmem:[%s6967_s3 + $0x70] sm:$0xff]   ;;  %vm855_vm0 = vcmp.ge.s32.totalorder %v5639_v13, 1  ;;  %v5437_v46 = vld [vmem:[%s6967_s3 + $0x78] sm:$0xff]   ;;  %s546_s17 = scalar_lea.vmem %s6972_s8, %s4128_s14 }
  0x13   : > { %s5637_s10 = scalar_lea.vmem %s6965_s1, %s5394_s23  ;;  %v5658_v20 = vld [vmem:[%s6970_s6] ss:$0 sm:$0xff]  ;;  %v5436_v32 = vld [vmem:[%s6967_s3 + $0x130] sm:$0xff]   ;;  %v5438_v47 = vld [vmem:[%s6967_s3 + $0x138] sm:$0xff]   ;;  %s6814_s12 = scalar_lea.vmem %s6971_s7, %s5394_s23  ;;  %vm3805_vm6 = vcmask 1040384  }
  0x14   : > { %4693 = vmatpush3.bf16.msra.mxu1 %v5425_v4  ;;  %v551_v15 = vld [vmem:[%s5637_s10] sm:$0xff]  ;;  %v552_v16 = vld [vmem:[%s5637_s10 + $0x8] sm:$0xff]  ;;  %v553_v17 = vld [vmem:[%s5637_s10 + $0x10] sm:$0x3]  ;;  %vm914_vm1 = vcmp.le.s32.totalorder %v5661_v21, 16 }
  0x15   : > { %4885 = vmatpush3.bf16.msra.mxu0 %v5426_v5  ;;  %4694 = vmatprep.subr.bf16.mxu1 %v5427_v6  ;;  %v613_v22 = vmul.f32 %v5653_v19, %v551_v15  ;;  %v614_v23 = vmul.f32 %v5653_v19, %v552_v16  ;;  %v615_v24 = vmul.f32 %v5653_v19, %v553_v17  ;;  %v554_v25 = vld [vmem:[%s5637_s10 + $0x18] sm:$0xff]  ;;  %v555_v26 = vld [vmem:[%s5637_s10 + $0x20] sm:$0xff]  ;;  %v556_v27 = vld [vmem:[%s5637_s10 + $0x28] sm:$0x3] }
  0x16   : > { %4886 = vmatprep.subr.bf16.mxu0 %v5428_v7  ;;  %v616_v33 = vmul.f32 %v5653_v19, %v554_v25  ;;  %v617_v34 = vmul.f32 %v5653_v19, %v555_v26  ;;  %v618_v35 = vmul.f32 %v5653_v19, %v556_v27  ;;  %v557_v39 = vld [vmem:[%s5637_s10 + $0x30] sm:$0xff]  ;;  %v558_v40 = vld [vmem:[%s5637_s10 + $0x38] sm:$0xff]  ;;  %v559_v44 = vld [vmem:[%s5637_s10 + $0x40] sm:$0x3] }
  0x17   : > { %v673_v29 = vadd.f32 %v5658_v20, %v613_v22  ;;  %v674_v30 = vadd.f32 %v5658_v20, %v614_v23  ;;  %v675_v31 = vadd.f32 %v5658_v20, %v615_v24  ;;  %v619_v45 = vmul.f32 %v5653_v19, %v557_v39  ;;  %v5439_v63 = vld [vmem:[%s6967_s3] sm:$0xff]   ;;  %v5442_v25 = vld [vmem:[%s6967_s3 + $0x8] sm:$0xff]   ;;  %vm6433_vm5 = vmpackc.low %vm5531_vm4, %vm855_vm0 }
  0x18   : > { %4695 = vmatpush3.bf16.msra.mxu1 %v5427_v6  ;;  %v5686_v41 = vadd.f32 %v5658_v20, %v616_v33  ;;  %v5689_v42 = vadd.f32 %v5658_v20, %v617_v34  ;;  %v678_v43 = vadd.f32 %v5658_v20, %v618_v35  ;;  %v620_v51 = vmul.f32 %v5653_v19, %v558_v40  ;;  %v5440_v4 = vld [vmem:[%s6967_s3 + $0x140] sm:$0xff]  }
  0x19   : > { %4887 = vmatpush3.bf16.msra.mxu0 %v5428_v7  ;;  %4696 = vmatprep.subr.bf16.mxu1 %v5429_v8  ;;  %v727_v36 = vmax.f32 %v673_v29, 0.0  ;;  %v728_v37 = vmax.f32 %v674_v30, 0.0  ;;  %v729_v38 = vmax.f32 %v675_v31, 0.0  ;;  %v621_v57 = vmul.f32 %v5653_v19, %v559_v44  ;;  %v560_v7 = vld [vmem:[%s5637_s10 + $0x48] sm:$0xff]  ;;  %v563_v31 = vld [vmem:[%s5637_s10 + $0x60] sm:$0xff] }
  0x1a   : > { %4888 = vmatprep.subr.bf16.mxu0 %v5430_v9  ;;  %v6978_v54 = vmax.f32 %v5686_v41, 0.0  ;;  %v6977_v55 = vmax.f32 %v5689_v42, 0.0  ;;  %v732_v56 = vmax.f32 %v678_v43, 0.0  ;;  %v5715_v58 = vadd.f32 %v5658_v20, %v619_v45  ;;  %v565_v44 = vld [vmem:[%s5637_s10 + $0x70] sm:$0x3] }
  0x1b   : > { %v972_v48 = vsel %vm855_vm0, %v727_v36, 0.0  ;;  %v974_v49 = vsel %vm914_vm1, %v729_v38, 0.0  ;;  %v5704_v50 = vpack.c.bf16 %v728_v37, %v727_v36  ;;  %v5718_v59 = vadd.f32 %v5658_v20, %v620_v51  ;;  %v5441_v38 = vld [vmem:[%s6967_s3 + $0x148] sm:$0xff]  }
  0x1c   : > { %4697 = vmatpush3.bf16.msra.mxu1 %v5429_v8  ;;  %v5707_v52 = vpack.c.bf16 %v728_v37, %v972_v48  ;;  %v5709_v53 = vpack.c.bf16 %v974_v49, %v974_v49  ;;  %v975_v0 = vsel %vm855_vm0, %v6978_v54, 0.0  ;;  %v977_v1 = vsel %vm914_vm1, %v732_v56, 0.0  ;;  %v562_v8 = vld [vmem:[%s5637_s10 + $0x58] sm:$0x3] }
  0x1d   : > { %4889 = vmatpush3.bf16.msra.mxu0 %v5430_v9  ;;  %4698 = vmatprep.subr.bf16.mxu1 %v5431_v11  ;;  %v5734_v2 = vpack.c.bf16 %v6977_v55, %v975_v0  ;;  %v681_v5 = vadd.f32 %v5658_v20, %v621_v57  ;;  %v6976_v6 = vmax.f32 %v5715_v58, 0.0  ;;  %v622_v26 = vmul.f32 %v5653_v19, %v560_v7  ;;  %v566_v49 = vld [vmem:[%s5637_s10 + $0x78] sm:$0xff] }
  0x1e   : > { %4890 = vmatprep.subr.bf16.mxu0 %v5432_v12  ;;  %v1089_v60 = vshrl.u32 %v5707_v52, 16  ;;  %v1091_v61 = vshll.u32 %v5707_v52, 16  ;;  %v1096_v62 = vshll.u32 %v5709_v53, 16  ;;  %v624_v30 = vmul.f32 %v5653_v19, %v562_v8 }
  0x1f   : > { %v1101_v15 = vshrl.u32 %v5734_v2, 16  ;;  %v1103_v16 = vshll.u32 %v5734_v2, 16  ;;  %v735_v17 = vmax.f32 %v681_v5, 0.0  ;;  %v5777_v40 = vadd.f32 %v5658_v20, %v622_v26  ;;  %v567_v5 = vld [vmem:[%s5637_s10 + $0x80] sm:$0xff] }
  0x20   : > { %4699 = vmatpush3.bf16.msra.mxu1 %v5431_v11  ;;  %v1093_v9 = vrot.slane %v1091_v61, 1  ;;  %v1098_v10 = vrot.slane %v1096_v62, 1  ;;  %v5743_v11 = vpack.c.bf16 %v977_v1, %v977_v1  ;;  %v5445_v61 = vld [vmem:[%s6967_s3 + $0x10] sm:$0xff]   ;;  %v627_v0 = vmul.f32 %v5653_v19, %v565_v44  ;;  %v5444_v44 = vld [vmem:[%s6967_s3 + $0x158] sm:$0xff]  }
  0x21   : > { %4891 = vmatpush3.bf16.msra.mxu0 %v5432_v12  ;;  %4700 = vmatprep.subr.bf16.mxu1 %v5433_v14  ;;  %v6975_v12 = vmax.f32 %v5718_v59, 0.0  ;;  %v1105_v27 = vrot.slane %v1103_v16, 1  ;;  %v6974_v57 = vmax.f32 %v5777_v40, 0.0  ;;  %v7082_v21 = vmax.f32 %v5777_v40, 0.0 }
  0x22   : > { %4892 = vmatprep.subr.bf16.mxu0 %v5434_v18  ;;  %v1094_v22 = vor.u32 %v1093_v9, %v1089_v60  ;;  %v1108_v23 = vshll.u32 %v5743_v11, 16  ;;  %v5443_v9 = vld [vmem:[%s6967_s3 + $0x150] sm:$0xff]   ;;  %v687_v16 = vadd.f32 %v5658_v20, %v627_v0 }
  0x23   : > { %v1106_v37 = vor.u32 %v1105_v27, %v1101_v15  ;;  %v981_v8 = vsel %vm855_vm0, %v6974_v57, 0.0  ;;  %v629_v27 = vmul.f32 %v5653_v19, %v567_v5 }
  0x24   : > { %4701 = vmatpush3.bf16.msra.mxu1 %v5433_v14  ;;  %v561_v14 = vld [vmem:[%s5637_s10 + $0x50] sm:$0xff]  ;;  %v1099_v33 = vsel %vm1075_vm2, %v1094_v22, %v1098_v10  ;;  %v1110_v34 = vrot.slane %v1108_v23, 1 }
  0x25   : > { %4893 = vmatpush3.bf16.msra.mxu0 %v5434_v18  ;;  %4702 = vmatprep.subr.bf16.mxu1 %v5435_v28  ;;  %v978_v18 = vsel %vm855_vm0, %v6976_v6, 0.0  ;;  %v623_v29 = vmul.f32 %v5653_v19, %v561_v14  ;;  %v628_v14 = vmul.f32 %v5653_v19, %v566_v49 }
  0x26   : > { %4894 = vmatprep.subr.bf16.mxu0 %v5436_v32  ;;  %v5756_v24 = vpack.c.bf16 %v6975_v12, %v978_v18  ;;  %4898 = vmatprep.mubr.bf16.mxu0 %v1099_v33  ;;  %v5789_v51 = vsel %vm1075_vm2, %v1106_v37, %v1110_v34  ;;  %v568_v18 = vld [vmem:[%s5637_s10 + $0x88] sm:$0x3]  ;;  %v577_v12 = vld [vmem:[%s5637_s10 + $0xd0] sm:$0x3] }
  0x27   : > { %v5780_v43 = vadd.f32 %v5658_v20, %v623_v29  ;;  %7031 = vst [vmem:[#allocation4_spill] sm:$0xff] %v5789_v51  ;;  %v5849_v37 = vadd.f32 %v5658_v20, %v628_v14  ;;  %v5451_v14 = vld [vmem:[%s6967_s3 + $0x20] sm:$0xff]  }
  0x28   : > { %4703 = vmatpush3.bf16.msra.mxu1 %v5435_v28  ;;  %v980_v28 = vsel %vm914_vm1, %v735_v17, 0.0  ;;  %v1113_v36 = vshrl.u32 %v5756_v24, 16  ;;  %v1115_v39 = vshll.u32 %v5756_v24, 16 }
  0x29   : > { %4895 = vmatpush3.bf16.msra.mxu0 %v5436_v32  ;;  %4704 = vmatprep.subr.bf16.mxu1 %v5437_v46  ;;  %v564_v32 = vld [vmem:[%s5637_s10 + $0x68] sm:$0xff]  ;;  %v5769_v35 = vpack.c.bf16 %v980_v28, %v980_v28  ;;  %7030 = vst [vmem:[#allocation3_spill] sm:$0xff] %v5780_v43  ;;  %v6973_v60 = vmax.f32 %v5780_v43, 0.0  ;;  %v569_v28 = vld [vmem:[%s5637_s10 + $0x90] sm:$0xff]  ;;  %v595_v43 = vld [vmem:[%s5637_s10 + $0x160] sm:$0x3] }
  0x2a   : > { %4896 = vmatprep.subr.bf16.mxu0 %v5438_v47  ;;  %v626_v48 = vmul.f32 %v5653_v19, %v564_v32  ;;  %v1117_v56 = vrot.slane %v1115_v39, 1 }
  0x2b   : > { %v1120_v45 = vshll.u32 %v5769_v35, 16  ;;  %v5818_v15 = vpack.c.bf16 %v6973_v60, %v981_v8  ;;  %v575_v60 = vld [vmem:[%s5637_s10 + $0xc0] sm:$0xff] }
  0x2c   : > { %4705 = vmatpush3.bf16.msra.mxu1 %v5437_v46  ;;  %v684_v46 = vadd.f32 %v5658_v20, %v624_v30  ;;  %v1118_v7 = vor.u32 %v1117_v56, %v1113_v36  ;;  %v5811_v10 = vadd.f32 %v5658_v20, %v626_v48  ;;  %v630_v36 = vmul.f32 %v5653_v19, %v568_v18 }
  0x2d   : > { %4897 = vmatpush3.bf16.msra.mxu0 %v5438_v47  ;;  %4738 = vmatprep.subr.bf16.mxu1 %v5439_v63  ;;  %v625_v47 = vmul.f32 %v5653_v19, %v563_v31  ;;  %v1122_v62 = vrot.slane %v1120_v45, 1  ;;  %v1125_v29 = vshrl.u32 %v5818_v15, 16  ;;  %v1127_v30 = vshll.u32 %v5818_v15, 16 }
  0x2e   : > { %4930 = vmatprep.subr.bf16.mxu0 %v5440_v4  ;;  %v6985_v26 = vmax.f32 %v5811_v10, 0.0  ;;  %v741_v31 = vmax.f32 %v687_v16, 0.0  ;;  %v5857_v45 = vadd.f32 %v5658_v20, %v629_v27  ;;  %v631_v48 = vmul.f32 %v5653_v19, %v569_v28 }
  0x2f   : > { %4707 = vmatmul.mubr.bf16.vlgmr.msra.gmra.mrb[0].mxu1 %v1099_v33  ;;  %v5800_v1 = vadd.f32 %v5658_v20, %v625_v47  ;;  %v5824_v22 = vsel %vm1075_vm2, %v1118_v7, %v1122_v62  ;;  %v1129_v39 = vrot.slane %v1127_v30, 1  ;;  %v571_v47 = vld [vmem:[%s5637_s10 + $0xa0] sm:$0x3]  ;;  %v690_v5 = vadd.f32 %v5658_v20, %v630_v36 }
  0x30   : > { %4739 = vmatpush3.bf16.msra.mxu1 %v5439_v63  ;;  %4899 = vmatmul.mubr.bf16.vlgmr.msra.gmra.mrb[0].mxu0 %v5789_v51  ;;  %v738_v63 = vmax.f32 %v684_v46, 0.0  ;;  %7032 = vst [vmem:[#allocation5_spill] sm:$0xff] %v5824_v22  ;;  %v570_v46 = vld [vmem:[%s5637_s10 + $0x98] sm:$0xff]  ;;  %v6984_v7 = vmax.f32 %v5849_v37, 0.0  ;;  %v6983_v8 = vmax.f32 %v5857_v45, 0.0  ;;  %v633_v27 = vmul.f32 %v5653_v19, %v571_v47  ;;  %v5446_v36 = vld [vmem:[%s6967_s3 + $0x160] sm:$0xff]  }
  0x31   : > { %4740 = vmatprep.subr.bf16.mxu1 %v5442_v25  ;;  %4710 = vmatprep.mubr.bf16.mxu1 %v5789_v51  ;;  %v6987_v17 = vmax.f32 %v5800_v1, 0.0  ;;  %v1130_v0 = vor.u32 %v1129_v39, %v1125_v29  ;;  %v632_v18 = vmul.f32 %v5653_v19, %v570_v46  ;;  %v744_v29 = vmax.f32 %v690_v5, 0.0 }
  0x32   : > { %4931 = vmatpush3.bf16.msra.mxu0 %v5440_v4  ;;  %v983_v4 = vsel %vm914_vm1, %v738_v63, 0.0  ;;  %4902 = vmatprep.mubr.bf16.mxu0 %v5824_v22  ;;  %v987_v30 = vsel %vm855_vm0, %v6984_v7, 0.0  ;;  %v693_v46 = vadd.f32 %v5658_v20, %v633_v27  ;;  %v6023_v7 = vld [vmem:[%s6967_s3 + $0x180] sm:$0xff]  }
  0x33   : > { %4932 = vmatprep.subr.bf16.mxu0 %v5441_v38  ;;  %v5826_v23 = vpack.c.bf16 %v983_v4, %v983_v4  ;;  %v984_v32 = vsel %vm855_vm0, %v6987_v17, 0.0  ;;  %v5896_v39 = vadd.f32 %v5658_v20, %v632_v18 }
  0x34   : > { %4741 = vmatpush3.bf16.msra.mxu1 %v5442_v25  ;;  %v5448_v25 = vld [vmem:[%s6967_s3 + $0x18] sm:$0xff]   ;;  %v5845_v34 = vpack.c.bf16 %v6985_v26, %v984_v32 }
  0x35   : > { %4742 = vmatprep.subr.bf16.mxu1 %v5445_v61  ;;  %v1132_v33 = vshll.u32 %v5826_v23, 16 }
  0x36   : > { %4933 = vmatpush3.bf16.msra.mxu0 %v5441_v38  ;;  %v986_v38 = vsel %vm914_vm1, %v741_v31, 0.0  ;;  %v1137_v62 = vshrl.u32 %v5845_v34, 16  ;;  %v1139_v63 = vshll.u32 %v5845_v34, 16 }
  0x37   : > { %4711 = vmatmul.mubr.bf16.gmra.mrb[4].mxu1 %v5824_v22  ;;  %4934 = vmatprep.subr.bf16.mxu0 %v5443_v9  ;;  %v1134_v49 = vrot.slane %v1132_v33, 1  ;;  %v5862_v56 = vpack.c.bf16 %v986_v38, %v986_v38  ;;  %v5890_v33 = vpack.c.bf16 %v6983_v8, %v987_v30  ;;  %v573_v38 = vld [vmem:[%s5637_s10 + $0xb0] sm:$0xff]  ;;  %v588_v22 = vld [vmem:[%s5637_s10 + $0x128] sm:$0xff] }
  0x38   : > { %4743 = vmatpush3.bf16.msra.mxu1 %v5445_v61  ;;  %v572_v61 = vld [vmem:[%s5637_s10 + $0xa8] sm:$0xff]  ;;  %v1141_v4 = vrot.slane %v1139_v63, 1  ;;  %v635_v27 = vmul.f32 %v5653_v19, %v573_v38  ;;  %v650_v51 = vmul.f32 %v5653_v19, %v588_v22  ;;  %v591_v22 = vld [vmem:[%s5637_s10 + $0x140] sm:$0xff] }
  0x39   : > { %4744 = vmatprep.subr.bf16.mxu1 %v5448_v25  ;;  %v1144_v16 = vshll.u32 %v5862_v56, 16  ;;  %v5877_v28 = vsel %vm1075_vm2, %v1130_v0, %v1134_v49  ;;  %v634_v49 = vmul.f32 %v5653_v19, %v572_v61  ;;  %v1149_v5 = vshrl.u32 %v5890_v33, 16  ;;  %v5447_v61 = vld [vmem:[%s6967_s3 + $0x168] sm:$0xff]  }
  0x3a   : > { %4935 = vmatpush3.bf16.msra.mxu0 %v5443_v9  ;;  %7033 = vst [vmem:[#allocation6_spill] sm:$0xff] %v5877_v28  ;;  %v5884_v9 = vadd.f32 %v5658_v20, %v631_v48  ;;  %4714 = vmatprep.mubr.bf16.mxu1 %v5877_v28  ;;  %v1142_v31 = vor.u32 %v1141_v4, %v1137_v62  ;;  %v574_v48 = vld [vmem:[%s5637_s10 + $0xb8] sm:$0x3]  ;;  %v5453_v62 = vld [vmem:[%s6967_s3 + $0x28] sm:$0xff]   ;;  %v1151_v4 = vshll.u32 %v5890_v33, 16 }
  0x3b   : > { %4936 = vmatprep.subr.bf16.mxu0 %v5444_v44  ;;  %4903 = vmatmul.mubr.bf16.gmra.mrb[4].mxu0 %v5877_v28  ;;  %v1146_v32 = vrot.slane %v1144_v16, 1  ;;  %v747_v16 = vmax.f32 %v693_v46, 0.0  ;;  %v5938_v38 = vadd.f32 %v5658_v20, %v635_v27  ;;  %v5455_v27 = vld [vmem:[%s6967_s3 + $0x30] sm:$0xff]  }
  0x3c   : > { %4745 = vmatpush3.bf16.msra.mxu1 %v5448_v25  ;;  %v989_v25 = vsel %vm914_vm1, %v744_v29, 0.0  ;;  %v6982_v47 = vmax.f32 %v5884_v9, 0.0  ;;  %v1153_v29 = vrot.slane %v1151_v4, 1  ;;  %v5449_v4 = vld [vmem:[%s6967_s3 + $0x170] sm:$0xff]  }
  0x3d   : > { %4746 = vmatprep.subr.bf16.mxu1 %v5451_v14  ;;  %v5909_v63 = vsel %vm1075_vm2, %v1142_v31, %v1146_v32  ;;  %v5911_v0 = vpack.c.bf16 %v989_v25, %v989_v25  ;;  %v636_v31 = vmul.f32 %v5653_v19, %v574_v48  ;;  %v5929_v32 = vadd.f32 %v5658_v20, %v634_v49  ;;  %v576_v49 = vld [vmem:[%s5637_s10 + $0xc8] sm:$0xff] }
  0x3e   : > { %4937 = vmatpush3.bf16.msra.mxu0 %v5444_v44  ;;  %7034 = vst [vmem:[#allocation7_spill] sm:$0xff] %v5909_v63  ;;  %4906 = vmatprep.mubr.bf16.mxu0 %v5909_v63  ;;  %v6979_v44 = vmax.f32 %v5896_v39, 0.0  ;;  %v990_v18 = vsel %vm855_vm0, %v6982_v47, 0.0  ;;  %v992_v25 = vsel %vm914_vm1, %v747_v16, 0.0  ;;  %v1755_v48 = vrot.slane %v5707_v52, 1 }
  0x3f   : > { %4715 = vmatmul.mubr.bf16.gmra.mrb[8].mxu1 %v5909_v63  ;;  %v1156_v30 = vshll.u32 %v5911_v0, 16  ;;  %4938 = vmatprep.subr.bf16.mxu0 %v5446_v36  ;;  %v5946_v16 = vpack.c.bf16 %v992_v25, %v992_v25  ;;  %v6980_v55 = vmax.f32 %v5929_v32, 0.0  ;;  %v5457_v25 = vld [vmem:[%s6967_s3 + $0x38] sm:$0xff]  }
  0x40   : > { %4747 = vmatpush3.bf16.msra.mxu1 %v5451_v14  ;;  %v5935_v46 = vpack.c.bf16 %v6979_v44, %v990_v18  ;;  %v1154_v14 = vor.u32 %v1153_v29, %v1149_v5  ;;  %v696_v18 = vadd.f32 %v5658_v20, %v636_v31  ;;  %v6981_v5 = vmax.f32 %v5938_v38, 0.0 }
  0x41   : > { %4748 = vmatprep.subr.bf16.mxu1 %v5453_v62  ;;  %v1158_v57 = vrot.slane %v1156_v30, 1  ;;  %v1168_v29 = vshll.u32 %v5946_v16, 16  ;;  %v1756_v31 = vrot.slane %v5709_v53, 1  ;;  %v638_v53 = vmul.f32 %v5653_v19, %v576_v49 }
  0x42   : > { %4939 = vmatpush3.bf16.msra.mxu0 %v5446_v36  ;;  %v1161_v6 = vshrl.u32 %v5935_v46, 16  ;;  %v1163_v52 = vshll.u32 %v5935_v46, 16  ;;  %v750_v30 = vmax.f32 %v696_v18, 0.0 }
  0x43   : > { %4940 = vmatprep.subr.bf16.mxu0 %v5447_v61  ;;  %v5958_v36 = vsel %vm1075_vm2, %v1154_v14, %v1158_v57  ;;  %v993_v57 = vsel %vm855_vm0, %v6980_v55, 0.0  ;;  %v637_v14 = vmul.f32 %v5653_v19, %v575_v60  ;;  %v5983_v55 = vsel %vm1751_vm3, %v1755_v48, %v1756_v31  ;;  %v578_v60 = vld [vmem:[%s5637_s10 + $0xd8] sm:$0xff]  ;;  %v579_v31 = vld [vmem:[%s5637_s10 + $0xe0] sm:$0xff] }
  0x44   : > { %7035 = vst [vmem:[#allocation8_spill] sm:$0xff] %v5958_v36  ;;  %4749 = vmatpush3.bf16.msra.mxu1 %v5453_v62  ;;  %4907 = vmatmul.mubr.bf16.gmra.mrb[8].mxu0 %v5958_v36  ;;  %v1165_v54 = vrot.slane %v1163_v52, 1  ;;  %v1170_v62 = vrot.slane %v1168_v29, 1  ;;  %v995_v18 = vsel %vm914_vm1, %v750_v30, 0.0  ;;  %v5977_v44 = vpack.c.bf16 %v6981_v5, %v993_v57  ;;  %v5450_v52 = vld [vmem:[%s6967_s3 + $0x178] sm:$0xff]   ;;  %7036 = vst [vmem:[#allocation9_spill] sm:$0xff] %v5983_v55 }
  0x45   : > { %4718 = vmatprep.mubr.bf16.mxu1 %v5958_v36  ;;  %4750 = vmatprep.subr.bf16.mxu1 %v5455_v27  ;;  %v639_v29 = vmul.f32 %v5653_v19, %v577_v12  ;;  %v5990_v30 = vadd.f32 %v5658_v20, %v637_v14  ;;  %v580_v57 = vld [vmem:[%s5637_s10 + $0xe8] sm:$0x3]  ;;  %v5996_v8 = vadd.f32 %v5658_v20, %v638_v53  ;;  %v1758_v48 = vrot.slane %v5734_v2, 1 }
  0x46   : > { %4941 = vmatpush3.bf16.msra.mxu0 %v5447_v61  ;;  %v1166_v49 = vor.u32 %v1165_v54, %v1161_v6  ;;  %v5986_v61 = vpack.c.bf16 %v995_v18, %v995_v18  ;;  %v1173_v5 = vshrl.u32 %v5977_v44, 16  ;;  %v1175_v47 = vshll.u32 %v5977_v44, 16  ;;  %v6014_v18 = vld [vmem:[%s6967_s3 + $0x80] sm:$0xff]  }
  0x47   : > { %4942 = vmatprep.subr.bf16.mxu0 %v5449_v4  ;;  %v699_v12 = vadd.f32 %v5658_v20, %v639_v29  ;;  %v6986_v14 = vmax.f32 %v5990_v30, 0.0  ;;  %v6989_v2 = vmax.f32 %v5996_v8, 0.0 }
  0x48   : > { %4751 = vmatpush3.bf16.msra.mxu1 %v5455_v27  ;;  %v6001_v54 = vsel %vm1075_vm2, %v1166_v49, %v1170_v62  ;;  %v1180_v6 = vshll.u32 %v5986_v61, 16  ;;  %v1177_v53 = vrot.slane %v1175_v47, 1  ;;  %v1759_v27 = vrot.slane %v5743_v11, 1 }
  0x49   : > { %7037 = vst [vmem:[#allocation10_spill] sm:$0xff] %v6001_v54  ;;  %4752 = vmatprep.subr.bf16.mxu1 %v5457_v25  ;;  %4910 = vmatprep.mubr.bf16.mxu0 %v6001_v54  ;;  %v640_v62 = vmul.f32 %v5653_v19, %v578_v60  ;;  %v753_v29 = vmax.f32 %v699_v12, 0.0  ;;  %v996_v47 = vsel %vm855_vm0, %v6986_v14, 0.0  ;;  %v641_v11 = vmul.f32 %v5653_v19, %v579_v31  ;;  %v581_v60 = vld [vmem:[%s5637_s10 + $0xf0] sm:$0xff]  ;;  %v582_v14 = vld [vmem:[%s5637_s10 + $0xf8] sm:$0xff] }
  0x4a   : > { %4719 = vmatmul.mubr.bf16.gmra.mrb[12].mxu1 %v6001_v54  ;;  %v1182_v49 = vrot.slane %v1180_v6, 1  ;;  %4943 = vmatpush3.bf16.msra.mxu0 %v5449_v4  ;;  %v1178_v26 = vor.u32 %v1177_v53, %v1173_v5  ;;  %v6029_v4 = vpack.c.bf16 %v6989_v2, %v996_v47  ;;  %v6032_v6 = vsel %vm1751_vm3, %v1758_v48, %v1759_v27  ;;  %v583_v47 = vld [vmem:[%s5637_s10 + $0x100] sm:$0x3]  ;;  %v584_v2 = vld [vmem:[%s5637_s10 + $0x108] sm:$0xff] }
  0x4b   : > { %4944 = vmatprep.subr.bf16.mxu0 %v5450_v52  ;;  %7038 = vst [vmem:[#allocation11_spill] sm:$0xff] %v6032_v6  ;;  %v642_v12 = vmul.f32 %v5653_v19, %v580_v57  ;;  %v998_v17 = vsel %vm914_vm1, %v753_v29, 0.0  ;;  %v6039_v3 = vadd.f32 %v5658_v20, %v640_v62  ;;  %v6042_v31 = vadd.f32 %v5658_v20, %v641_v11 }
  0x4c   : > { %v1761_v5 = vrot.slane %v5756_v24, 1  ;;  %4753 = vmatpush3.bf16.msra.mxu1 %v5457_v25  ;;  %v6046_v53 = vsel %vm1075_vm2, %v1178_v26, %v1182_v49  ;;  %v6048_v48 = vpack.c.bf16 %v998_v17, %v998_v17  ;;  %v1185_v57 = vshrl.u32 %v6029_v4, 16 }
  0x4d   : > { %7039 = vst [vmem:[#allocation12_spill] sm:$0xff] %v6046_v53  ;;  %v1187_v27 = vshll.u32 %v6029_v4, 16  ;;  %4786 = vmatprep.subr.bf16.mxu1 %v6014_v18  ;;  %4911 = vmatmul.mubr.bf16.gmra.mrb[12].mxu0 %v6046_v53  ;;  %v702_v24 = vadd.f32 %v5658_v20, %v642_v12  ;;  %v6993_v25 = vmax.f32 %v6039_v3, 0.0  ;;  %v1762_v17 = vrot.slane %v5769_v35, 1 }
  0x4e   : > { %4722 = vmatprep.mubr.bf16.mxu1 %v6046_v53  ;;  %4945 = vmatpush3.bf16.msra.mxu0 %v5450_v52  ;;  %v1192_v49 = vshll.u32 %v6048_v48, 16  ;;  %v643_v29 = vmul.f32 %v5653_v19, %v581_v60  ;;  %v644_v11 = vmul.f32 %v5653_v19, %v582_v14  ;;  %v7041_v60 = vmax.f32 %v6042_v31, 0.0 }
  0x4f   : > { %4946 = vmatprep.mubr.bf16.mxu0 %v5983_v55  ;;  %v1189_v62 = vrot.slane %v1187_v27, 1  ;;  %4978 = vmatprep.subr.bf16.mxu0 %v6023_v7  ;;  %v756_v12 = vmax.f32 %v702_v24, 0.0  ;;  %v999_v35 = vsel %vm855_vm0, %v6993_v25, 0.0  ;;  %v6070_v52 = vsel %vm1751_vm3, %v1761_v5, %v1762_v17  ;;  %v585_v24 = vld [vmem:[%s5637_s10 + $0x110] sm:$0xff]  ;;  %v586_v17 = vld [vmem:[%s5637_s10 + $0x118] sm:$0x3] }
  0x50   : > { %7040 = vst [vmem:[#allocation13_spill] sm:$0xff] %v6070_v52  ;;  %v645_v27 = vmul.f32 %v5653_v19, %v583_v47  ;;  %v1194_v53 = vrot.slane %v1192_v49, 1  ;;  %v6076_v14 = vpack.c.bf16 %v7041_v60, %v999_v35  ;;  %v6079_v54 = vadd.f32 %v5658_v20, %v643_v29 }
  0x51   : > { %v1190_v26 = vor.u32 %v1189_v62, %v1185_v57  ;;  %v1001_v36 = vsel %vm914_vm1, %v756_v12, 0.0  ;;  %v6085_v25 = vadd.f32 %v5658_v20, %v644_v11  ;;  %v1764_v47 = vrot.slane %v5818_v15, 1  ;;  %v5454_v57 = vld [vmem:[%s6967_s3 + $0x188] sm:$0xff]   ;;  %v587_v15 = vld [vmem:[%s5637_s10 + $0x120] sm:$0xff] }
  0x52   : > { %v705_v5 = vadd.f32 %v5658_v20, %v645_v27  ;;  %v6096_v49 = vpack.c.bf16 %v1001_v36, %v1001_v36  ;;  %v1197_v29 = vshrl.u32 %v6076_v14, 16  ;;  %v1199_v11 = vshll.u32 %v6076_v14, 16 }
  0x53   : > { %v6094_v62 = vsel %vm1075_vm2, %v1190_v26, %v1194_v53  ;;  %v6998_v12 = vmax.f32 %v6079_v54, 0.0  ;;  %v1765_v27 = vrot.slane %v5826_v23, 1  ;;  %v646_v36 = vmul.f32 %v5653_v19, %v584_v2 }
  0x54   : > { %7042 = vst [vmem:[#allocation14_spill] sm:$0xff] %v6094_v62  ;;  %4723 = vmatmul.mubr.bf16.gmra.mrb[16].mxu1 %v6094_v62  ;;  %v759_v35 = vmax.f32 %v705_v5, 0.0  ;;  %v1201_v60 = vrot.slane %v1199_v11, 1  ;;  %v1204_v53 = vshll.u32 %v6096_v49, 16  ;;  %v647_v26 = vmul.f32 %v5653_v19, %v585_v24 }
  0x55   : > { %4947 = vmatmul.mubr.bf16.vlgmr.msra.gmra.mrb[0].mxu0 %v6032_v6  ;;  %v1002_v62 = vsel %vm855_vm0, %v6998_v12, 0.0  ;;  %v6115_v23 = vsel %vm1751_vm3, %v1764_v47, %v1765_v27  ;;  %v648_v11 = vmul.f32 %v5653_v19, %v586_v17  ;;  %v7044_v63 = vmax.f32 %v6085_v25, 0.0 }
  0x56   : > { %v1004_v5 = vsel %vm914_vm1, %v759_v35, 0.0  ;;  %7043 = vst [vmem:[#allocation15_spill] sm:$0xff] %v6115_v23  ;;  %4979 = vmatpush3.bf16.msra.mxu0 %v6023_v7  ;;  %v1202_v2 = vor.u32 %v1201_v60, %v1197_v29  ;;  %v1206_v24 = vrot.slane %v1204_v53, 1  ;;  %4950 = vmatprep.mubr.bf16.mxu0 %v6070_v52  ;;  %v589_v35 = vld [vmem:[%s5637_s10 + $0x130] sm:$0x3]  ;;  %v6130_v47 = vadd.f32 %v5658_v20, %v646_v36 }
  0x57   : > { %v6123_v28 = vpack.c.bf16 %v7044_v63, %v1002_v62  ;;  %v6125_v12 = vpack.c.bf16 %v1004_v5, %v1004_v5  ;;  %4980 = vmatprep.subr.bf16.mxu0 %v5454_v57  ;;  %v6133_v17 = vadd.f32 %v5658_v20, %v647_v26  ;;  %v708_v7 = vadd.f32 %v5658_v20, %v648_v11  ;;  %v5456_v63 = vld [vmem:[%s6967_s3 + $0x190] sm:$0xff]  }
  0x58   : > { %v1767_v29 = vrot.slane %v5845_v34, 1  ;;  %v6141_v62 = vsel %vm1075_vm2, %v1202_v2, %v1206_v24  ;;  %v7007_v36 = vmax.f32 %v6130_v47, 0.0  ;;  %v1768_v5 = vrot.slane %v5862_v56, 1 }
  0x59   : > { %7045 = vst [vmem:[#allocation16_spill] sm:$0xff] %v6141_v62  ;;  %v1209_v27 = vshrl.u32 %v6123_v28, 16  ;;  %v1211_v60 = vshll.u32 %v6123_v28, 16  ;;  %v1216_v53 = vshll.u32 %v6125_v12, 16  ;;  %4726 = vmatprep.mubr.bf16.mxu1 %v6141_v62  ;;  %v762_v26 = vmax.f32 %v708_v7, 0.0  ;;  %v5458_v62 = vld [vmem:[%s6967_s3 + $0x198] sm:$0xff]  }
  0x5a   : > { %4981 = vmatpush3.bf16.msra.mxu0 %v5454_v57  ;;  %v649_v24 = vmul.f32 %v5653_v19, %v587_v15  ;;  %v1005_v34 = vsel %vm855_vm0, %v7007_v36, 0.0  ;;  %v6162_v7 = vsel %vm1751_vm3, %v1767_v29, %v1768_v5  ;;  %v651_v57 = vmul.f32 %v5653_v19, %v589_v35  ;;  %v590_v15 = vld [vmem:[%s5637_s10 + $0x138] sm:$0xff] }
  0x5b   : > { %v1213_v11 = vrot.slane %v1211_v60, 1  ;;  %v1218_v2 = vrot.slane %v1216_v53, 1  ;;  %v1007_v56 = vsel %vm914_vm1, %v762_v26, 0.0  ;;  %7046 = vst [vmem:[#allocation17_spill] sm:$0xff] %v6162_v7  ;;  %4982 = vmatprep.subr.bf16.mxu0 %v5456_v63  ;;  %v7047_v53 = vmax.f32 %v6133_v17, 0.0 }
  0x5c   : > { %v6171_v6 = vpack.c.bf16 %v1007_v56, %v1007_v56  ;;  %v6174_v36 = vadd.f32 %v5658_v20, %v649_v24  ;;  %v592_v26 = vld [vmem:[%s5637_s10 + $0x148] sm:$0x3]  ;;  %v6179_v29 = vadd.f32 %v5658_v20, %v650_v51  ;;  %v711_v35 = vadd.f32 %v5658_v20, %v651_v57  ;;  %v593_v51 = vld [vmem:[%s5637_s10 + $0x150] sm:$0xff] }
  0x5d   : > { %v1214_v60 = vor.u32 %v1213_v11, %v1209_v27  ;;  %v6169_v52 = vpack.c.bf16 %v7047_v53, %v1005_v34  ;;  %4951 = vmatmul.mubr.bf16.gmra.mrb[4].mxu0 %v6115_v23  ;;  %v1770_v27 = vrot.slane %v5890_v33, 1  ;;  %v1771_v5 = vrot.slane %v5911_v0, 1  ;;  %v594_v23 = vld [vmem:[%s5637_s10 + $0x158] sm:$0xff] }
  0x5e   : > { %v1228_v56 = vshll.u32 %v6171_v6, 16  ;;  %4954 = vmatprep.mubr.bf16.mxu0 %v6162_v7  ;;  %4983 = vmatpush3.bf16.msra.mxu0 %v5456_v63  ;;  %v7016_v33 = vmax.f32 %v6174_v36, 0.0  ;;  %v765_v57 = vmax.f32 %v711_v35, 0.0  ;;  %v652_v7 = vmul.f32 %v5653_v19, %v590_v15 }
  0x5f   : > { %v6185_v34 = vsel %vm1075_vm2, %v1214_v60, %v1218_v2  ;;  %v1221_v11 = vshrl.u32 %v6169_v52, 16  ;;  %v1223_v24 = vshll.u32 %v6169_v52, 16  ;;  %v6196_v2 = vsel %vm1751_vm3, %v1770_v27, %v1771_v5  ;;  %4984 = vmatprep.subr.bf16.mxu0 %v5458_v62  ;;  %v5460_v60 = vld [vmem:[%s6967_s3 + $0x1a0] sm:$0xff]  }
  0x60   : > { %7048 = vst [vmem:[#allocation18_spill] sm:$0xff] %v6185_v34  ;;  %4727 = vmatmul.mubr.bf16.gmra.mrb[20].mxu1 %v6185_v34  ;;  %v1230_v63 = vrot.slane %v1228_v56, 1  ;;  %v653_v34 = vmul.f32 %v5653_v19, %v591_v22  ;;  %v1008_v35 = vsel %vm855_vm0, %v7016_v33, 0.0  ;;  %v1010_v27 = vsel %vm914_vm1, %v765_v57, 0.0  ;;  %v6225_v57 = vld [vmem:[%s6970_s6] ss:$0 sm:$0xff] }
  0x61   : > { %v1225_v53 = vrot.slane %v1223_v24, 1  ;;  %v654_v5 = vmul.f32 %v5653_v19, %v592_v26  ;;  %v1773_v0 = vrot.slane %v5935_v46, 1  ;;  %v7049_v24 = vmax.f32 %v6179_v29, 0.0 }
  0x62   : > { %v6216_v15 = vpack.c.bf16 %v1010_v27, %v1010_v27  ;;  %v6219_v22 = vadd.f32 %v5658_v20, %v652_v7  ;;  %4985 = vmatpush3.bf16.msra.mxu0 %v5458_v62  ;;  %v6228_v19 = vadd.f32 %v6225_v57, %v653_v34  ;;  %v1774_v26 = vrot.slane %v5946_v16, 1  ;;  %v5462_v62 = vld [vmem:[%s6967_s3 + $0x1a8] sm:$0xff]  }
  0x63   : > { %v1226_v55 = vor.u32 %v1225_v53, %v1221_v11  ;;  %v6214_v56 = vpack.c.bf16 %v7049_v24, %v1008_v35  ;;  %v714_v46 = vadd.f32 %v6225_v57, %v654_v5  ;;  %v6235_v11 = vld [vmem:[%s6969_s5] ss:$0 sm:$0xff]  ;;  %4986 = vmatprep.subr.bf16.mxu0 %v5460_v60 }
  0x64   : > { %v655_v20 = vmul.f32 %v6235_v11, %v593_v51  ;;  %v1240_v16 = vshll.u32 %v6216_v15, 16  ;;  %v7019_v51 = vmax.f32 %v6219_v22, 0.0  ;;  %v7022_v35 = vmax.f32 %v6228_v19, 0.0 }
  0x65   : > { %v6242_v7 = vsel %vm1075_vm2, %v1226_v55, %v1230_v63  ;;  %v1233_v34 = vshrl.u32 %v6214_v56, 16  ;;  %v1235_v53 = vshll.u32 %v6214_v56, 16  ;;  %4955 = vmatmul.mubr.bf16.gmra.mrb[8].mxu0 %v6196_v2  ;;  %v768_v27 = vmax.f32 %v714_v46, 0.0 }
  0x66   : > { %7050 = vst [vmem:[#allocation19_spill] sm:$0xff] %v6242_v7  ;;  %4730 = vmatprep.mubr.bf16.mxu1 %v6242_v7  ;;  %v6252_v5 = vsel %vm1751_vm3, %v1773_v0, %v1774_v26  ;;  %v1242_v63 = vrot.slane %v1240_v16, 1  ;;  %v656_v24 = vmul.f32 %v6235_v11, %v594_v23  ;;  %v657_v33 = vmul.f32 %v6235_v11, %v595_v43  ;;  %v5464_v23 = vld [vmem:[%s6967_s3 + $0x1b0] sm:$0xff]  }
  0x67   : > { %7051 = vst [vmem:[#allocation20_spill] sm:$0xff] %v6252_v5  ;;  %v1237_v55 = vrot.slane %v1235_v53, 1  ;;  %4958 = vmatprep.mubr.bf16.mxu0 %v6252_v5  ;;  %4987 = vmatpush3.bf16.msra.mxu0 %v5460_v60  ;;  %v1011_v7 = vsel %vm855_vm0, %v7019_v51, 0.0  ;;  %v1013_v46 = vsel %vm914_vm1, %v768_v27, 0.0  ;;  %v6264_v0 = vadd.f32 %v6225_v57, %v655_v20 }
  0x68   : > { %v1776_v26 = vrot.slane %v5977_v44, 1  ;;  %4988 = vmatprep.subr.bf16.mxu0 %v5462_v62  ;;  %v6272_v60 = vpack.c.bf16 %v7022_v35, %v1011_v7  ;;  %v6274_v53 = vpack.c.bf16 %v1013_v46, %v1013_v46  ;;  %v6277_v16 = vadd.f32 %v6225_v57, %v656_v24 }
  0x69   : > { %v1238_v43 = vor.u32 %v1237_v55, %v1233_v34  ;;  %v717_v20 = vadd.f32 %v6225_v57, %v657_v33  ;;  %v7023_v27 = vmax.f32 %v6264_v0, 0.0  ;;  %v1777_v44 = vrot.slane %v5986_v61, 1 }
  0x6a   : > { %v1779_v51 = vrot.slane %v6029_v4, 1  ;;  %v1245_v34 = vshrl.u32 %v6272_v60, 16  ;;  %v1247_v7 = vshll.u32 %v6272_v60, 16  ;;  %v1252_v55 = vshll.u32 %v6274_v53, 16 }
  0x6b   : > { %v6284_v5 = vsel %vm1075_vm2, %v1238_v43, %v1242_v63  ;;  %4989 = vmatpush3.bf16.msra.mxu0 %v5462_v62  ;;  %v7026_v33 = vmax.f32 %v6277_v16, 0.0  ;;  %v771_v24 = vmax.f32 %v717_v20, 0.0  ;;  %v1014_v61 = vsel %vm855_vm0, %v7023_v27, 0.0  ;;  %v5466_v63 = vld [vmem:[%s6967_s3 + $0x1b8] sm:$0xff]  }
  0x6c   : > { %7052 = vst [vmem:[#allocation21_spill] sm:$0xff] %v6284_v5  ;;  %4731 = vmatmul.mubr.bf16.gmra.mrb[24].mxu1 %v6284_v5  ;;  %v6296_v4 = vsel %vm1751_vm3, %v1776_v26, %v1777_v44  ;;  %4990 = vmatprep.subr.bf16.mxu0 %v5464_v23  ;;  %v1249_v46 = vrot.slane %v1247_v7, 1  ;;  %v1254_v62 = vrot.slane %v1252_v55, 1  ;;  %v1780_v43 = vrot.slane %v6048_v48, 1  ;;  %v6319_v48 = vld [vmem:[%s6967_s3 + $0x1c0] sm:$0xff]  }
  0x6d   : > { %v1016_v20 = vsel %vm914_vm1, %v771_v24, 0.0  ;;  %v6306_v35 = vpack.c.bf16 %v7026_v33, %v1014_v61  ;;  %4959 = vmatmul.mubr.bf16.gmra.mrb[12].mxu0 %v6296_v4  ;;  %v1782_v26 = vrot.slane %v6076_v14, 1  ;;  %v1783_v7 = vrot.slane %v6096_v49, 1  ;;  %v597_v33 = vld [vmem:[%s5637_s10 + $0x170] sm:$0xff] }
  0x6e   : > { %v1250_v44 = vor.u32 %v1249_v46, %v1245_v34  ;;  %v6310_v27 = vpack.c.bf16 %v1016_v20, %v1016_v20  ;;  %v6313_v5 = vsel %vm1751_vm3, %v1779_v51, %v1780_v43  ;;  %v1785_v51 = vrot.slane %v6123_v28, 1 }
  0x6f   : > { %7053 = vst [vmem:[#allocation22_spill] sm:$0xff] %v6313_v5  ;;  %4991 = vmatpush3.bf16.msra.mxu0 %v5464_v23  ;;  %v1257_v55 = vshrl.u32 %v6306_v35, 16  ;;  %v1259_v14 = vshll.u32 %v6306_v35, 16  ;;  %4962 = vmatprep.mubr.bf16.mxu0 %v6313_v5  ;;  %v1786_v34 = vrot.slane %v6125_v12, 1  ;;  %v6332_v46 = vsel %vm1751_vm3, %v1782_v26, %v1783_v7  ;;  %v596_v12 = vld [vmem:[%s5637_s10 + $0x168] sm:$0xff] }
  0x70   : > { %4992 = vmatprep.subr.bf16.mxu0 %v5466_v63  ;;  %v6327_v49 = vsel %vm1075_vm2, %v1250_v44, %v1254_v62  ;;  %v1264_v23 = vshll.u32 %v6310_v27, 16  ;;  %v7054_v43 = vmax.f32 %v5800_v1, 0.0  ;;  %v7055_v20 = vmax.f32 %v5811_v10, 0.0  ;;  %v598_v5 = vld [vmem:[%s5637_s10 + $0x178] sm:$0x3] }
  0x71   : > { %4734 = vmatprep.mubr.bf16.mxu1 %v6327_v49  ;;  %v1261_v24 = vrot.slane %v1259_v14, 1  ;;  %v6343_v44 = vsel %vm1751_vm3, %v1785_v51, %v1786_v34  ;;  %v1788_v14 = vrot.slane %v6169_v52, 1  ;;  %v7056_v26 = vmax.f32 %v5849_v37, 0.0 }
  0x72   : > { %v1266_v61 = vrot.slane %v1264_v23, 1  ;;  %v6338_v28 = vpack.c.bf16 %v7055_v20, %v7054_v43  ;;  %v7057_v1 = vmax.f32 %v5857_v45, 0.0  ;;  %v7059_v51 = vmax.f32 %v5896_v39, 0.0 }
  0x73   : > { %4993 = vmatpush3.bf16.msra.mxu0 %v5466_v63  ;;  %v1262_v62 = vor.u32 %v1261_v24, %v1257_v55  ;;  %v1789_v63 = vrot.slane %v6171_v6, 1  ;;  %v7058_v55 = vmax.f32 %v5884_v9, 0.0  ;;  %v658_v52 = vmul.f32 %v6235_v11, %v596_v12 }
  0x74   : > { %5026 = vmatprep.subr.bf16.mxu0 %v6319_v48  ;;  %v6352_v7 = vpack.c.bf16 %v7057_v1, %v7056_v26  ;;  %v1791_v37 = vrot.slane %v6214_v56, 1  ;;  %v1792_v45 = vrot.slane %v6216_v15, 1  ;;  %v659_v23 = vmul.f32 %v6235_v11, %v597_v33 }
  0x75   : > { %v6355_v10 = vsel %vm1075_vm2, %v1262_v62, %v1266_v61  ;;  %4963 = vmatmul.mubr.bf16.gmra.mrb[16].mxu0 %v6332_v46  ;;  %v6363_v34 = vpack.c.bf16 %v7059_v51, %v7058_v55  ;;  %v660_v6 = vmul.f32 %v6235_v11, %v598_v5  ;;  %v5530_v24 = vmov 0.0|0.0  }
  0x76   : > { %4735 = vmatmul.mubr.bf16.gmra.mrb[28].mxu1 %v6355_v10  ;;  %4966 = vmatprep.mubr.bf16.mxu0 %v6343_v44  ;;  %v6374_v9 = vadd.f32 %v6225_v57, %v658_v52  ;;  %v7060_v39 = vmax.f32 %v5929_v32, 0.0  ;;  %v7061_v61 = vmax.f32 %v5938_v38, 0.0  ;;  %v7062_v56 = vmax.f32 %v5990_v30, 0.0 }
  0x77   : > { %4754 = vmatprep.mubr.bf16.mxu1 %v5530_v24  ;;  %v7063_v15 = vmax.f32 %v5996_v8, 0.0  ;;  %v7064_v11 = vmax.f32 %v6039_v3, 0.0  ;;  %v7065_v5 = vmax.f32 %v6042_v31, 0.0  ;;  %v720_v12 = vadd.f32 %v6225_v57, %v660_v6 }
  0x78   : > { %v6380_v43 = vpack.c.bf16 %v7061_v61, %v7060_v39  ;;  %v7066_v32 = vmax.f32 %v6079_v54, 0.0  ;;  %v7067_v38 = vmax.f32 %v6085_v25, 0.0  ;;  %v7068_v30 = vmax.f32 %v6130_v47, 0.0 }
  0x79   : > { %v6386_v20 = vpack.c.bf16 %v7063_v15, %v7062_v56  ;;  %v6392_v33 = vpack.c.bf16 %v7065_v5, %v7064_v11  ;;  %v7069_v8 = vmax.f32 %v6133_v17, 0.0  ;;  %v7070_v3 = vmax.f32 %v6174_v36, 0.0  ;;  %v7083_v56 = vld [vmem:[#allocation3_spill] sm:$0xff] }
  0x7a   : > { %v6399_v62 = vpack.c.bf16 %v7067_v38, %v7066_v32  ;;  %v7071_v31 = vmax.f32 %v6179_v29, 0.0  ;;  %v7072_v55 = vmax.f32 %v6219_v22, 0.0  ;;  %v7073_v54 = vmax.f32 %v6228_v19, 0.0  ;;  %v5469_v38 = vld [vmem:[%s6967_s3 + $0xa8] sm:$0xff]  }
  0x7b   : > { %v6405_v26 = vpack.c.bf16 %v7069_v8, %v7068_v30  ;;  %v7074_v25 = vmax.f32 %v6264_v0, 0.0  ;;  %v7075_v47 = vmax.f32 %v6277_v16, 0.0  ;;  %v6426_v17 = vsel %vm1751_vm3, %v1788_v14, %v1789_v63  ;;  %v5461_v63 = vld [vmem:[%s6967_s3 + $0x88] sm:$0xff]  }
  0x7c   : > { %v6411_v1 = vpack.c.bf16 %v7071_v31, %v7070_v3  ;;  %v6417_v51 = vpack.c.bf16 %v7073_v54, %v7072_v55  ;;  %v6429_v36 = vadd.f32 %v6225_v57, %v659_v23  ;;  %v7078_v22 = vmax.f32 %v5686_v41, 0.0  ;;  %v5471_v31 = vld [vmem:[%s6967_s3 + $0xb0] sm:$0xff]  }
  0x7d   : > { %v6423_v52 = vpack.c.bf16 %v7075_v47, %v7074_v25  ;;  %v7079_v19 = vmax.f32 %v5689_v42, 0.0  ;;  %v6444_v16 = vsel %vm1751_vm3, %v1791_v37, %v1792_v45  ;;  %v772_v14 = vmax.f32 %v6374_v9, 0.0  ;;  %4967 = vmatmul.mubr.bf16.gmra.mrb[20].mxu0 %v6426_v17  ;;  %v5470_v47 = vld [vmem:[%s6967_s3 + $0x1c8] sm:$0xff]  }
  0x7e   : > { %v774_v57 = vmax.f32 %v720_v12, 0.0  ;;  %4755 = vmatmul.mubr.msk.bf16.vlgmr.msra.gmra.mrb[0].mxu1 %vm6433_vm5, %v5704_v50  ;;  %4970 = vmatprep.mubr.bf16.mxu0 %v6444_v16  ;;  %v1794_v41 = vrot.slane %v6272_v60, 1  ;;  %v1795_v42 = vrot.slane %v6274_v53, 1  ;;  %v773_v37 = vmax.f32 %v6429_v36, 0.0  ;;  %v5467_v12 = vld [vmem:[%s6967_s3 + $0xa0] sm:$0xff]   ;;  %v7088_v9 = vld [vmem:[#allocation15_spill] sm:$0xff] }
  0x7f   : > { %v6441_v0 = vpack.c.bf16 %v7079_v19, %v7078_v22  ;;  %4787 = vmatpush3.bf16.msra.mxu1 %v6014_v18  ;;  %v1797_v45 = vrot.slane %v6306_v35, 1  ;;  %v1798_v23 = vrot.slane %v6310_v27, 1  ;;  %v1017_v6 = vsel %vm855_vm0, %v772_v14, 0.0  ;;  %v5463_v18 = vld [vmem:[%s6967_s3 + $0x90] sm:$0xff]   ;;  %v5473_v19 = vld [vmem:[%s6967_s3 + $0xb8] sm:$0xff]   ;;  %v5483_v36 = vld [vmem:[%s6967_s3 + $0xe0] sm:$0xff]  }
  0x80   : > { %v1019_v60 = vsel %vm914_vm1, %v774_v57, 0.0  ;;  %4788 = vmatprep.subr.bf16.mxu1 %v5461_v63  ;;  %v7080_v53 = vmax.f32 %v5715_v58, 0.0  ;;  %v7081_v39 = vmax.f32 %v5718_v59, 0.0  ;;  %v6480_v27 = vsel %vm1751_vm3, %v1794_v41, %v1795_v42  ;;  %v5465_v59 = vld [vmem:[%s6967_s3 + $0x98] sm:$0xff]   ;;  %v5472_v57 = vld [vmem:[%s6967_s3 + $0x1d0] sm:$0xff]   ;;  %v5476_v41 = vld [vmem:[%s6967_s3 + $0x1e0] sm:$0xff]  }
  0x81   : > { %4758 = vmatprep.mubr.msk.bf16.mxu1 %vm6433_vm5, %v6441_v0  ;;  %v1055_v13 = vpack.c.bf16 %v773_v37, %v1017_v6  ;;  %v1056_v61 = vpack.c.bf16 %v1019_v60, %v1019_v60  ;;  %v7084_v15 = vmax.f32 %v7083_v56, 0.0  ;;  %v6491_v58 = vsel %vm1751_vm3, %v1797_v45, %v1798_v23  ;;  %v5478_v42 = vld [vmem:[%s6967_s3 + $0x1e8] sm:$0xff]   ;;  %v5480_v45 = vld [vmem:[%s6967_s3 + $0x1f0] sm:$0xff]   ;;  %v5482_v23 = vld [vmem:[%s6967_s3 + $0x1f8] sm:$0xff]  }
  0x82   : > { %v6477_v35 = vpack.c.bf16 %v7081_v39, %v7080_v53  ;;  %v5484_v6 = vld [vmem:[%s6967_s3 + $0x200] sm:$0xff]   ;;  %v6609_v60 = vrot.slane %v5530_v24, 1  ;;  %v7085_v53 = vld [vmem:[#allocation9_spill] sm:$0xff]  ;;  %v7086_v39 = vld [vmem:[#allocation11_spill] sm:$0xff] }
  0x83   : > { %4789 = vmatpush3.bf16.msra.mxu1 %v5461_v63  ;;  %v6488_v11 = vpack.c.bf16 %v7084_v15, %v7082_v21  ;;  %v2605_v40 = vrot.slane %v1055_v13, 1  ;;  %v2606_v5 = vrot.slane %v1056_v61, 1  ;;  %v2335_v30 = vshll.u32 %v1055_v13, 16  ;;  %v5475_v63 = vld [vmem:[%s6967_s3 + $0xc0] sm:$0xff]   ;;  %v5481_v21 = vld [vmem:[%s6967_s3 + $0xd8] sm:$0xff]   ;;  %v7090_v15 = vld [vmem:[#allocation4_spill] sm:$0xff] }
  0x84   : > { %4790 = vmatprep.subr.bf16.mxu1 %v5463_v18  ;;  %v2333_v8 = vshrl.u32 %v1055_v13, 16  ;;  %v2340_v3 = vshll.u32 %v1056_v61, 16  ;;  %v5479_v13 = vld [vmem:[%s6967_s3 + $0xd0] sm:$0xff]   ;;  %v6639_v61 = vpack.c.bf16 %v773_v37, %v772_v14  ;;  %v7087_v56 = vld [vmem:[#allocation13_spill] sm:$0xff]  ;;  %v5485_v14 = vld [vmem:[%s6967_s3 + $0xe8] sm:$0xff]  }
  0x85   : > { %4971 = vmatmul.mubr.bf16.gmra.mrb[24].mxu0 %v6480_v27  ;;  %v6508_v32 = vsel %vm1751_vm3, %v2605_v40, %v2606_v5  ;;  %v2337_v55 = vrot.slane %v2335_v30, 1  ;;  %v7089_v37 = vld [vmem:[#allocation17_spill] sm:$0xff]  ;;  %v5486_v40 = vld [vmem:[%s6967_s3 + $0x208] sm:$0xff]   ;;  %v5488_v30 = vld [vmem:[%s6967_s3 + $0x210] sm:$0xff]  }
  0x86   : > { %4759 = vmatmul.mubr.msk.bf16.gmra.mrb[4].mxu1 %vm6433_vm5, %v6477_v35  ;;  %4974 = vmatprep.mubr.bf16.mxu0 %v6491_v58  ;;  %v2342_v54 = vrot.slane %v2340_v3, 1  ;;  %v7091_v5 = vld [vmem:[#allocation5_spill] sm:$0xff]  ;;  %v7094_v3 = vld [vmem:[#allocation7_spill] sm:$0xff] }
  0x87   : > { %4762 = vmatprep.mubr.msk.bf16.mxu1 %vm6433_vm5, %v6488_v11  ;;  %4791 = vmatpush3.bf16.msra.mxu1 %v5463_v18  ;;  %v2338_v25 = vor.u32 %v2337_v55, %v2333_v8  ;;  %v5477_v18 = vld [vmem:[%s6967_s3 + $0xc8] sm:$0xff]   ;;  %v5490_v8 = vld [vmem:[%s6967_s3 + $0x218] sm:$0xff]   ;;  %v7095_v55 = vld [vmem:[#allocation22_spill] sm:$0xff] }
  0x88   : > { %4792 = vmatprep.subr.bf16.mxu1 %v5465_v59 }
  0x89   : > { %v6530_v22 = vsel %vm1075_vm2, %v2338_v25, %v2342_v54  ;;  %v7096_v54 = vld [vmem:[#allocation8_spill] sm:$0xff]  ;;  %v5491_v25 = vld [vmem:[%s6967_s3 + $0x220] sm:$0xff]  }
  0x8b   : > { %4793 = vmatpush3.bf16.msra.mxu1 %v5465_v59  ;;  %v5487_v59 = vld [vmem:[%s6967_s3 + $0xf0] sm:$0xff]  }
  0x8c   : > { %4794 = vmatprep.subr.bf16.mxu1 %v5467_v12 }
  0x8d   : > { %4975 = vmatmul.mubr.bf16.gmra.mrb[28].mxu0 %v6508_v32 }
  0x8e   : > { %4763 = vmatmul.mubr.msk.bf16.gmra.mrb[8].mxu1 %vm6433_vm5, %v6338_v28  ;;  %4994 = vmatprep.mubr.msk.bf16.mxu0 %vm6433_vm5, %v6441_v0 }
  0x8f   : > { %4766 = vmatprep.mubr.msk.bf16.mxu1 %vm6433_vm5, %v6352_v7  ;;  %4795 = vmatpush3.bf16.msra.mxu1 %v5467_v12  ;;  %v7092_v12 = vld [vmem:[#allocation20_spill] sm:$0xff] }
  0x90   : > { %4796 = vmatprep.subr.bf16.mxu1 %v5469_v38 }
  0x93   : > { %4797 = vmatpush3.bf16.msra.mxu1 %v5469_v38  ;;  %v7093_v38 = vld [vmem:[#allocation6_spill] sm:$0xff] }
  0x94   : > { %4798 = vmatprep.subr.bf16.mxu1 %v5471_v31 }
  0x95   : > { %4995 = vmatmul.mubr.msk.bf16.vlgmr.msra.gmra.mrb[0].mxu0 %vm6433_vm5, %v6477_v35 }
  0x96   : > { %4767 = vmatmul.mubr.msk.bf16.gmra.mrb[12].mxu1 %vm6433_vm5, %v6363_v34  ;;  %5027 = vmatpush3.bf16.msra.mxu0 %v6319_v48  ;;  %v5474_v48 = vld [vmem:[%s6967_s3 + $0x1d8] sm:$0xff]  }
  0x97   : > { %4770 = vmatprep.mubr.msk.bf16.mxu1 %vm6433_vm5, %v6380_v43  ;;  %4998 = vmatprep.mubr.msk.bf16.mxu0 %vm6433_vm5, %v6488_v11 }
  0x98   : > { %5028 = vmatprep.subr.bf16.mxu0 %v5470_v47  ;;  %4799 = vmatpush3.bf16.msra.mxu1 %v5471_v31  ;;  %v5497_v31 = vld [vmem:[%s6967_s3 + $0x100] sm:$0xff]  }
  0x99   : > { %4800 = vmatprep.subr.bf16.mxu1 %v5473_v19 }
  0x9a   : > { %5029 = vmatpush3.bf16.msra.mxu0 %v5470_v47  ;;  %v5492_v47 = vld [vmem:[%s6967_s3 + $0x228] sm:$0xff]  }
  0x9b   : > { %5030 = vmatprep.subr.bf16.mxu0 %v5472_v57 }
  0x9c   : > { %4801 = vmatpush3.bf16.msra.mxu1 %v5473_v19  ;;  %v7097_v19 = vld [vmem:[#allocation10_spill] sm:$0xff] }
  0x9d   : > { %4999 = vmatmul.mubr.msk.bf16.gmra.mrb[4].mxu0 %vm6433_vm5, %v6338_v28  ;;  %4834 = vmatprep.subr.bf16.mxu1 %v5475_v63 }
  0x9e   : > { %4771 = vmatmul.mubr.msk.bf16.gmra.mrb[16].mxu1 %vm6433_vm5, %v6386_v20  ;;  %5002 = vmatprep.mubr.msk.bf16.mxu0 %vm6433_vm5, %v6352_v7 }
  0x9f   : > { %4774 = vmatprep.mubr.msk.bf16.mxu1 %vm6433_vm5, %v6392_v33  ;;  %5031 = vmatpush3.bf16.msra.mxu0 %v5472_v57  ;;  %v7098_v57 = vld [vmem:[#allocation12_spill] sm:$0xff] }
  0xa0   : > { %5032 = vmatprep.subr.bf16.mxu0 %v5474_v48 }
  0xa3   : > { %5033 = vmatpush3.bf16.msra.mxu0 %v5474_v48  ;;  %v5494_v48 = vld [vmem:[%s6967_s3 + $0x238] sm:$0xff]  }
  0xa4   : > { %5034 = vmatprep.subr.bf16.mxu0 %v5476_v41 }
  0xa5   : > { %5003 = vmatmul.mubr.msk.bf16.gmra.mrb[8].mxu0 %vm6433_vm5, %v6363_v34 }
  0xa6   : > { %4775 = vmatmul.mubr.msk.bf16.gmra.mrb[20].mxu1 %vm6433_vm5, %v6399_v62  ;;  %5006 = vmatprep.mubr.msk.bf16.mxu0 %vm6433_vm5, %v6380_v43 }
  0xa7   : > { %4778 = vmatprep.mubr.msk.bf16.mxu1 %vm6433_vm5, %v6405_v26  ;;  %5035 = vmatpush3.bf16.msra.mxu0 %v5476_v41  ;;  %v7099_v41 = vld [vmem:[#allocation14_spill] sm:$0xff] }
  0xa8   : > { %5036 = vmatprep.subr.bf16.mxu0 %v5478_v42 }
  0xab   : > { %5037 = vmatpush3.bf16.msra.mxu0 %v5478_v42  ;;  %v7100_v42 = vld [vmem:[#allocation16_spill] sm:$0xff] }
  0xac   : > { %5038 = vmatprep.subr.bf16.mxu0 %v5480_v45 }
  0xad   : > { %5007 = vmatmul.mubr.msk.bf16.gmra.mrb[12].mxu0 %vm6433_vm5, %v6386_v20 }
  0xae   : > { %4779 = vmatmul.mubr.msk.bf16.gmra.mrb[24].mxu1 %vm6433_vm5, %v6411_v1  ;;  %5010 = vmatprep.mubr.msk.bf16.mxu0 %vm6433_vm5, %v6392_v33 }
  0xaf   : > { %4782 = vmatprep.mubr.msk.bf16.mxu1 %vm6433_vm5, %v6417_v51  ;;  %5039 = vmatpush3.bf16.msra.mxu0 %v5480_v45  ;;  %v7101_v45 = vld [vmem:[#allocation18_spill] sm:$0xff] }
  0xb0   : > { %5040 = vmatprep.subr.bf16.mxu0 %v5482_v23 }
  0xb3   : > { %5041 = vmatpush3.bf16.msra.mxu0 %v5482_v23  ;;  %v7102_v23 = vld [vmem:[#allocation19_spill] sm:$0xff] }
  0xb4   : > { %5074 = vmatprep.subr.bf16.mxu0 %v5484_v6 }
  0xb5   : > { %5011 = vmatmul.mubr.msk.bf16.gmra.mrb[16].mxu0 %vm6433_vm5, %v6399_v62 }
  0xb6   : > { %4783 = vmatmul.mubr.msk.bf16.gmra.mrb[28].mxu1 %vm6433_vm5, %v6423_v52  ;;  %5014 = vmatprep.mubr.msk.bf16.mxu0 %vm6433_vm5, %v6405_v26 }
  0xb7   : > { %4802 = vmatprep.mubr.bf16.mxu1 %v6609_v60 }
  0xbd   : > { %5015 = vmatmul.mubr.msk.bf16.gmra.mrb[20].mxu0 %vm6433_vm5, %v6411_v1 }
  0xbe   : > { %4803 = vmatmul.mubr.bf16.vlgmr.msra.gmra.mrb[0].mxu1 %v7085_v53  ;;  %5018 = vmatprep.mubr.msk.bf16.mxu0 %vm6433_vm5, %v6417_v51  ;;  %v7104_v53 = vld [vmem:[#allocation2_spill] sm:$0xff] }
  0xbf   : > { %4835 = vmatpush3.bf16.msra.mxu1 %v5475_v63  ;;  %4806 = vmatprep.mubr.bf16.mxu1 %v7086_v39  ;;  %v5493_v63 = vld [vmem:[%s6967_s3 + $0x230] sm:$0xff]  }
  0xc0   : > { %4836 = vmatprep.subr.bf16.mxu1 %v5477_v18 }
  0xc3   : > { %4837 = vmatpush3.bf16.msra.mxu1 %v5477_v18  ;;  %v5498_v18 = vld [vmem:[%s6967_s3 + $0x108] sm:$0xff]  }
  0xc4   : > { %4838 = vmatprep.subr.bf16.mxu1 %v5479_v13 }
  0xc5   : > { %5019 = vmatmul.mubr.msk.bf16.gmra.mrb[24].mxu0 %vm6433_vm5, %v6423_v52 }
  0xc6   : > { %4807 = vmatmul.mubr.bf16.gmra.mrb[4].mxu1 %v7087_v56  ;;  %5022 = vmatprep.mubr.msk.bf16.mxu0 %vm6433_vm5, %v6639_v61 }
  0xc7   : > { %4810 = vmatprep.mubr.bf16.mxu1 %v7088_v9  ;;  %4839 = vmatpush3.bf16.msra.mxu1 %v5479_v13 }
  0xc8   : > { %4840 = vmatprep.subr.bf16.mxu1 %v5481_v21 }
  0xcb   : > { %4841 = vmatpush3.bf16.msra.mxu1 %v5481_v21 }
  0xcc   : > { %4842 = vmatprep.subr.bf16.mxu1 %v5483_v36 }
  0xcd   : > { %5023 = vmatmul.mubr.bf16.gmra.mrb[28].mxu0 %v5530_v24  ;;  %v5489_v24 = vld [vmem:[%s6967_s3 + $0xf8] sm:$0xff]  }
  0xce   : > { %4811 = vmatmul.mubr.bf16.gmra.mrb[8].mxu1 %v7089_v37  ;;  %5042 = vmatprep.mubr.bf16.mxu0 %v7090_v15 }
  0xcf   : > { %4814 = vmatprep.mubr.bf16.mxu1 %v6196_v2  ;;  %4843 = vmatpush3.bf16.msra.mxu1 %v5483_v36 }
  0xd0   : > { %4844 = vmatprep.subr.bf16.mxu1 %v5485_v14 }
  0xd3   : > { %4845 = vmatpush3.bf16.msra.mxu1 %v5485_v14 }
  0xd4   : > { %4846 = vmatprep.subr.bf16.mxu1 %v5487_v59 }
  0xd5   : > { %5043 = vmatmul.mubr.bf16.vlgmr.msra.gmra.mrb[0].mxu0 %v7091_v5 }
  0xd6   : > { %4815 = vmatmul.mubr.bf16.gmra.mrb[12].mxu1 %v7092_v12  ;;  %5075 = vmatpush3.bf16.msra.mxu0 %v5484_v6  ;;  %v7103_v6 = vld [vmem:[#allocation21_spill] sm:$0xff] }
  0xd7   : > { %4818 = vmatprep.mubr.bf16.mxu1 %v6296_v4  ;;  %5046 = vmatprep.mubr.bf16.mxu0 %v7093_v38 }
  0xd8   : > { %5076 = vmatprep.subr.bf16.mxu0 %v5486_v40  ;;  %4847 = vmatpush3.bf16.msra.mxu1 %v5487_v59 }
  0xd9   : > { %4848 = vmatprep.subr.bf16.mxu1 %v5489_v24 }
  0xda   : > { %5077 = vmatpush3.bf16.msra.mxu0 %v5486_v40 }
  0xdb   : > { %5078 = vmatprep.subr.bf16.mxu0 %v5488_v30 }
  0xdc   : > { %4849 = vmatpush3.bf16.msra.mxu1 %v5489_v24 }
  0xdd   : > { %5047 = vmatmul.mubr.bf16.gmra.mrb[4].mxu0 %v7094_v3  ;;  %5122 = vmatprep.subr.bf16.mxu1 %v5497_v31 }
  0xde   : > { %4819 = vmatmul.mubr.bf16.gmra.mrb[16].mxu1 %v7095_v55  ;;  %5050 = vmatprep.mubr.bf16.mxu0 %v7096_v54 }
  0xdf   : > { %4822 = vmatprep.mubr.bf16.mxu1 %v6332_v46  ;;  %5079 = vmatpush3.bf16.msra.mxu0 %v5488_v30 }
  0xe0   : > { %5080 = vmatprep.subr.bf16.mxu0 %v5490_v8 }
  0xe3   : > { %5081 = vmatpush3.bf16.msra.mxu0 %v5490_v8 }
  0xe4   : > { %5082 = vmatprep.subr.bf16.mxu0 %v5491_v25 }
  0xe5   : > { %5051 = vmatmul.mubr.bf16.gmra.mrb[8].mxu0 %v7097_v19 }
  0xe6   : > { %4823 = vmatmul.mubr.bf16.gmra.mrb[20].mxu1 %v6343_v44  ;;  %5054 = vmatprep.mubr.bf16.mxu0 %v7098_v57 }
  0xe7   : > { %4826 = vmatprep.mubr.bf16.mxu1 %v6426_v17  ;;  %5083 = vmatpush3.bf16.msra.mxu0 %v5491_v25 }
  0xe8   : > { %5084 = vmatprep.subr.bf16.mxu0 %v5492_v47 }
  0xeb   : > { %5085 = vmatpush3.bf16.msra.mxu0 %v5492_v47 }
  0xec   : > { %5086 = vmatprep.subr.bf16.mxu0 %v5493_v63 }
  0xed   : > { %5055 = vmatmul.mubr.bf16.gmra.mrb[12].mxu0 %v7099_v41 }
  0xee   : > { %4827 = vmatmul.mubr.bf16.gmra.mrb[24].mxu1 %v6444_v16  ;;  %5058 = vmatprep.mubr.bf16.mxu0 %v7100_v42 }
  0xef   : > { %4830 = vmatprep.mubr.bf16.mxu1 %v6480_v27  ;;  %5087 = vmatpush3.bf16.msra.mxu0 %v5493_v63 }
  0xf0   : > { %5088 = vmatprep.subr.bf16.mxu0 %v5494_v48 }
  0xf3   : > { %5089 = vmatpush3.bf16.msra.mxu0 %v5494_v48 }
  0xf5   : > { %5059 = vmatmul.mubr.bf16.gmra.mrb[16].mxu0 %v7101_v45 }
  0xf6   : > { %4831 = vmatmul.mubr.bf16.gmra.mrb[28].mxu1 %v6491_v58  ;;  %5062 = vmatprep.mubr.bf16.mxu0 %v7102_v23 }
  0xf7   : > { %4850 = vmatprep.mubr.msk.bf16.mxu1 %vm6433_vm5, %v5704_v50  ;;  %v5499_v50 = vld [vmem:[%s6967_s3 + $0x110] sm:$0xff]  }
  0xfd   : > { %5063 = vmatmul.mubr.bf16.gmra.mrb[20].mxu0 %v7103_v6 }
  0xfe   : > { %4851 = vmatmul.mubr.msk.bf16.vlgmr.msra.gmra.mrb[0].mxu1 %vm6433_vm5, %v6441_v0  ;;  %5066 = vmatprep.mubr.bf16.mxu0 %v6327_v49  ;;  %v5500_v0 = vld [vmem:[%s6967_s3 + $0x118] sm:$0xff]  }
  0xff   : > { %5130 = vmatpush3.bf16.msra.mxu1 %v5497_v31  ;;  %4854 = vmatprep.mubr.msk.bf16.mxu1 %vm6433_vm5, %v6477_v35  ;;  %v5501_v35 = vld [vmem:[%s6967_s3 + $0x120] sm:$0xff]  }
 0x100   : > { %5123 = vmatprep.subr.bf16.mxu1 %v5498_v18 }
 0x103   : > { %5131 = vmatpush3.bf16.msra.mxu1 %v5498_v18 }
 0x104   : > { %5124 = vmatprep.subr.bf16.mxu1 %v5499_v50 }
 0x105   : > { %5067 = vmatmul.mubr.bf16.gmra.mrb[24].mxu0 %v6355_v10 }
 0x106   : > { %4855 = vmatmul.mubr.msk.bf16.gmra.mrb[4].mxu1 %vm6433_vm5, %v6488_v11  ;;  %5070 = vmatprep.mubr.bf16.mxu0 %v6530_v22  ;;  %v5503_v11 = vld [vmem:[%s6967_s3 + $0x130] sm:$0xff]  }
 0x107   : > { %4858 = vmatprep.mubr.msk.bf16.mxu1 %vm6433_vm5, %v6338_v28  ;;  %5132 = vmatpush3.bf16.msra.mxu1 %v5499_v50  ;;  %v5502_v28 = vld [vmem:[%s6967_s3 + $0x128] sm:$0xff]  }
 0x108   : > { %5125 = vmatprep.subr.bf16.mxu1 %v5500_v0 }
 0x10b   : > { %5133 = vmatpush3.bf16.msra.mxu1 %v5500_v0 }
 0x10c   : > { %5126 = vmatprep.subr.bf16.mxu1 %v5501_v35 }
 0x10d   : > { %5071 = vmatmul.mubr.bf16.gmra.mrb[28].mxu0 %v7104_v53 }
 0x10e   : > { %4859 = vmatmul.mubr.msk.bf16.gmra.mrb[8].mxu1 %vm6433_vm5, %v6352_v7  ;;  %5090 = vmatprep.mubr.bf16.mxu0 %v7086_v39  ;;  %v5504_v7 = vld [vmem:[%s6967_s3 + $0x138] sm:$0xff]  }
 0x10f   : > { %4862 = vmatprep.mubr.msk.bf16.mxu1 %vm6433_vm5, %v6363_v34  ;;  %5134 = vmatpush3.bf16.msra.mxu1 %v5501_v35 }
 0x110   : > { %5127 = vmatprep.subr.bf16.mxu1 %v5502_v28 }
 0x113   : > { %5135 = vmatpush3.bf16.msra.mxu1 %v5502_v28 }
 0x114   : > { %5128 = vmatprep.subr.bf16.mxu1 %v5503_v11 }
 0x115   : > { %5091 = vmatmul.mubr.bf16.vlgmr.msra.gmra.mrb[0].mxu0 %v7087_v56 }
 0x116   : > { %4863 = vmatmul.mubr.msk.bf16.gmra.mrb[12].mxu1 %vm6433_vm5, %v6380_v43  ;;  %5094 = vmatprep.mubr.bf16.mxu0 %v7088_v9 }
 0x117   : > { %4866 = vmatprep.mubr.msk.bf16.mxu1 %vm6433_vm5, %v6386_v20  ;;  %5136 = vmatpush3.bf16.msra.mxu1 %v5503_v11 }
 0x118   : > { %5129 = vmatprep.subr.bf16.mxu1 %v5504_v7 }
 0x11b   : > { %5137 = vmatpush3.bf16.msra.mxu1 %v5504_v7 }
 0x11d   : > { %5095 = vmatmul.mubr.bf16.gmra.mrb[4].mxu0 %v7089_v37 }
 0x11e   : > { %4867 = vmatmul.mubr.msk.bf16.gmra.mrb[16].mxu1 %vm6433_vm5, %v6392_v33  ;;  %5098 = vmatprep.mubr.bf16.mxu0 %v6196_v2  ;;  %v5532_v2 = vmov 0.0  }
 0x11f   : > { %4870 = vmatprep.mubr.msk.bf16.mxu1 %vm6433_vm5, %v6399_v62  ;;  %3811 = vst [vmem:[%s6814_s12 + $0x18] sm:$0xff] %v5532_v2  ;;  %3812 = vst [vmem:[%s6814_s12 + $0x20] sm:$0xff] %v5532_v2 }
 0x120   : > { %3808 = vst [vmem:[%s6814_s12] sm:$0xff] %v5532_v2  ;;  %3809 = vst [vmem:[%s6814_s12 + $0x8] sm:$0xff] %v5532_v2 }
 0x121   : > { %3810 = vst [vmem:[%s6814_s12 + $0x10] sm:$0x3] %v5532_v2  ;;  %3813 = vst [vmem:[%s6814_s12 + $0x28] sm:$0x3] %v5532_v2 }
 0x122   : > { %3814 = vst [vmem:[%s6814_s12 + $0x30] sm:$0xff] %v5532_v2  ;;  %3815 = vst [vmem:[%s6814_s12 + $0x38] sm:$0xff] %v5532_v2 }
 0x123   : > { %3816 = vst [vmem:[%s6814_s12 + $0x40] sm:$0x3] %v5532_v2  ;;  %3817 = vst [vmem:[%s6814_s12 + $0x48] sm:$0xff] %v5532_v2 }
 0x124   : > { %3818 = vst [vmem:[%s6814_s12 + $0x50] sm:$0xff] %v5532_v2  ;;  %3819 = vst [vmem:[%s6814_s12 + $0x58] sm:$0x3] %v5532_v2 }
 0x125   : > { %5099 = vmatmul.mubr.bf16.gmra.mrb[8].mxu0 %v7092_v12  ;;  %3820 = vst [vmem:[%s6814_s12 + $0x60] sm:$0xff] %v5532_v2  ;;  %3821 = vst [vmem:[%s6814_s12 + $0x68] sm:$0xff] %v5532_v2 }
 0x126   : > { %4871 = vmatmul.mubr.msk.bf16.gmra.mrb[20].mxu1 %vm6433_vm5, %v6405_v26  ;;  %5102 = vmatprep.mubr.bf16.mxu0 %v6296_v4  ;;  %3822 = vst [vmem:[%s6814_s12 + $0x70] sm:$0x3] %v5532_v2  ;;  %3823 = vst [vmem:[%s6814_s12 + $0x78] sm:$0xff] %v5532_v2 }
 0x127   : > { %4874 = vmatprep.mubr.msk.bf16.mxu1 %vm6433_vm5, %v6411_v1  ;;  %3824 = vst [vmem:[%s6814_s12 + $0x80] sm:$0xff] %v5532_v2  ;;  %3825 = vst [vmem:[%s6814_s12 + $0x88] sm:$0x3] %v5532_v2 }
 0x128   : > { %3826 = vst [vmem:[%s6814_s12 + $0x90] sm:$0xff] %v5532_v2  ;;  %3827 = vst [vmem:[%s6814_s12 + $0x98] sm:$0xff] %v5532_v2 }
 0x129   : > { %3828 = vst [vmem:[%s6814_s12 + $0xa0] sm:$0x3] %v5532_v2  ;;  %3829 = vst [vmem:[%s6814_s12 + $0xa8] sm:$0xff] %v5532_v2 }
 0x12a   : > { %3830 = vst [vmem:[%s6814_s12 + $0xb0] sm:$0xff] %v5532_v2  ;;  %3831 = vst [vmem:[%s6814_s12 + $0xb8] sm:$0x3] %v5532_v2 }
 0x12b   : > { %3832 = vst [vmem:[%s6814_s12 + $0xc0] sm:$0xff] %v5532_v2  ;;  %3833 = vst [vmem:[%s6814_s12 + $0xc8] sm:$0xff] %v5532_v2 }
 0x12c   : > { %3834 = vst [vmem:[%s6814_s12 + $0xd0] sm:$0x3] %v5532_v2  ;;  %3835 = vst [vmem:[%s6814_s12 + $0xd8] sm:$0xff] %v5532_v2 }
 0x12d   : > { %5103 = vmatmul.mubr.bf16.gmra.mrb[12].mxu0 %v7095_v55  ;;  %3836 = vst [vmem:[%s6814_s12 + $0xe0] sm:$0xff] %v5532_v2  ;;  %3837 = vst [vmem:[%s6814_s12 + $0xe8] sm:$0x3] %v5532_v2 }
 0x12e   : > { %4875 = vmatmul.mubr.msk.bf16.gmra.mrb[24].mxu1 %vm6433_vm5, %v6417_v51  ;;  %5106 = vmatprep.mubr.bf16.mxu0 %v6332_v46  ;;  %3838 = vst [vmem:[%s6814_s12 + $0xf0] sm:$0xff] %v5532_v2  ;;  %3839 = vst [vmem:[%s6814_s12 + $0xf8] sm:$0xff] %v5532_v2 }
 0x12f   : > { %4878 = vmatprep.mubr.msk.bf16.mxu1 %vm6433_vm5, %v6423_v52  ;;  %3840 = vst [vmem:[%s6814_s12 + $0x100] sm:$0x3] %v5532_v2  ;;  %3841 = vst [vmem:[%s6814_s12 + $0x108] sm:$0xff] %v5532_v2  ;;  %v6871_v52 = vld [vmem:[%s6968_s4] ss:$0 sm:$0xff] }
 0x130   : > { %3842 = vst [vmem:[%s6814_s12 + $0x110] sm:$0xff] %v5532_v2  ;;  %3843 = vst [vmem:[%s6814_s12 + $0x118] sm:$0x3] %v5532_v2 }
 0x131   : > { %3844 = vst [vmem:[%s6814_s12 + $0x120] sm:$0xff] %v5532_v2  ;;  %3845 = vst [vmem:[%s6814_s12 + $0x128] sm:$0xff] %v5532_v2 }
 0x132   : > { %3846 = vst [vmem:[%s6814_s12 + $0x130] sm:$0x3] %v5532_v2  ;;  %3847 = vst [vmem:[%s6814_s12 + $0x138] sm:$0xff] %v5532_v2 }
 0x133   : > { %3848 = vst [vmem:[%s6814_s12 + $0x140] sm:$0xff] %v5532_v2  ;;  %3849 = vst [vmem:[%s6814_s12 + $0x148] sm:$0x3] %v5532_v2 }
 0x134   : > { %3850 = vst [vmem:[%s6814_s12 + $0x150] sm:$0xff] %v5532_v2  ;;  %3851 = vst [vmem:[%s6814_s12 + $0x158] sm:$0xff] %v5532_v2 }
 0x135   : > { %5107 = vmatmul.mubr.bf16.gmra.mrb[16].mxu0 %v6343_v44  ;;  %3852 = vst [vmem:[%s6814_s12 + $0x160] sm:$0x3] %v5532_v2  ;;  %3853 = vst [vmem:[%s6814_s12 + $0x168] sm:$0xff] %v5532_v2 }
 0x136   : > { %4879 = vmatmul.mubr.msk.bf16.gmra.mrb[28].mxu1 %vm6433_vm5, %v6639_v61  ;;  %5110 = vmatprep.mubr.bf16.mxu0 %v6426_v17  ;;  %3854 = vst [vmem:[%s6814_s12 + $0x170] sm:$0xff] %v5532_v2  ;;  %3855 = vst [vmem:[%s6814_s12 + $0x178] sm:$0x3] %v5532_v2 }
 0x137   : > { %4914 = vmatprep.mubr.bf16.mxu1 %v7099_v41 }
 0x13d   : > { %5111 = vmatmul.mubr.bf16.gmra.mrb[20].mxu0 %v6444_v16 }
 0x13e   : > { %4915 = vmatmul.mubr.bf16.vlgmr.msra.gmra.mrb[16].mxu1 %v7100_v42  ;;  %5114 = vmatprep.mubr.bf16.mxu0 %v6480_v27 }
 0x13f   : > { %4918 = vmatprep.mubr.bf16.mxu1 %v7101_v45 }
 0x145   : > { %5115 = vmatmul.mubr.bf16.gmra.mrb[24].mxu0 %v6491_v58 }
 0x146   : > { %4919 = vmatmul.mubr.bf16.gmra.mrb[20].mxu1 %v7102_v23  ;;  %5118 = vmatprep.mubr.bf16.mxu0 %v6508_v32 }
 0x147   : > { %4922 = vmatprep.mubr.bf16.mxu1 %v7103_v6 }
 0x14d   : > { %5119 = vmatmul.mubr.bf16.gmra.mrb[28].mxu0 %v6609_v60 }
 0x14e   : > { %4923 = vmatmul.mubr.bf16.gmra.mrb[24].mxu1 %v6327_v49 }
 0x14f   : > { %4926 = vmatprep.mubr.bf16.mxu1 %v6355_v10 }
 0x156   : > { %4927 = vmatmul.mubr.bf16.gmra.mrb[28].mxu1 %v6530_v22 }
 0x1d1   : > { %v4852_v4 = vpop.f32.mrb[0].mxu1 }
 0x1d2   : > { %v2173_v49 = vpop.f32.mrb[1].mxu1 }
 0x1d3   : > { %v4853_v46 = vpop.f32.mrb[2].mxu1 }
 0x1d4   : > { %v2176_v44 = vpop.f32.mrb[3].mxu1 }
 0x1d9   : > { %v4856_v10 = vpop.f32.mrb[4].mxu1 }
 0x1da   : > { %v2189_v34 = vpop.f32.mrb[5].mxu1 }
 0x1db   : > { %v4857_v43 = vpop.f32.mrb[6].mxu1 }
 0x1dc   : > { %v2192_v20 = vpop.f32.mrb[7].mxu1 }
 0x1e1   : > { %v4860_v33 = vpop.f32.mrb[8].mxu1 }
 0x1e2   : > { %v2205_v62 = vpop.f32.mrb[9].mxu1 }
 0x1e3   : > { %v6864_v26 = vpop.f32.mrb[10].mxu1 }
 0x1e4   : > { %v6866_v1 = vpop.f32.mrb[11].mxu1 }
 0x1e8   : > { %v5092_v51 = vpop.f32.mrb[0].mxu0 }
 0x1e9   : > { %v6873_v17 = vpop.f32.mrb[12].mxu1  ;;  %v5138_v29 = vadd.f32 %v5092_v51, %v4852_v4  ;;  %v3501_v16 = vpop.f32.mrb[1].mxu0 }
 0x1ea   : > { %v6875_v27 = vpop.f32.mrb[13].mxu1  ;;  %v5139_v58 = vadd.f32 %v3501_v16, %v2173_v49  ;;  %v5093_v32 = vpop.f32.mrb[2].mxu0 }
 0x1eb   : > { %v6877_v22 = vpop.f32.mrb[14].mxu1  ;;  %v3669_v60 = vadd.f32 %v5138_v29, %v6871_v52  ;;  %v5140_v39 = vadd.f32 %v5093_v32, %v4853_v46  ;;  %v3504_v13 = vpop.f32.mrb[3].mxu0 }
 0x1ec   : > { %v6880_v61 = vpop.f32.mrb[15].mxu1  ;;  %v3667_v21 = vadd.f32 %v5139_v58, %v6871_v52  ;;  %v5141_v56 = vadd.f32 %v3504_v13, %v2176_v44 }
 0x1ed   : > { %3858 = vst [vmem:[%s6814_s12 + $0x19] sm:$0xff] %v3669_v60  ;;  %v3670_v9 = vadd.f32 %v5140_v39, %v6871_v52  ;;  %v3738_v24 = vmul.f32 %v3669_v60, %v3669_v60 }
 0x1ee   : > { %3856 = vst [vmem:[%s6814_s12 + $0x1] sm:$0xff] %v3667_v21  ;;  %v3668_v36 = vadd.f32 %v5141_v56, %v6871_v52  ;;  %v3736_v14 = vmul.f32 %v3667_v21, %v3667_v21 }
 0x1ef   : > { %3859 = vst [vmem:[%s6814_s12 + $0x21] sm:$0xff] %v3670_v9  ;;  %v3739_v3 = vmul.f32 %v3670_v9, %v3670_v9 }
 0x1f0   : > { %v3699_v37 = vadd.f32 %v3668_v36, %v3667_v21  ;;  %v3737_v15 = vmul.f32 %v3668_v36, %v3668_v36  ;;  %3857 = vst [vmem:[%s6814_s12 + $0x9] sm:$0xff] %v3668_v36  ;;  %v5096_v59 = vpop.f32.mrb[4].mxu0 }
 0x1f1   : > { %v5142_v40 = vadd.f32 %v5096_v59, %v4856_v10  ;;  %v3517_v5 = vpop.f32.mrb[5].mxu0 }
 0x1f2   : > { %v3700_v12 = vadd.f32 %v3699_v37, %v3669_v60  ;;  %v3768_v38 = vadd.f32 %v3737_v15, %v3736_v14  ;;  %v5143_v30 = vadd.f32 %v3517_v5, %v2189_v34  ;;  %v5097_v8 = vpop.f32.mrb[6].mxu0 }
 0x1f3   : > { %v3673_v31 = vadd.f32 %v5142_v40, %v6871_v52  ;;  %v5144_v55 = vadd.f32 %v5097_v8, %v4857_v43  ;;  %v3520_v54 = vpop.f32.mrb[7].mxu0 }
 0x1f4   : > { %v3769_v25 = vadd.f32 %v3768_v38, %v3738_v24  ;;  %v3671_v47 = vadd.f32 %v5143_v30, %v6871_v52  ;;  %v3701_v19 = vadd.f32 %v3700_v12, %v3670_v9  ;;  %v5145_v57 = vadd.f32 %v3520_v54, %v2192_v20 }
 0x1f5   : > { %3862 = vst [vmem:[%s6814_s12 + $0x49] sm:$0xff] %v3673_v31  ;;  %v3674_v63 = vadd.f32 %v5144_v55, %v6871_v52  ;;  %v3742_v53 = vmul.f32 %v3673_v31, %v3673_v31 }
 0x1f6   : > { %v3702_v48 = vadd.f32 %v3701_v19, %v3671_v47  ;;  %v3740_v41 = vmul.f32 %v3671_v47, %v3671_v47  ;;  %v3770_v42 = vadd.f32 %v3769_v25, %v3739_v3  ;;  %3860 = vst [vmem:[%s6814_s12 + $0x31] sm:$0xff] %v3671_v47  ;;  %v3672_v45 = vadd.f32 %v5145_v57, %v6871_v52 }
 0x1f7   : > { %3863 = vst [vmem:[%s6814_s12 + $0x51] sm:$0xff] %v3674_v63  ;;  %v3743_v4 = vmul.f32 %v3674_v63, %v3674_v63 }
 0x1f8   : > { %v3771_v23 = vadd.f32 %v3770_v42, %v3740_v41  ;;  %v3703_v6 = vadd.f32 %v3702_v48, %v3672_v45  ;;  %v3741_v18 = vmul.f32 %v3672_v45, %v3672_v45  ;;  %3861 = vst [vmem:[%s6814_s12 + $0x39] sm:$0xff] %v3672_v45  ;;  %v5100_v50 = vpop.f32.mrb[8].mxu0 }
 0x1f9   : > { %v5146_v0 = vadd.f32 %v5100_v50, %v4860_v33  ;;  %v3533_v35 = vpop.f32.mrb[9].mxu0 }
 0x1fa   : > { %v3704_v28 = vadd.f32 %v3703_v6, %v3673_v31  ;;  %v3772_v11 = vadd.f32 %v3771_v23, %v3741_v18  ;;  %v5147_v7 = vadd.f32 %v3533_v35, %v2205_v62  ;;  %v5101_v2 = vpop.f32.mrb[10].mxu0 }
 0x1fb   : > { %v3677_v49 = vadd.f32 %v5146_v0, %v6871_v52  ;;  %v5148_v46 = vadd.f32 %v5101_v2, %v6864_v26  ;;  %v3536_v44 = vpop.f32.mrb[11].mxu0 }
 0x1fc   : > { %v3773_v10 = vadd.f32 %v3772_v11, %v3742_v53  ;;  %v3675_v34 = vadd.f32 %v5147_v7, %v6871_v52  ;;  %v3705_v43 = vadd.f32 %v3704_v28, %v3674_v63  ;;  %v5149_v20 = vadd.f32 %v3536_v44, %v6866_v1 }
 0x1fd   : > { %3866 = vst [vmem:[%s6814_s12 + $0x79] sm:$0xff] %v3677_v49  ;;  %v3678_v33 = vadd.f32 %v5148_v46, %v6871_v52  ;;  %v3746_v1 = vmul.f32 %v3677_v49, %v3677_v49 }
 0x1fe   : > { %v3706_v51 = vadd.f32 %v3705_v43, %v3675_v34  ;;  %v3744_v62 = vmul.f32 %v3675_v34, %v3675_v34  ;;  %v3774_v29 = vadd.f32 %v3773_v10, %v3743_v4  ;;  %3864 = vst [vmem:[%s6814_s12 + $0x61] sm:$0xff] %v3675_v34  ;;  %v3676_v16 = vadd.f32 %v5149_v20, %v6871_v52 }
 0x1ff   : > { %3867 = vst [vmem:[%s6814_s12 + $0x81] sm:$0xff] %v3678_v33  ;;  %v3747_v14 = vmul.f32 %v3678_v33, %v3678_v33 }
 0x200   : > { %v3775_v58 = vadd.f32 %v3774_v29, %v3744_v62  ;;  %v3707_v26 = vadd.f32 %v3706_v51, %v3676_v16  ;;  %v3745_v32 = vmul.f32 %v3676_v16, %v3676_v16  ;;  %3865 = vst [vmem:[%s6814_s12 + $0x69] sm:$0xff] %v3676_v16  ;;  %v5104_v60 = vpop.f32.mrb[12].mxu0 }
 0x201   : > { %v5150_v39 = vadd.f32 %v5104_v60, %v6873_v17  ;;  %v3549_v13 = vpop.f32.mrb[13].mxu0 }
 0x202   : > { %v3708_v21 = vadd.f32 %v3707_v26, %v3677_v49  ;;  %v3776_v56 = vadd.f32 %v3775_v58, %v3745_v32  ;;  %v5151_v9 = vadd.f32 %v3549_v13, %v6875_v27  ;;  %v5105_v36 = vpop.f32.mrb[14].mxu0 }
 0x203   : > { %v3681_v37 = vadd.f32 %v5150_v39, %v6871_v52  ;;  %v5152_v15 = vadd.f32 %v5105_v36, %v6877_v22  ;;  %v3552_v59 = vpop.f32.mrb[15].mxu0 }
 0x204   : > { %v3777_v40 = vadd.f32 %v3776_v56, %v3746_v1  ;;  %v3679_v5 = vadd.f32 %v5151_v9, %v6871_v52  ;;  %v3709_v17 = vadd.f32 %v3708_v21, %v3678_v33  ;;  %v5153_v24 = vadd.f32 %v3552_v59, %v6880_v61 }
 0x205   : > { %3870 = vst [vmem:[%s6814_s12 + $0xa9] sm:$0xff] %v3681_v37  ;;  %v3682_v12 = vadd.f32 %v5152_v15, %v6871_v52  ;;  %v3750_v25 = vmul.f32 %v3681_v37, %v3681_v37 }
 0x206   : > { %v3710_v38 = vadd.f32 %v3709_v17, %v3679_v5  ;;  %v3748_v27 = vmul.f32 %v3679_v5, %v3679_v5  ;;  %v3778_v30 = vadd.f32 %v3777_v40, %v3747_v14  ;;  %3868 = vst [vmem:[%s6814_s12 + $0x91] sm:$0xff] %v3679_v5  ;;  %v3680_v8 = vadd.f32 %v5153_v24, %v6871_v52 }
 0x207   : > { %3871 = vst [vmem:[%s6814_s12 + $0xb1] sm:$0xff] %v3682_v12  ;;  %v3751_v63 = vmul.f32 %v3682_v12, %v3682_v12 }
 0x208   : > { %v3779_v3 = vadd.f32 %v3778_v30, %v3748_v27  ;;  %v3711_v22 = vadd.f32 %v3710_v38, %v3680_v8  ;;  %v3749_v31 = vmul.f32 %v3680_v8, %v3680_v8  ;;  %3869 = vst [vmem:[%s6814_s12 + $0x99] sm:$0xff] %v3680_v8  ;;  %v5108_v55 = vpop.f32.mrb[16].mxu0 }
 0x209   : > { %v3565_v54 = vpop.f32.mrb[17].mxu0 }
 0x20a   : > { %v3712_v47 = vadd.f32 %v3711_v22, %v3681_v37  ;;  %v3780_v19 = vadd.f32 %v3779_v3, %v3749_v31  ;;  %v5109_v61 = vpop.f32.mrb[18].mxu0 }
 0x20b   : > { %v3568_v57 = vpop.f32.mrb[19].mxu0 }
 0x20c   : > { %v3781_v48 = vadd.f32 %v3780_v19, %v3750_v25  ;;  %v3713_v41 = vadd.f32 %v3712_v47, %v3682_v12 }
 0x20e   : > { %v3782_v42 = vadd.f32 %v3781_v48, %v3751_v63 }
 0x210   : > { %v5112_v45 = vpop.f32.mrb[20].mxu0 }
 0x211   : > { %v4916_v23 = vpop.f32.mrb[16].mxu1  ;;  %v3581_v6 = vpop.f32.mrb[21].mxu0 }
 0x212   : > { %v5154_v18 = vadd.f32 %v5108_v55, %v4916_v23  ;;  %v2508_v50 = vpop.f32.mrb[17].mxu1  ;;  %v5113_v0 = vpop.f32.mrb[22].mxu0 }
 0x213   : > { %v5155_v35 = vadd.f32 %v3565_v54, %v2508_v50  ;;  %v4917_v53 = vpop.f32.mrb[18].mxu1  ;;  %v3584_v28 = vpop.f32.mrb[23].mxu0 }
 0x214   : > { %v3685_v11 = vadd.f32 %v5154_v18, %v6871_v52  ;;  %v5156_v7 = vadd.f32 %v5109_v61, %v4917_v53  ;;  %v2511_v2 = vpop.f32.mrb[19].mxu1 }
 0x215   : > { %v3683_v4 = vadd.f32 %v5155_v35, %v6871_v52  ;;  %v5157_v49 = vadd.f32 %v3568_v57, %v2511_v2 }
 0x216   : > { %3874 = vst [vmem:[%s6814_s12 + $0xd9] sm:$0xff] %v3685_v11  ;;  %v3686_v46 = vadd.f32 %v5156_v7, %v6871_v52  ;;  %v3754_v32 = vmul.f32 %v3685_v11, %v3685_v11 }
 0x217   : > { %v3714_v44 = vadd.f32 %v3713_v41, %v3683_v4  ;;  %v3752_v10 = vmul.f32 %v3683_v4, %v3683_v4  ;;  %3872 = vst [vmem:[%s6814_s12 + $0xc1] sm:$0xff] %v3683_v4  ;;  %v3684_v34 = vadd.f32 %v5157_v49, %v6871_v52 }
 0x218   : > { %3875 = vst [vmem:[%s6814_s12 + $0xe1] sm:$0xff] %v3686_v46  ;;  %v5116_v43 = vpop.f32.mrb[24].mxu0  ;;  %v3755_v56 = vmul.f32 %v3686_v46, %v3686_v46 }
 0x219   : > { %v3783_v20 = vadd.f32 %v3782_v42, %v3752_v10  ;;  %v3715_v33 = vadd.f32 %v3714_v44, %v3684_v34  ;;  %v3753_v51 = vmul.f32 %v3684_v34, %v3684_v34  ;;  %3873 = vst [vmem:[%s6814_s12 + $0xc9] sm:$0xff] %v3684_v34  ;;  %v4920_v62 = vpop.f32.mrb[20].mxu1  ;;  %v3597_v29 = vpop.f32.mrb[25].mxu0 }
 0x21a   : > { %v5158_v16 = vadd.f32 %v5112_v45, %v4920_v62  ;;  %v2524_v58 = vpop.f32.mrb[21].mxu1  ;;  %v5117_v26 = vpop.f32.mrb[26].mxu0 }
 0x21b   : > { %v3716_v60 = vadd.f32 %v3715_v33, %v3685_v11  ;;  %v3784_v39 = vadd.f32 %v3783_v20, %v3753_v51  ;;  %v5159_v13 = vadd.f32 %v3581_v6, %v2524_v58  ;;  %v4921_v1 = vpop.f32.mrb[22].mxu1  ;;  %v3600_v21 = vpop.f32.mrb[27].mxu0 }
 0x21c   : > { %v3689_v9 = vadd.f32 %v5158_v16, %v6871_v52  ;;  %v5160_v36 = vadd.f32 %v5113_v0, %v4921_v1  ;;  %v2527_v14 = vpop.f32.mrb[23].mxu1 }
 0x21d   : > { %v3785_v37 = vadd.f32 %v3784_v39, %v3754_v32  ;;  %v3687_v15 = vadd.f32 %v5159_v13, %v6871_v52  ;;  %v3717_v59 = vadd.f32 %v3716_v60, %v3686_v46  ;;  %v5161_v40 = vadd.f32 %v3584_v28, %v2527_v14 }
 0x21e   : > { %3878 = vst [vmem:[%s6814_s12 + $0x109] sm:$0xff] %v3689_v9  ;;  %v3690_v5 = vadd.f32 %v5160_v36, %v6871_v52  ;;  %v3758_v47 = vmul.f32 %v3689_v9, %v3689_v9 }
 0x21f   : > { %v3718_v17 = vadd.f32 %v3717_v59, %v3687_v15  ;;  %v3756_v24 = vmul.f32 %v3687_v15, %v3687_v15  ;;  %v3786_v12 = vadd.f32 %v3785_v37, %v3755_v56  ;;  %3876 = vst [vmem:[%s6814_s12 + $0xf1] sm:$0xff] %v3687_v15  ;;  %v3688_v38 = vadd.f32 %v5161_v40, %v6871_v52 }
 0x220   : > { %3879 = vst [vmem:[%s6814_s12 + $0x111] sm:$0xff] %v3690_v5  ;;  %v5120_v27 = vpop.f32.mrb[28].mxu0  ;;  %v3759_v41 = vmul.f32 %v3690_v5, %v3690_v5 }
 0x221   : > { %v3787_v30 = vadd.f32 %v3786_v12, %v3756_v24  ;;  %v3719_v8 = vadd.f32 %v3718_v17, %v3688_v38  ;;  %v3757_v3 = vmul.f32 %v3688_v38, %v3688_v38  ;;  %3877 = vst [vmem:[%s6814_s12 + $0xf9] sm:$0xff] %v3688_v38  ;;  %v4924_v22 = vpop.f32.mrb[24].mxu1  ;;  %v3613_v31 = vpop.f32.mrb[29].mxu0 }
 0x222   : > { %v5162_v55 = vadd.f32 %v5116_v43, %v4924_v22  ;;  %v2540_v54 = vpop.f32.mrb[25].mxu1  ;;  %v5121_v25 = vpop.f32.mrb[30].mxu0 }
 0x223   : > { %v3720_v19 = vadd.f32 %v3719_v8, %v3689_v9  ;;  %v3788_v61 = vadd.f32 %v3787_v30, %v3757_v3  ;;  %v5163_v57 = vadd.f32 %v3597_v29, %v2540_v54  ;;  %v4925_v63 = vpop.f32.mrb[26].mxu1  ;;  %v3616_v48 = vpop.f32.mrb[31].mxu0 }
 0x224   : > { %v3693_v42 = vadd.f32 %v5162_v55, %v6871_v52  ;;  %v5164_v45 = vadd.f32 %v5117_v26, %v4925_v63  ;;  %v2543_v23 = vpop.f32.mrb[27].mxu1 }
 0x225   : > { %v3789_v6 = vadd.f32 %v3788_v61, %v3758_v47  ;;  %v3691_v18 = vadd.f32 %v5163_v57, %v6871_v52  ;;  %v3721_v50 = vadd.f32 %v3720_v19, %v3690_v5  ;;  %v5165_v0 = vadd.f32 %v3600_v21, %v2543_v23 }
 0x226   : > { %3882 = vst [vmem:[%s6814_s12 + $0x139] sm:$0xff] %v3693_v42  ;;  %v3694_v35 = vadd.f32 %v5164_v45, %v6871_v52  ;;  %v3762_v34 = vmul.f32 %v3693_v42, %v3693_v42 }
 0x227   : > { %v3722_v53 = vadd.f32 %v3721_v50, %v3691_v18  ;;  %v3760_v28 = vmul.f32 %v3691_v18, %v3691_v18  ;;  %v3790_v11 = vadd.f32 %v3789_v6, %v3759_v41  ;;  %3880 = vst [vmem:[%s6814_s12 + $0x121] sm:$0xff] %v3691_v18  ;;  %v3692_v7 = vadd.f32 %v5165_v0, %v6871_v52 }
 0x228   : > { %3883 = vst [vmem:[%s6814_s12 + $0x141] sm:$0xff] %v3694_v35  ;;  %v3763_v62 = vmul.f32 %v3694_v35, %v3694_v35 }
 0x229   : > { %v3791_v2 = vadd.f32 %v3790_v11, %v3760_v28  ;;  %v3723_v4 = vadd.f32 %v3722_v53, %v3692_v7  ;;  %v3761_v49 = vmul.f32 %v3692_v7, %v3692_v7  ;;  %3881 = vst [vmem:[%s6814_s12 + $0x129] sm:$0xff] %v3692_v7  ;;  %v4928_v46 = vpop.f32.mrb[28].mxu1 }
 0x22a   : > { %v5166_v44 = vadd.f32 %v5120_v27, %v4928_v46  ;;  %v2556_v10 = vpop.f32.mrb[29].mxu1 }
 0x22b   : > { %v3724_v43 = vadd.f32 %v3723_v4, %v3693_v42  ;;  %v3792_v20 = vadd.f32 %v3791_v2, %v3761_v49  ;;  %v5167_v33 = vadd.f32 %v3613_v31, %v2556_v10  ;;  %v4929_v51 = vpop.f32.mrb[30].mxu1 }
 0x22c   : > { %v3697_v29 = vadd.f32 %v5166_v44, %v6871_v52  ;;  %v5168_v16 = vadd.f32 %v5121_v25, %v4929_v51  ;;  %v2559_v58 = vpop.f32.mrb[31].mxu1 }
 0x22d   : > { %v3793_v26 = vadd.f32 %v3792_v20, %v3762_v34  ;;  %v3695_v32 = vadd.f32 %v5167_v33, %v6871_v52  ;;  %v3725_v60 = vadd.f32 %v3724_v43, %v3694_v35  ;;  %v5169_v39 = vadd.f32 %v3616_v48, %v2559_v58 }
 0x22e   : > { %3886 = vst [vmem:[%s6814_s12 + $0x169] sm:$0xff] %v3697_v29  ;;  %v3698_v13 = vadd.f32 %v5168_v16, %v6871_v52  ;;  %v3766_v15 = vmul.f32 %v3697_v29, %v3697_v29 }
 0x22f   : > { %v3726_v1 = vadd.f32 %v3725_v60, %v3695_v32  ;;  %v3764_v21 = vmul.f32 %v3695_v32, %v3695_v32  ;;  %v3794_v56 = vadd.f32 %v3793_v26, %v3763_v62  ;;  %3884 = vst [vmem:[%s6814_s12 + $0x151] sm:$0xff] %v3695_v32  ;;  %v3696_v9 = vadd.f32 %v5169_v39, %v6871_v52 }
 0x230   : > { %3887 = vst [vmem:[%s6814_s12 + $0x171] sm:$0xff] %v3698_v13  ;;  %v3767_v5 = vmul.f32 %v3698_v13, %v3698_v13 }
 0x231   : > { %v3795_v36 = vadd.f32 %v3794_v56, %v3764_v21  ;;  %v3727_v14 = vadd.f32 %v3726_v1, %v3696_v9  ;;  %v3765_v37 = vmul.f32 %v3696_v9, %v3696_v9  ;;  %3885 = vst [vmem:[%s6814_s12 + $0x159] sm:$0xff] %v3696_v9 }
 0x233   : > { %v3728_v59 = vadd.f32 %v3727_v14, %v3697_v29  ;;  %v3796_v40 = vadd.f32 %v3795_v36, %v3765_v37 }
 0x235   : > { %v3729_v17 = vadd.f32 %v3728_v59, %v3698_v13  ;;  %v3797_v24 = vadd.f32 %v3796_v40, %v3766_v15 }
 0x237   : > { %v3730_v12 = vrot.slane %v3729_v17, 4  ;;  %v3798_v38 = vadd.f32 %v3797_v24, %v3767_v5 }
 0x239   : > { %v3731_v27 = vadd.f32 %v3730_v12, %v3729_v17  ;;  %v3799_v30 = vrot.slane %v3798_v38, 4 }
 0x23b   : > { %v3732_v8 = vrot.slane %v3731_v27, 2  ;;  %v3800_v3 = vadd.f32 %v3799_v30, %v3798_v38 }
 0x23d   : > { %v3733_v22 = vadd.f32 %v3732_v8, %v3731_v27  ;;  %v3801_v52 = vrot.slane %v3800_v3, 2 }
 0x23f   : > { %v3734_v31 = vrot.slane %v3733_v22, 1  ;;  %v3802_v55 = vadd.f32 %v3801_v52, %v3800_v3 }
 0x241   : > { %v3803_v54 = vrot.slane %v3802_v55, 1  ;;  %v3735_v25 = vadd.f32 %v3734_v31, %v3733_v22 }
 0x243   : > { %v3804_v47 = vadd.f32 %v3803_v54, %v3802_v55 }
 0x245   : > { %v3806_v19 = vsel %vm3805_vm6, %v3735_v25, %v3804_v47 }
 0x246   : > { %3807 = vst [vmem:[%s546_s17] sm:$0x3] %v3806_v19 }
 0x247 PF: > { %s19_s27 = sadd.s32 1, %s5527_s27   ;;  %s7105_s26 = smov %s5523_s2 }
 0x248   : > { %p16_p5 = scmp.ge.s32.totalorder %s19_s27, 4   ;;  %s7106_s2 = smov %s7108_s28 }
 0x24a   :  { %18 = sbr.rel (!%p16_p5) target bundleno = 2 (0x2), region = 110 }

// kernel: up_forward.3
= control target key start
LH: loop header
LB: loop body
LE: loop exit
PB: predicated region body
PF: predicated region fallthrough
CT: control target
= control target key end

     0   :  { %s5467_s21 = smov 0   ;;  %s5469_s0 = smov 0   ;;  %s6536_s0 = inlined_call_operand.vmem [shape: bf16[2,16,18,128], index: 0, kind: input, shape index: {}, may-alias: {0,1,2}]   ;;  %s6537_s1 = inlined_call_operand.vmem [shape: bf16[2,16,18,128], index: 1, kind: input, shape index: {}, may-alias: {0,1,2}]   ;;  %s6538_s2 = inlined_call_operand.vmem [shape: bf16[2,16,18,128], index: 2, kind: input, shape index: {}, may-alias: {0,1,2}]   ;;  %s6539_s3 = inlined_call_operand.vmem [shape: bf16[3,3,128,128], index: 3, kind: input, shape index: {}]   ;;  %s6540_s4 = inlined_call_operand.vmem [shape: f32[1,128], index: 4, kind: input, shape index: {}]   ;;  %s6541_s5 = inlined_call_operand.vmem [shape: f32[2,16,18,128], index: 5, kind: output, shape index: {0}]   ;;  %s6542_s6 = inlined_call_operand.vmem [shape: f32[2,1,2,128], index: 6, kind: output, shape index: {1}]  }
   0x1   :  { %s5471_s22 = smov 0  }
   0x2 LB: > { %s36_s2 = sadd.s32 1, %s5422_s0  ;;  %p3947_p0 = scmp.ge.s32.totalorder %s5426_s22, 1  ;;  %s5426_s22 = sphi %s5471_s22, %s17_s22   ;;  %s5422_s0 = sphi %s5469_s0, %s6573_s0   ;;  %s5418_s21 = sphi %s5467_s21, %s6572_s21  }
   0x3   : > { %p38_p1 = scmp.ge.s32.totalorder %s36_s2, 2  ;;  %p331_p2 = scmp.lt.s32.totalorder %s5426_s22, 3 }
   0x5   : > { %s6575_s2 = smov (%p38_p1, %s36_s2), 0  ;;  %p332_p3 = pnand %p3947_p0, %p331_p2 }
   0x7   : > { %335 = sbr.rel (%p332_p3) target bundleno = 569 (0x239), region = 40 }
   0xe   : > { %v5292_v0 = vld [vmem:[%s6539_s3 + $0x40] sm:$0xff]   ;;  %v5428_v2 = vmov 0   ;;  %v5294_v4 = vld [vmem:[%s6539_s3 + $0x48] sm:$0xff]   ;;  %p435_p4 = scmp.lt.s32.totalorder %s5418_s21, 1  ;;  %v5296_v6 = vld [vmem:[%s6539_s3 + $0x50] sm:$0xff]   ;;  %v621_v7 = vlaneseq  ;;  %vm1575_vm3 = vcmask 1046528  }
   0xf   : > { %v5293_v1 = vld [vmem:[%s6539_s3 + $0x100] sm:$0xff]   ;;  %v5491_v3 = vrot.slane %v5428_v2, 1  ;;  %4558 = vmatprep.subr.bf16.mxu1 %v5292_v0  ;;  %v5295_v5 = vld [vmem:[%s6539_s3 + $0x108] sm:$0xff]   ;;  %v5297_v8 = vld [vmem:[%s6539_s3 + $0x110] sm:$0xff]   ;;  %vm899_vm2 = vsmask.f32 7424 }
  0x10   : > { %4750 = vmatprep.subr.bf16.mxu0 %v5293_v1  ;;  %4559 = vmatpush3.bf16.msra.mxu1 %v5292_v0  ;;  %s6577_s21 = smov (!%p435_p4, %s5418_s21), 1  ;;  %v5298_v9 = vld [vmem:[%s6539_s3 + $0x58] sm:$0xff]   ;;  %v5511_v10 = vshrl.u32 %v621_v7, 7  ;;  %v5300_v12 = vld [vmem:[%s6539_s3 + $0x60] sm:$0xff]   ;;  %v5302_v15 = vld [vmem:[%s6539_s3 + $0x68] sm:$0xff]   ;;  %vm5430_vm4 = vmmov 1  }
  0x11   : > { %6554 = vst [vmem:[#allocation2_spill] sm:$0xff] %v5491_v3  ;;  %4751 = vmatpush3.bf16.msra.mxu0 %v5293_v1  ;;  %4560 = vmatprep.subr.bf16.mxu1 %v5294_v4  ;;  %v5299_v11 = vld [vmem:[%s6539_s3 + $0x118] sm:$0xff]   ;;  %s5262_s15 = smul.u32 192, %s6577_s21  ;;  %v5301_v14 = vld [vmem:[%s6539_s3 + $0x120] sm:$0xff]   ;;  %v5303_v16 = vld [vmem:[%s6539_s3 + $0x128] sm:$0xff]   ;;  %s3952_s17 = sshll.u32 %s6577_s21, 1 }
  0x12   : > { %4752 = vmatprep.subr.bf16.mxu0 %v5295_v5  ;;  %4574 = vmatprep.mubr.bf16.mxu1 %v5491_v3  ;;  %v5521_v13 = vadd.s32 16, %v5511_v10  ;;  %vm679_vm0 = vcmp.ge.s32.totalorder %v5511_v10, 1  ;;  %v5304_v24 = vld [vmem:[%s6539_s3 + $0x70] sm:$0xff]   ;;  %v5306_v38 = vld [vmem:[%s6539_s3 + $0x78] sm:$0xff]   ;;  %v5349_v10 = vld [vmem:[%s6539_s3 + $0xa8] sm:$0xff]   ;;  %s5263_s11 = smul.u32 384, %s6577_s21  ;;  %s492_s20 = scalar_lea.vmem %s6542_s6, %s3952_s17 }
  0x13   : > { %s5529_s24 = scalar_lea.vmem %s6537_s1, %s5262_s15  ;;  %v5305_v33 = vld [vmem:[%s6539_s3 + $0x130] sm:$0xff]   ;;  %v5307_v43 = vld [vmem:[%s6539_s3 + $0x138] sm:$0xff]   ;;  %vm6014_vm5 = vmpackc.low %vm5430_vm4, %vm679_vm0  ;;  %vm3629_vm6 = vcmask 1040384  }
  0x14   : > { %4561 = vmatpush3.bf16.msra.mxu1 %v5294_v4  ;;  %v5538_v17 = vld [vmem:[%s5529_s24] sm:$0xff]   ;;  %v499_v18 = vld [vmem:[%s5529_s24 + $0x8] sm:$0x1]  ;;  %vm738_vm1 = vcmp.le.s32.totalorder %v5521_v13, 16  ;;  %v5546_v22 = vld [vmem:[%s5529_s24 + $0xc] sm:$0xff]   ;;  %s6386_s14 = scalar_lea.vmem %s6541_s5, %s5263_s11 }
  0x15   : > { %4753 = vmatpush3.bf16.msra.mxu0 %v5295_v5  ;;  %4562 = vmatprep.subr.bf16.mxu1 %v5296_v6  ;;  %v551_v19 = vunpack.c.l.bf16 %v5538_v17  ;;  %v552_v20 = vunpack.c.h.bf16 %v5538_v17  ;;  %v553_v21 = vunpack.c.l.bf16 %v499_v18  ;;  %v502_v23 = vld [vmem:[%s5529_s24 + $0x14] sm:$0x1]  ;;  %v554_v27 = vunpack.c.l.bf16 %v5546_v22  ;;  %v5563_v32 = vld [vmem:[%s5529_s24 + $0x18] sm:$0xff]   ;;  %v505_v35 = vld [vmem:[%s5529_s24 + $0x20] sm:$0x1] }
  0x16   : > { %4754 = vmatprep.subr.bf16.mxu0 %v5297_v8  ;;  %v555_v28 = vunpack.c.h.bf16 %v5546_v22  ;;  %v556_v31 = vunpack.c.l.bf16 %v502_v23  ;;  %v557_v36 = vunpack.c.l.bf16 %v5563_v32  ;;  %v558_v37 = vunpack.c.h.bf16 %v5563_v32  ;;  %v5591_v48 = vld [vmem:[%s5529_s24 + $0x24] sm:$0xff]   ;;  %v508_v52 = vld [vmem:[%s5529_s24 + $0x2c] sm:$0x1]  ;;  %v5607_v62 = vld [vmem:[%s5529_s24 + $0x30] sm:$0xff]  }
  0x17   : > { %v796_v25 = vsel %vm679_vm0, %v551_v19, 0.0  ;;  %v798_v26 = vsel %vm738_vm1, %v553_v21, 0.0  ;;  %v799_v34 = vsel %vm679_vm0, %v554_v27, 0.0  ;;  %v559_v46 = vunpack.c.l.bf16 %v505_v35  ;;  %v511_v4 = vld [vmem:[%s5529_s24 + $0x38] sm:$0x1]  ;;  %v5627_v18 = vld [vmem:[%s5529_s24 + $0x3c] sm:$0xff]  }
  0x18   : > { %4563 = vmatpush3.bf16.msra.mxu1 %v5296_v6  ;;  %v5558_v29 = vpack.c.bf16 %v552_v20, %v796_v25  ;;  %v5560_v30 = vpack.c.bf16 %v798_v26, %v798_v26  ;;  %v801_v42 = vsel %vm738_vm1, %v556_v31, 0.0  ;;  %v5584_v44 = vpack.c.bf16 %v555_v28, %v799_v34  ;;  %v5309_v6 = vld [vmem:[%s6539_s3] sm:$0xff]   ;;  %v5311_v31 = vld [vmem:[%s6539_s3 + $0x148] sm:$0xff]   ;;  %v535_v3 = vld [vmem:[%s5529_s24 + $0x98] sm:$0x1] }
  0x19   : > { %4755 = vmatpush3.bf16.msra.mxu0 %v5297_v8  ;;  %4564 = vmatprep.subr.bf16.mxu1 %v5298_v9  ;;  %v5586_v45 = vpack.c.bf16 %v801_v42, %v801_v42  ;;  %v802_v47 = vsel %vm679_vm0, %v557_v36, 0.0  ;;  %v560_v53 = vunpack.c.l.bf16 %v5591_v48  ;;  %v804_v57 = vsel %vm738_vm1, %v559_v46, 0.0  ;;  %v514_v28 = vld [vmem:[%s5529_s24 + $0x44] sm:$0x1]  ;;  %v5657_v42 = vld [vmem:[%s5529_s24 + $0x48] sm:$0xff]  }
  0x1a   : > { %4756 = vmatprep.subr.bf16.mxu0 %v5299_v11  ;;  %v913_v39 = vshrl.u32 %v5558_v29, 16  ;;  %v915_v40 = vshll.u32 %v5558_v29, 16  ;;  %v920_v41 = vshll.u32 %v5560_v30, 16  ;;  %v5593_v51 = vpack.c.bf16 %v558_v37, %v802_v47  ;;  %v5312_v37 = vld [vmem:[%s6539_s3 + $0x8] sm:$0xff]  }
  0x1b   : > { %v925_v54 = vshrl.u32 %v5584_v44, 16  ;;  %v927_v55 = vshll.u32 %v5584_v44, 16  ;;  %v932_v56 = vshll.u32 %v5586_v45, 16  ;;  %v5602_v59 = vpack.c.bf16 %v804_v57, %v804_v57 }
  0x1c   : > { %4565 = vmatpush3.bf16.msra.mxu1 %v5298_v9  ;;  %v917_v49 = vrot.slane %v915_v40, 1  ;;  %v922_v50 = vrot.slane %v920_v41, 1  ;;  %v937_v60 = vshrl.u32 %v5593_v51, 16  ;;  %v939_v61 = vshll.u32 %v5593_v51, 16 }
  0x1d   : > { %4757 = vmatpush3.bf16.msra.mxu0 %v5299_v11  ;;  %4566 = vmatprep.subr.bf16.mxu1 %v5300_v12  ;;  %v929_v63 = vrot.slane %v927_v55, 1  ;;  %v934_v0 = vrot.slane %v932_v56, 1  ;;  %v561_v1 = vunpack.c.h.bf16 %v5591_v48  ;;  %v562_v2 = vunpack.c.l.bf16 %v508_v52 }
  0x1e   : > { %4758 = vmatprep.subr.bf16.mxu0 %v5301_v14  ;;  %v918_v58 = vor.u32 %v917_v49, %v913_v39  ;;  %v941_v7 = vrot.slane %v939_v61, 1  ;;  %v944_v8 = vshll.u32 %v5602_v59, 16  ;;  %v805_v9 = vsel %vm679_vm0, %v560_v53, 0.0  ;;  %v5313_v53 = vld [vmem:[%s6539_s3 + $0x150] sm:$0xff]  }
  0x1f   : > { %v930_v11 = vor.u32 %v929_v63, %v925_v54  ;;  %v564_v23 = vunpack.c.h.bf16 %v5607_v62  ;;  %v565_v27 = vunpack.c.l.bf16 %v511_v4  ;;  %v566_v36 = vunpack.c.l.bf16 %v5627_v18 }
  0x20   : > { %4567 = vmatpush3.bf16.msra.mxu1 %v5300_v12  ;;  %v923_v5 = vsel %vm899_vm2, %v918_v58, %v922_v50  ;;  %v5310_v12 = vld [vmem:[%s6539_s3 + $0x140] sm:$0xff]   ;;  %v942_v19 = vor.u32 %v941_v7, %v937_v60  ;;  %v946_v20 = vrot.slane %v944_v8, 1  ;;  %v567_v41 = vunpack.c.h.bf16 %v5627_v18  ;;  %v517_v50 = vld [vmem:[%s5529_s24 + $0x50] sm:$0x1] }
  0x21   : > { %4759 = vmatpush3.bf16.msra.mxu0 %v5301_v14  ;;  %4568 = vmatprep.subr.bf16.mxu1 %v5302_v15  ;;  %v807_v14 = vsel %vm738_vm1, %v562_v2, 0.0  ;;  %v810_v39 = vsel %vm738_vm1, %v565_v27, 0.0  ;;  %v568_v47 = vunpack.c.l.bf16 %v514_v28  ;;  %v811_v49 = vsel %vm679_vm0, %v566_v36, 0.0  ;;  %v5315_v58 = vld [vmem:[%s6539_s3 + $0x10] sm:$0xff]   ;;  %v523_v36 = vld [vmem:[%s5529_s24 + $0x68] sm:$0x1] }
  0x22   : > { %4760 = vmatprep.subr.bf16.mxu0 %v5303_v16  ;;  %4766 = vmatprep.mubr.bf16.mxu0 %v923_v5  ;;  %v5629_v21 = vpack.c.bf16 %v807_v14, %v807_v14  ;;  %v5659_v46 = vpack.c.bf16 %v810_v39, %v810_v39  ;;  %v5670_v56 = vpack.c.bf16 %v567_v41, %v811_v49  ;;  %v569_v61 = vunpack.c.l.bf16 %v5657_v42 }
  0x23   : > { %v813_v60 = vsel %vm738_vm1, %v568_v47, 0.0  ;;  %v570_v63 = vunpack.c.h.bf16 %v5657_v42 }
  0x24   : > { %4569 = vmatpush3.bf16.msra.mxu1 %v5302_v15  ;;  %v5623_v15 = vpack.c.bf16 %v561_v1, %v805_v9  ;;  %v956_v34 = vshll.u32 %v5629_v21, 16  ;;  %v968_v57 = vshll.u32 %v5659_v46, 16  ;;  %v5688_v4 = vpack.c.bf16 %v813_v60, %v813_v60 }
  0x25   : > { %4761 = vmatpush3.bf16.msra.mxu0 %v5303_v16  ;;  %4570 = vmatprep.subr.bf16.mxu1 %v5304_v24  ;;  %v563_v16 = vunpack.c.l.bf16 %v5607_v62  ;;  %v975_v8 = vshll.u32 %v5670_v56, 16  ;;  %v571_v9 = vunpack.c.l.bf16 %v517_v50 }
  0x26   : > { %4762 = vmatprep.subr.bf16.mxu0 %v5305_v33  ;;  %v949_v25 = vshrl.u32 %v5623_v15, 16  ;;  %v951_v26 = vshll.u32 %v5623_v15, 16  ;;  %v970_v7 = vrot.slane %v968_v57, 1  ;;  %v980_v14 = vshll.u32 %v5688_v4, 16  ;;  %v5316_v57 = vld [vmem:[%s6539_s3 + $0x160] sm:$0xff]  }
  0x27   : > { %v808_v35 = vsel %vm679_vm0, %v563_v16, 0.0 }
  0x28   : > { %4571 = vmatpush3.bf16.msra.mxu1 %v5304_v24  ;;  %v5633_v24 = vsel %vm899_vm2, %v930_v11, %v934_v0  ;;  %v5653_v40 = vpack.c.bf16 %v564_v23, %v808_v35  ;;  %v5682_v0 = vld [vmem:[%s5529_s24 + $0x54] sm:$0xff]   ;;  %v814_v11 = vsel %vm679_vm0, %v569_v61, 0.0  ;;  %v977_v23 = vrot.slane %v975_v8, 1  ;;  %v5714_v35 = vld [vmem:[%s5529_s24 + $0x60] sm:$0xff]   ;;  %v5744_v8 = vld [vmem:[%s5529_s24 + $0x6c] sm:$0xff]  }
  0x29   : > { %4763 = vmatpush3.bf16.msra.mxu0 %v5305_v33  ;;  %4572 = vmatprep.subr.bf16.mxu1 %v5306_v38  ;;  %v5642_v33 = vsel %vm899_vm2, %v942_v19, %v946_v20  ;;  %v5696_v16 = vpack.c.bf16 %v570_v63, %v814_v11  ;;  %v572_v19 = vunpack.c.l.bf16 %v5682_v0  ;;  %v5314_v20 = vld [vmem:[%s6539_s3 + $0x158] sm:$0xff]   ;;  %v573_v27 = vunpack.c.h.bf16 %v5682_v0  ;;  %v526_v63 = vld [vmem:[%s5529_s24 + $0x74] sm:$0x1] }
  0x2a   : > { %4764 = vmatprep.subr.bf16.mxu0 %v5307_v43  ;;  %v961_v54 = vshrl.u32 %v5653_v40, 16  ;;  %v963_v55 = vshll.u32 %v5653_v40, 16  ;;  %v1579_v11 = vrot.slane %v5558_v29, 1  ;;  %v5317_v29 = vld [vmem:[%s6539_s3 + $0x168] sm:$0xff]  }
  0x2b   : > { %v817_v39 = vsel %vm679_vm0, %v572_v19, 0.0  ;;  %v1580_v19 = vrot.slane %v5560_v30, 1  ;;  %v579_v30 = vunpack.c.h.bf16 %v5744_v8 }
  0x2c   : > { %4573 = vmatpush3.bf16.msra.mxu1 %v5306_v38  ;;  %v953_v38 = vrot.slane %v951_v26, 1  ;;  %v965_v2 = vrot.slane %v963_v55, 1  ;;  %v5318_v26 = vld [vmem:[%s6539_s3 + $0x18] sm:$0xff]   ;;  %v5727_v47 = vpack.c.bf16 %v573_v27, %v817_v39  ;;  %v575_v55 = vunpack.c.l.bf16 %v5714_v35 }
  0x2d   : > { %4765 = vmatpush3.bf16.msra.mxu0 %v5307_v43  ;;  %4606 = vmatprep.subr.bf16.mxu1 %v5309_v6  ;;  %v958_v43 = vrot.slane %v956_v34, 1 }
  0x2e   : > { %4798 = vmatprep.subr.bf16.mxu0 %v5310_v12  ;;  %v954_v52 = vor.u32 %v953_v38, %v949_v25  ;;  %v816_v25 = vsel %vm738_vm1, %v571_v9, 0.0  ;;  %v987_v38 = vshll.u32 %v5696_v16, 16  ;;  %v999_v61 = vshll.u32 %v5727_v47, 16 }
  0x2f   : > { %4575 = vmatmul.mubr.bf16.vlgmr.msra.gmra.mrb[0].mxu1 %v923_v5  ;;  %v973_v5 = vshrl.u32 %v5670_v56, 16  ;;  %v997_v9 = vshrl.u32 %v5727_v47, 16 }
  0x30   : > { %4767 = vmatmul.mubr.bf16.vlgmr.msra.gmra.mrb[0].mxu0 %v5633_v24  ;;  %4607 = vmatpush3.bf16.msra.mxu1 %v5309_v6  ;;  %v5686_v1 = vsel %vm899_vm2, %v954_v52, %v958_v43  ;;  %v520_v6 = vld [vmem:[%s5529_s24 + $0x5c] sm:$0x1]  ;;  %v982_v52 = vrot.slane %v980_v14, 1 }
  0x31   : > { %4799 = vmatpush3.bf16.msra.mxu0 %v5310_v12  ;;  %4578 = vmatprep.mubr.bf16.mxu1 %v5633_v24  ;;  %v966_v12 = vor.u32 %v965_v2, %v961_v54  ;;  %v574_v28 = vunpack.c.l.bf16 %v520_v6  ;;  %v978_v50 = vor.u32 %v977_v23, %v973_v5  ;;  %v989_v54 = vrot.slane %v987_v38, 1 }
  0x32   : > { %4800 = vmatprep.subr.bf16.mxu0 %v5311_v31  ;;  %4770 = vmatprep.mubr.bf16.mxu0 %v5642_v33  ;;  %v576_v6 = vunpack.c.h.bf16 %v5714_v35 }
  0x33   : > { %4608 = vmatprep.subr.bf16.mxu1 %v5312_v37  ;;  %v5709_v34 = vsel %vm899_vm2, %v966_v12, %v970_v7  ;;  %v819_v41 = vsel %vm738_vm1, %v574_v28, 0.0  ;;  %v577_v7 = vunpack.c.l.bf16 %v523_v36  ;;  %v820_v12 = vsel %vm679_vm0, %v575_v55, 0.0  ;;  %v5769_v36 = vld [vmem:[%s5529_s24 + $0x78] sm:$0xff]  }
  0x34   : > { %4609 = vmatpush3.bf16.msra.mxu1 %v5312_v37  ;;  %6555 = vst [vmem:[#allocation3_spill] sm:$0xff] %v5709_v34  ;;  %v985_v37 = vshrl.u32 %v5696_v16, 16  ;;  %v5729_v49 = vpack.c.bf16 %v819_v41, %v819_v41  ;;  %v5751_v14 = vsel %vm899_vm2, %v978_v50, %v982_v52  ;;  %v578_v28 = vunpack.c.l.bf16 %v5744_v8  ;;  %v529_v41 = vld [vmem:[%s5529_s24 + $0x80] sm:$0x1]  ;;  %v5319_v50 = vld [vmem:[%s6539_s3 + $0x170] sm:$0xff]  }
  0x35   : > { %4801 = vmatpush3.bf16.msra.mxu0 %v5311_v31  ;;  %4610 = vmatprep.subr.bf16.mxu1 %v5315_v58  ;;  %v5711_v31 = vpack.c.bf16 %v816_v25, %v816_v25  ;;  %6556 = vst [vmem:[#allocation4_spill] sm:$0xff] %v5751_v14  ;;  %v822_v23 = vsel %vm738_vm1, %v577_v7, 0.0  ;;  %v5756_v25 = vpack.c.bf16 %v576_v6, %v820_v12  ;;  %v1582_v52 = vrot.slane %v5584_v44, 1  ;;  %v5325_v7 = vld [vmem:[%s6539_s3 + $0x30] sm:$0xff]  }
  0x36   : > { %4802 = vmatprep.subr.bf16.mxu0 %v5313_v53  ;;  %v990_v2 = vor.u32 %v989_v54, %v985_v37  ;;  %v1004_v5 = vshll.u32 %v5729_v49, 16  ;;  %v5323_v37 = vld [vmem:[%s6539_s3 + $0x28] sm:$0xff]   ;;  %v1583_v54 = vrot.slane %v5586_v45, 1  ;;  %v823_v55 = vsel %vm679_vm0, %v578_v28, 0.0 }
  0x37   : > { %4579 = vmatmul.mubr.bf16.gmra.mrb[4].mxu1 %v5642_v33  ;;  %v992_v43 = vshll.u32 %v5711_v31, 16  ;;  %v1011_v39 = vshll.u32 %v5756_v25, 16  ;;  %v1585_v45 = vrot.slane %v5593_v51, 1  ;;  %v582_v6 = vunpack.c.h.bf16 %v5769_v36 }
  0x38   : > { %4771 = vmatmul.mubr.bf16.gmra.mrb[4].mxu0 %v5686_v1  ;;  %4582 = vmatprep.mubr.bf16.mxu1 %v5686_v1  ;;  %v1006_v38 = vrot.slane %v1004_v5, 1  ;;  %v5794_v5 = vld [vmem:[%s5529_s24 + $0x84] sm:$0xff]   ;;  %v1586_v51 = vrot.slane %v5602_v59, 1  ;;  %v583_v28 = vunpack.c.l.bf16 %v529_v41  ;;  %v5826_v59 = vsel %vm1575_vm3, %v1582_v52, %v1583_v54 }
  0x39   : > { %4803 = vmatpush3.bf16.msra.mxu0 %v5313_v53  ;;  %4774 = vmatprep.mubr.bf16.mxu0 %v5709_v34  ;;  %v994_v60 = vrot.slane %v992_v43, 1  ;;  %v5321_v53 = vld [vmem:[%s6539_s3 + $0x20] sm:$0xff]   ;;  %v585_v41 = vunpack.c.h.bf16 %v5794_v5 }
  0x3a   : > { %4804 = vmatprep.subr.bf16.mxu0 %v5314_v20  ;;  %4611 = vmatpush3.bf16.msra.mxu1 %v5315_v58  ;;  %v1001_v58 = vrot.slane %v999_v61, 1  ;;  %v5842_v54 = vsel %vm1575_vm3, %v1585_v45, %v1586_v51  ;;  %v5322_v45 = vld [vmem:[%s6539_s3 + $0x180] sm:$0xff]  }
  0x3b   : > { %4612 = vmatprep.subr.bf16.mxu1 %v5318_v26  ;;  %v5762_v27 = vsel %vm899_vm2, %v990_v2, %v994_v60  ;;  %v1009_v60 = vshrl.u32 %v5756_v25, 16  ;;  %v5791_v2 = vpack.c.bf16 %v579_v30, %v823_v55 }
  0x3c   : > { %6557 = vst [vmem:[#allocation5_spill] sm:$0xff] %v5762_v27  ;;  %v1002_v43 = vor.u32 %v1001_v58, %v997_v9  ;;  %v5805_v9 = vsel %vm1575_vm3, %v1579_v11, %v1580_v19  ;;  %v1013_v58 = vrot.slane %v1011_v39, 1  ;;  %v5320_v11 = vld [vmem:[%s6539_s3 + $0x178] sm:$0xff]  }
  0x3d   : > { %4805 = vmatpush3.bf16.msra.mxu0 %v5314_v20  ;;  %v5764_v20 = vpack.c.bf16 %v822_v23, %v822_v23  ;;  %v1023_v12 = vshll.u32 %v5791_v2, 16  ;;  %v1021_v19 = vshrl.u32 %v5791_v2, 16 }
  0x3e   : > { %4806 = vmatprep.subr.bf16.mxu0 %v5316_v57  ;;  %4613 = vmatpush3.bf16.msra.mxu1 %v5318_v26  ;;  %v580_v26 = vunpack.c.l.bf16 %v526_v63 }
  0x3f   : > { %4583 = vmatmul.mubr.bf16.gmra.mrb[8].mxu1 %v5709_v34  ;;  %4614 = vmatprep.subr.bf16.mxu1 %v5321_v53  ;;  %v1016_v61 = vshll.u32 %v5764_v20, 16  ;;  %v1025_v39 = vrot.slane %v1023_v12, 1  ;;  %v5324_v34 = vld [vmem:[%s6539_s3 + $0x188] sm:$0xff]  }
  0x40   : > { %4775 = vmatmul.mubr.bf16.gmra.mrb[8].mxu0 %v5751_v14  ;;  %4586 = vmatprep.mubr.bf16.mxu1 %v5751_v14  ;;  %v825_v63 = vsel %vm738_vm1, %v580_v26, 0.0  ;;  %v5814_v26 = vsel %vm899_vm2, %v1002_v43, %v1006_v38  ;;  %v584_v38 = vunpack.c.l.bf16 %v5794_v5  ;;  %v5327_v43 = vld [vmem:[%s6539_s3 + $0x38] sm:$0xff]  }
  0x41   : > { %4807 = vmatpush3.bf16.msra.mxu0 %v5316_v57  ;;  %4778 = vmatprep.mubr.bf16.mxu0 %v5762_v27  ;;  %v5796_v44 = vpack.c.bf16 %v825_v63, %v825_v63  ;;  %v581_v57 = vunpack.c.l.bf16 %v5769_v36  ;;  %6558 = vst [vmem:[#allocation6_spill] sm:$0xff] %v5814_v26  ;;  %v5823_v63 = vld [vmem:[%s5529_s24 + $0x90] sm:$0xff]  }
  0x42   : > { %4808 = vmatprep.subr.bf16.mxu0 %v5317_v29  ;;  %4615 = vmatpush3.bf16.msra.mxu1 %v5321_v53  ;;  %v532_v53 = vld [vmem:[%s5529_s24 + $0x8c] sm:$0x1]  ;;  %v588_v51 = vunpack.c.h.bf16 %v5823_v63 }
  0x43   : > { %4616 = vmatprep.subr.bf16.mxu1 %v5323_v37  ;;  %v1028_v23 = vshll.u32 %v5796_v44, 16  ;;  %v826_v30 = vsel %vm679_vm0, %v581_v57, 0.0  ;;  %v1014_v57 = vor.u32 %v1013_v58, %v1009_v60  ;;  %v1026_v60 = vor.u32 %v1025_v39, %v1021_v19 }
  0x44   : > { %v5820_v55 = vpack.c.bf16 %v582_v6, %v826_v30  ;;  %v1018_v6 = vrot.slane %v1016_v61, 1  ;;  %v829_v30 = vsel %vm679_vm0, %v584_v38, 0.0  ;;  %v1588_v39 = vrot.slane %v5623_v15, 1 }
  0x45   : > { %4809 = vmatpush3.bf16.msra.mxu0 %v5317_v29  ;;  %v828_v29 = vsel %vm738_vm1, %v583_v28, 0.0  ;;  %v586_v28 = vunpack.c.l.bf16 %v532_v53  ;;  %v1589_v38 = vrot.slane %v5629_v21, 1 }
  0x46   : > { %4810 = vmatprep.subr.bf16.mxu0 %v5319_v50  ;;  %4617 = vmatpush3.bf16.msra.mxu1 %v5323_v37  ;;  %v5836_v12 = vpack.c.bf16 %v828_v29, %v828_v29  ;;  %v1035_v52 = vshll.u32 %v5820_v55, 16  ;;  %v1030_v37 = vrot.slane %v1028_v23, 1  ;;  %v1033_v61 = vshrl.u32 %v5820_v55, 16 }
  0x47   : > { %4587 = vmatmul.mubr.bf16.gmra.mrb[12].mxu1 %v5762_v27  ;;  %4618 = vmatprep.subr.bf16.mxu1 %v5325_v7  ;;  %v5849_v29 = vpack.c.bf16 %v585_v41, %v829_v30  ;;  %v587_v23 = vunpack.c.l.bf16 %v5823_v63  ;;  %v5860_v19 = vsel %vm899_vm2, %v1014_v57, %v1018_v6  ;;  %v538_v30 = vld [vmem:[%s5529_s24 + $0xa4] sm:$0x1]  ;;  %v589_v6 = vunpack.c.l.bf16 %v535_v3 }
  0x48   : > { %4779 = vmatmul.mubr.bf16.gmra.mrb[12].mxu0 %v5814_v26  ;;  %4590 = vmatprep.mubr.bf16.mxu1 %v5814_v26  ;;  %v1037_v58 = vrot.slane %v1035_v52, 1  ;;  %v1040_v53 = vshll.u32 %v5836_v12, 16  ;;  %6559 = vst [vmem:[#allocation7_spill] sm:$0xff] %v5860_v19  ;;  %v5867_v52 = vld [vmem:[%s5529_s24 + $0x9c] sm:$0xff]   ;;  %v5880_v21 = vsel %vm899_vm2, %v1026_v60, %v1030_v37 }
  0x49   : > { %4811 = vmatpush3.bf16.msra.mxu0 %v5319_v50  ;;  %4814 = vmatprep.mubr.bf16.mxu0 %v5805_v9  ;;  %v831_v50 = vsel %vm738_vm1, %v586_v28, 0.0  ;;  %v5873_v28 = vld [vmem:[%s6539_s3 + $0x80] sm:$0xff]   ;;  %v1047_v57 = vshll.u32 %v5849_v29, 16  ;;  %v832_v15 = vsel %vm679_vm0, %v587_v23, 0.0  ;;  %6560 = vst [vmem:[#allocation8_spill] sm:$0xff] %v5880_v21  ;;  %v834_v23 = vsel %vm738_vm1, %v589_v6, 0.0 }
  0x4a   : > { %4812 = vmatprep.subr.bf16.mxu0 %v5320_v11  ;;  %4619 = vmatpush3.bf16.msra.mxu1 %v5325_v7  ;;  %v5864_v41 = vpack.c.bf16 %v831_v50, %v831_v50  ;;  %v1045_v7 = vshrl.u32 %v5849_v29, 16  ;;  %v1038_v50 = vor.u32 %v1037_v58, %v1033_v61  ;;  %v5883_v27 = vpack.c.bf16 %v588_v51, %v832_v15  ;;  %v5894_v61 = vld [vmem:[%s5529_s24 + $0xa8] sm:$0xff]   ;;  %v5326_v6 = vld [vmem:[%s6539_s3 + $0x190] sm:$0xff]  }
  0x4b   : > { %4620 = vmatprep.subr.bf16.mxu1 %v5327_v43  ;;  %v1042_v14 = vrot.slane %v1040_v53, 1  ;;  %v1049_v3 = vrot.slane %v1047_v57, 1  ;;  %v5899_v53 = vpack.c.bf16 %v834_v23, %v834_v23  ;;  %v591_v51 = vunpack.c.h.bf16 %v5867_v52 }
  0x4c   : > { %v1052_v26 = vshll.u32 %v5864_v41, 16  ;;  %v1059_v60 = vshll.u32 %v5883_v27, 16  ;;  %v1591_v57 = vrot.slane %v5653_v40, 1  ;;  %v1057_v40 = vshrl.u32 %v5883_v27, 16 }
  0x4d   : > { %4813 = vmatpush3.bf16.msra.mxu0 %v5320_v11  ;;  %v590_v11 = vunpack.c.l.bf16 %v5867_v52  ;;  %v1050_v58 = vor.u32 %v1049_v3, %v1045_v7  ;;  %v5913_v15 = vsel %vm899_vm2, %v1038_v50, %v1042_v14  ;;  %v1064_v14 = vshll.u32 %v5899_v53, 16 }
  0x4e   : > { %4846 = vmatprep.subr.bf16.mxu0 %v5322_v45  ;;  %4621 = vmatpush3.bf16.msra.mxu1 %v5327_v43  ;;  %v1054_v37 = vrot.slane %v1052_v26, 1  ;;  %v592_v43 = vunpack.c.l.bf16 %v538_v30  ;;  %v5904_v26 = vsel %vm1575_vm3, %v1588_v39, %v1589_v38  ;;  %6561 = vst [vmem:[#allocation9_spill] sm:$0xff] %v5913_v15  ;;  %v541_v38 = vld [vmem:[%s5529_s24 + $0xb0] sm:$0x1]  ;;  %v1061_v3 = vrot.slane %v1059_v60, 1 }
  0x4f   : > { %4591 = vmatmul.mubr.bf16.gmra.mrb[16].mxu1 %v5860_v19  ;;  %4654 = vmatprep.subr.bf16.mxu1 %v5873_v28  ;;  %v835_v7 = vsel %vm679_vm0, %v590_v11, 0.0  ;;  %v594_v50 = vunpack.c.h.bf16 %v5894_v61  ;;  %v5328_v19 = vld [vmem:[%s6539_s3 + $0x198] sm:$0xff]  }
  0x50   : > { %4815 = vmatmul.mubr.bf16.vlgmr.msra.gmra.mrb[0].mxu0 %v5826_v59  ;;  %4594 = vmatprep.mubr.bf16.mxu1 %v5880_v21  ;;  %v837_v30 = vsel %vm738_vm1, %v592_v43, 0.0  ;;  %v5918_v39 = vpack.c.bf16 %v591_v51, %v835_v7  ;;  %v593_v21 = vunpack.c.l.bf16 %v5894_v61  ;;  %v5926_v11 = vsel %vm899_vm2, %v1050_v58, %v1054_v37 }
  0x51   : > { %4847 = vmatpush3.bf16.msra.mxu0 %v5322_v45  ;;  %4818 = vmatprep.mubr.bf16.mxu0 %v5842_v54  ;;  %v1592_v45 = vrot.slane %v5659_v46, 1  ;;  %v5922_v23 = vpack.c.bf16 %v837_v30, %v837_v30  ;;  %v595_v7 = vunpack.c.l.bf16 %v541_v38 }
  0x52   : > { %4848 = vmatprep.subr.bf16.mxu0 %v5324_v34  ;;  %v1071_v46 = vshll.u32 %v5918_v39, 16  ;;  %v1069_v51 = vshrl.u32 %v5918_v39, 16  ;;  %v838_v60 = vsel %vm679_vm0, %v593_v21, 0.0  ;;  %v1062_v21 = vor.u32 %v1061_v3, %v1057_v40  ;;  %v5330_v40 = vld [vmem:[%s6539_s3 + $0x1a0] sm:$0xff]  }
  0x53   : > { %v1076_v43 = vshll.u32 %v5922_v23, 16  ;;  %v5936_v30 = vsel %vm1575_vm3, %v1591_v57, %v1592_v45  ;;  %v5938_v58 = vpack.c.bf16 %v594_v50, %v838_v60  ;;  %v840_v38 = vsel %vm738_vm1, %v595_v7, 0.0 }
  0x54   : > { %v1073_v37 = vrot.slane %v1071_v46, 1  ;;  %v1066_v57 = vrot.slane %v1064_v14, 1  ;;  %v5949_v45 = vpack.c.bf16 %v840_v38, %v840_v38  ;;  %v1595_v50 = vrot.slane %v5688_v4, 1 }
  0x55   : > { %4849 = vmatpush3.bf16.msra.mxu0 %v5324_v34  ;;  %v1594_v34 = vrot.slane %v5670_v56, 1  ;;  %v1083_v46 = vshll.u32 %v5938_v58, 16  ;;  %v1078_v56 = vrot.slane %v1076_v43, 1  ;;  %v1598_v7 = vrot.slane %v5711_v31, 1 }
  0x56   : > { %4850 = vmatprep.subr.bf16.mxu0 %v5326_v6  ;;  %v1074_v60 = vor.u32 %v1073_v37, %v1069_v51  ;;  %v1081_v3 = vshrl.u32 %v5938_v58, 16  ;;  %v5961_v14 = vsel %vm899_vm2, %v1062_v21, %v1066_v57  ;;  %v1088_v4 = vshll.u32 %v5949_v45, 16  ;;  %v5334_v51 = vld [vmem:[%s6539_s3 + $0x1a8] sm:$0xff]   ;;  %v5338_v57 = vld [vmem:[%s6539_s3 + $0x1b0] sm:$0xff]  }
  0x57   : > { %4595 = vmatmul.mubr.bf16.gmra.mrb[20].mxu1 %v5913_v15  ;;  %v1597_v15 = vrot.slane %v5696_v16, 1  ;;  %v1085_v38 = vrot.slane %v1083_v46, 1  ;;  %v1604_v21 = vrot.slane %v5764_v20, 1  ;;  %v1606_v20 = vrot.slane %v5791_v2, 1 }
  0x58   : > { %4819 = vmatmul.mubr.bf16.gmra.mrb[4].mxu0 %v5904_v26  ;;  %4598 = vmatprep.mubr.bf16.mxu1 %v5926_v11  ;;  %v5968_v16 = vsel %vm899_vm2, %v1074_v60, %v1078_v56  ;;  %v1090_v37 = vrot.slane %v1088_v4, 1  ;;  %v1607_v60 = vrot.slane %v5796_v44, 1  ;;  %v6007_v56 = vld [vmem:[%s6539_s3 + $0x1c0] sm:$0xff]   ;;  %v5337_v4 = vld [vmem:[%s6539_s3 + $0x90] sm:$0xff]  }
  0x59   : > { %4822 = vmatprep.mubr.bf16.mxu0 %v5936_v30  ;;  %4851 = vmatpush3.bf16.msra.mxu0 %v5326_v6  ;;  %v5965_v6 = vsel %vm1575_vm3, %v1594_v34, %v1595_v50  ;;  %v5971_v31 = vsel %vm1575_vm3, %v1597_v15, %v1598_v7  ;;  %v1086_v43 = vor.u32 %v1085_v38, %v1081_v3  ;;  %v1601_v15 = vrot.slane %v5729_v49, 1 }
  0x5a   : > { %4852 = vmatprep.subr.bf16.mxu0 %v5328_v19  ;;  %v1603_v34 = vrot.slane %v5756_v25, 1  ;;  %v5429_v25 = vmov 0.0|0.0   ;;  %v1609_v7 = vrot.slane %v5820_v55, 1  ;;  %v6019_v44 = vsel %vm1575_vm3, %v1606_v20, %v1607_v60  ;;  %v5333_v55 = vld [vmem:[%s6539_s3 + $0x88] sm:$0xff]  }
  0x5b   : > { %v5988_v46 = vsel %vm899_vm2, %v1086_v43, %v1090_v37  ;;  %v1613_v38 = vrot.slane %v5864_v41, 1  ;;  %v1616_v43 = vrot.slane %v5899_v53, 1  ;;  %v544_v37 = vld [vmem:[%s5529_s24 + $0xbc] sm:$0x1]  ;;  %v1618_v53 = vrot.slane %v5918_v39, 1  ;;  %v5345_v39 = vld [vmem:[%s6539_s3 + $0xa0] sm:$0xff]  }
  0x5c   : > { %v5997_v49 = vsel %vm1575_vm3, %v1603_v34, %v1604_v21  ;;  %v5341_v41 = vld [vmem:[%s6539_s3 + $0x98] sm:$0xff]   ;;  %v1619_v34 = vrot.slane %v5922_v23, 1 }
  0x5d   : > { %4853 = vmatpush3.bf16.msra.mxu0 %v5328_v19  ;;  %v1600_v19 = vrot.slane %v5727_v47, 1  ;;  %v5342_v47 = vld [vmem:[%s6539_s3 + $0x1b8] sm:$0xff]  }
  0x5e   : > { %4854 = vmatprep.subr.bf16.mxu0 %v5330_v40  ;;  %v6079_v23 = vsel %vm1575_vm3, %v1618_v53, %v1619_v34  ;;  %v5359_v53 = vld [vmem:[%s6539_s3 + $0xc0] sm:$0xff]   ;;  %v5350_v34 = vld [vmem:[%s6539_s3 + $0x1c8] sm:$0xff]  }
  0x5f   : > { %4599 = vmatmul.mubr.bf16.gmra.mrb[24].mxu1 %v5961_v14  ;;  %v5991_v50 = vsel %vm1575_vm3, %v1600_v19, %v1601_v15 }
  0x60   : > { %4823 = vmatmul.mubr.bf16.gmra.mrb[8].mxu0 %v5965_v6  ;;  %4602 = vmatprep.mubr.bf16.mxu1 %v5968_v16 }
  0x61   : > { %4826 = vmatprep.mubr.bf16.mxu0 %v5971_v31  ;;  %4855 = vmatpush3.bf16.msra.mxu0 %v5330_v40  ;;  %v1610_v40 = vrot.slane %v5836_v12, 1  ;;  %v1612_v12 = vrot.slane %v5849_v29, 1 }
  0x62   : > { %4856 = vmatprep.subr.bf16.mxu0 %v5334_v51 }
  0x63   : > { %v6022_v3 = vsel %vm1575_vm3, %v1609_v7, %v1610_v40  ;;  %v6049_v19 = vsel %vm1575_vm3, %v1612_v12, %v1613_v38 }
  0x65   : > { %4857 = vmatpush3.bf16.msra.mxu0 %v5334_v51  ;;  %v1615_v51 = vrot.slane %v5883_v27, 1  ;;  %v598_v27 = vunpack.c.l.bf16 %v544_v37 }
  0x66   : > { %4858 = vmatprep.subr.bf16.mxu0 %v5338_v57 }
  0x67   : > { %4603 = vmatmul.mubr.bf16.gmra.mrb[28].mxu1 %v5988_v46  ;;  %v6052_v29 = vsel %vm1575_vm3, %v1615_v51, %v1616_v43  ;;  %v843_v60 = vsel %vm738_vm1, %v598_v27, 0.0 }
  0x68   : > { %4827 = vmatmul.mubr.bf16.gmra.mrb[12].mxu0 %v5991_v50  ;;  %4622 = vmatprep.mubr.bf16.mxu1 %v5429_v25  ;;  %v880_v40 = vpack.c.bf16 %v843_v60, %v843_v60  ;;  %v6176_v60 = vrot.slane %v5429_v25, 1 }
  0x69   : > { %4830 = vmatprep.mubr.bf16.mxu0 %v5997_v49  ;;  %4859 = vmatpush3.bf16.msra.mxu0 %v5338_v57  ;;  %v1621_v57 = vrot.slane %v5938_v58, 1 }
  0x6a   : > { %4860 = vmatprep.subr.bf16.mxu0 %v5342_v47  ;;  %v2430_v38 = vrot.slane %v880_v40, 1 }
  0x6d   : > { %4861 = vmatpush3.bf16.msra.mxu0 %v5342_v47  ;;  %v1622_v47 = vrot.slane %v5949_v45, 1 }
  0x6e   : > { %4894 = vmatprep.subr.bf16.mxu0 %v6007_v56 }
  0x6f   : > { %4623 = vmatmul.mubr.msk.bf16.vlgmr.msra.gmra.mrb[0].mxu1 %vm6014_vm5, %v5538_v17  ;;  %v6082_v58 = vsel %vm1575_vm3, %v1621_v57, %v1622_v47  ;;  %v5358_v57 = vld [vmem:[%s6539_s3 + $0x1d8] sm:$0xff]   ;;  %v5362_v47 = vld [vmem:[%s6539_s3 + $0x1e8] sm:$0xff]  }
  0x70   : > { %4831 = vmatmul.mubr.bf16.gmra.mrb[16].mxu0 %v6019_v44  ;;  %4655 = vmatpush3.bf16.msra.mxu1 %v5873_v28  ;;  %v6045_v28 = vld [vmem:[%s5529_s24 + $0xb4] sm:$0xff]  }
  0x71   : > { %4626 = vmatprep.mubr.msk.bf16.mxu1 %vm6014_vm5, %v5546_v22  ;;  %4834 = vmatprep.mubr.bf16.mxu0 %v6022_v3  ;;  %v596_v15 = vunpack.c.l.bf16 %v6045_v28  ;;  %v597_v21 = vunpack.c.h.bf16 %v6045_v28 }
  0x72   : > { %4656 = vmatprep.subr.bf16.mxu1 %v5333_v55 }
  0x73   : > { %v841_v20 = vsel %vm679_vm0, %v596_v15, 0.0  ;;  %v5357_v15 = vld [vmem:[%s6539_s3 + $0xb8] sm:$0xff]  }
  0x74   : > { %4657 = vmatpush3.bf16.msra.mxu1 %v5333_v55  ;;  %v879_v7 = vpack.c.bf16 %v597_v21, %v841_v20  ;;  %v2164_v55 = vshll.u32 %v880_v40, 16  ;;  %v5354_v21 = vld [vmem:[%s6539_s3 + $0x1d0] sm:$0xff]   ;;  %v5361_v40 = vld [vmem:[%s6539_s3 + $0xc8] sm:$0xff]  }
  0x75   : > { %4658 = vmatprep.subr.bf16.mxu1 %v5337_v4  ;;  %v5364_v20 = vld [vmem:[%s6539_s3 + $0x1f0] sm:$0xff]  }
  0x76   : > { %v2157_v13 = vshrl.u32 %v879_v7, 16  ;;  %v2159_v45 = vshll.u32 %v879_v7, 16  ;;  %v2429_v12 = vrot.slane %v879_v7, 1  ;;  %v2166_v43 = vrot.slane %v2164_v55, 1  ;;  %v5369_v7 = vld [vmem:[%s6539_s3 + $0x200] sm:$0xff]   ;;  %v5372_v55 = vld [vmem:[%s6539_s3 + $0xf0] sm:$0xff]  }
  0x77   : > { %4627 = vmatmul.mubr.msk.bf16.gmra.mrb[4].mxu1 %vm6014_vm5, %v5563_v32 }
  0x78   : > { %4835 = vmatmul.mubr.bf16.gmra.mrb[20].mxu0 %v6049_v19  ;;  %4630 = vmatprep.mubr.msk.bf16.mxu1 %vm6014_vm5, %v5591_v48  ;;  %v2161_v51 = vrot.slane %v2159_v45, 1  ;;  %v5370_v45 = vld [vmem:[%s6539_s3 + $0xe8] sm:$0xff]  }
  0x79   : > { %4838 = vmatprep.mubr.bf16.mxu0 %v6052_v29  ;;  %4659 = vmatpush3.bf16.msra.mxu1 %v5337_v4  ;;  %v5353_v4 = vld [vmem:[%s6539_s3 + $0xb0] sm:$0xff]  }
  0x7a   : > { %4660 = vmatprep.subr.bf16.mxu1 %v5341_v41  ;;  %v2162_v37 = vor.u32 %v2161_v51, %v2157_v13  ;;  %v5368_v13 = vld [vmem:[%s6539_s3 + $0xe0] sm:$0xff]   ;;  %v6564_v51 = vld [vmem:[#allocation3_spill] sm:$0xff] }
  0x7c   : > { %v6105_v27 = vsel %vm899_vm2, %v2162_v37, %v2166_v43  ;;  %v5377_v43 = vld [vmem:[%s6539_s3 + $0x228] sm:$0xff]   ;;  %v6566_v37 = vld [vmem:[#allocation5_spill] sm:$0xff] }
  0x7d   : > { %4661 = vmatpush3.bf16.msra.mxu1 %v5341_v41  ;;  %v6099_v41 = vsel %vm1575_vm3, %v2429_v12, %v2430_v38  ;;  %v5374_v12 = vld [vmem:[%s6539_s3 + $0xf8] sm:$0xff]   ;;  %v5371_v38 = vld [vmem:[%s6539_s3 + $0x208] sm:$0xff]  }
  0x7e   : > { %4662 = vmatprep.subr.bf16.mxu1 %v5345_v39 }
  0x7f   : > { %4631 = vmatmul.mubr.msk.bf16.gmra.mrb[8].mxu1 %vm6014_vm5, %v5607_v62 }
  0x80   : > { %4839 = vmatmul.mubr.bf16.gmra.mrb[24].mxu0 %v6079_v23  ;;  %4634 = vmatprep.mubr.msk.bf16.mxu1 %vm6014_vm5, %v5627_v18 }
  0x81   : > { %4842 = vmatprep.mubr.bf16.mxu0 %v6082_v58  ;;  %4663 = vmatpush3.bf16.msra.mxu1 %v5345_v39  ;;  %v5367_v39 = vld [vmem:[%s6539_s3 + $0x1f8] sm:$0xff]  }
  0x82   : > { %4664 = vmatprep.subr.bf16.mxu1 %v5349_v10 }
  0x85   : > { %4665 = vmatpush3.bf16.msra.mxu1 %v5349_v10  ;;  %v5363_v10 = vld [vmem:[%s6539_s3 + $0xd0] sm:$0xff]  }
  0x86   : > { %4666 = vmatprep.subr.bf16.mxu1 %v5353_v4 }
  0x87   : > { %4635 = vmatmul.mubr.msk.bf16.gmra.mrb[12].mxu1 %vm6014_vm5, %v5657_v42 }
  0x88   : > { %4843 = vmatmul.mubr.bf16.gmra.mrb[28].mxu0 %v6099_v41  ;;  %4638 = vmatprep.mubr.msk.bf16.mxu1 %vm6014_vm5, %v5682_v0 }
  0x89   : > { %4862 = vmatprep.mubr.msk.bf16.mxu0 %vm6014_vm5, %v5546_v22  ;;  %4667 = vmatpush3.bf16.msra.mxu1 %v5353_v4  ;;  %v5396_v4 = vld [vmem:[%s6539_s3 + $0x100] sm:$0xff]  }
  0x8a   : > { %4668 = vmatprep.subr.bf16.mxu1 %v5357_v15 }
  0x8d   : > { %4669 = vmatpush3.bf16.msra.mxu1 %v5357_v15  ;;  %v6567_v15 = vld [vmem:[#allocation6_spill] sm:$0xff] }
  0x8e   : > { %4702 = vmatprep.subr.bf16.mxu1 %v5359_v53 }
  0x8f   : > { %4639 = vmatmul.mubr.msk.bf16.gmra.mrb[16].mxu1 %vm6014_vm5, %v5714_v35 }
  0x90   : > { %4863 = vmatmul.mubr.msk.bf16.vlgmr.msra.gmra.mrb[0].mxu0 %vm6014_vm5, %v5563_v32  ;;  %4642 = vmatprep.mubr.msk.bf16.mxu1 %vm6014_vm5, %v5744_v8 }
  0x91   : > { %4895 = vmatpush3.bf16.msra.mxu0 %v6007_v56  ;;  %4866 = vmatprep.mubr.msk.bf16.mxu0 %vm6014_vm5, %v5591_v48  ;;  %v5360_v56 = vld [vmem:[%s6539_s3 + $0x1e0] sm:$0xff]  }
  0x92   : > { %4896 = vmatprep.subr.bf16.mxu0 %v5350_v34 }
  0x95   : > { %4897 = vmatpush3.bf16.msra.mxu0 %v5350_v34  ;;  %v5379_v34 = vld [vmem:[%s6539_s3 + $0x238] sm:$0xff]  }
  0x96   : > { %4898 = vmatprep.subr.bf16.mxu0 %v5354_v21 }
  0x97   : > { %4643 = vmatmul.mubr.msk.bf16.gmra.mrb[20].mxu1 %vm6014_vm5, %v5769_v36 }
  0x98   : > { %4867 = vmatmul.mubr.msk.bf16.gmra.mrb[4].mxu0 %vm6014_vm5, %v5607_v62  ;;  %4646 = vmatprep.mubr.msk.bf16.mxu1 %vm6014_vm5, %v5794_v5 }
  0x99   : > { %4870 = vmatprep.mubr.msk.bf16.mxu0 %vm6014_vm5, %v5627_v18  ;;  %4899 = vmatpush3.bf16.msra.mxu0 %v5354_v21  ;;  %v6568_v21 = vld [vmem:[#allocation7_spill] sm:$0xff] }
  0x9a   : > { %4900 = vmatprep.subr.bf16.mxu0 %v5358_v57 }
  0x9d   : > { %4901 = vmatpush3.bf16.msra.mxu0 %v5358_v57  ;;  %v6569_v57 = vld [vmem:[#allocation8_spill] sm:$0xff] }
  0x9e   : > { %4902 = vmatprep.subr.bf16.mxu0 %v5360_v56 }
  0x9f   : > { %4647 = vmatmul.mubr.msk.bf16.gmra.mrb[24].mxu1 %vm6014_vm5, %v5823_v63 }
  0xa0   : > { %4871 = vmatmul.mubr.msk.bf16.gmra.mrb[8].mxu0 %vm6014_vm5, %v5657_v42  ;;  %4650 = vmatprep.mubr.msk.bf16.mxu1 %vm6014_vm5, %v5867_v52 }
  0xa1   : > { %4874 = vmatprep.mubr.msk.bf16.mxu0 %vm6014_vm5, %v5682_v0  ;;  %4903 = vmatpush3.bf16.msra.mxu0 %v5360_v56  ;;  %v6570_v56 = vld [vmem:[#allocation9_spill] sm:$0xff] }
  0xa2   : > { %4904 = vmatprep.subr.bf16.mxu0 %v5362_v47 }
  0xa5   : > { %4905 = vmatpush3.bf16.msra.mxu0 %v5362_v47  ;;  %v5398_v47 = vld [vmem:[%s6539_s3 + $0x110] sm:$0xff]  }
  0xa6   : > { %4906 = vmatprep.subr.bf16.mxu0 %v5364_v20 }
  0xa7   : > { %4651 = vmatmul.mubr.msk.bf16.gmra.mrb[28].mxu1 %vm6014_vm5, %v5894_v61 }
  0xa8   : > { %4875 = vmatmul.mubr.msk.bf16.gmra.mrb[12].mxu0 %vm6014_vm5, %v5714_v35  ;;  %4670 = vmatprep.mubr.bf16.mxu1 %v6176_v60 }
  0xa9   : > { %4878 = vmatprep.mubr.msk.bf16.mxu0 %vm6014_vm5, %v5744_v8  ;;  %4907 = vmatpush3.bf16.msra.mxu0 %v5364_v20 }
  0xaa   : > { %4908 = vmatprep.subr.bf16.mxu0 %v5367_v39 }
  0xad   : > { %4909 = vmatpush3.bf16.msra.mxu0 %v5367_v39 }
  0xae   : > { %4942 = vmatprep.subr.bf16.mxu0 %v5369_v7 }
  0xaf   : > { %4671 = vmatmul.mubr.bf16.vlgmr.msra.gmra.mrb[0].mxu1 %v5805_v9  ;;  %v5366_v9 = vld [vmem:[%s6539_s3 + $0xd8] sm:$0xff]  }
  0xb0   : > { %4879 = vmatmul.mubr.msk.bf16.gmra.mrb[16].mxu0 %vm6014_vm5, %v5769_v36  ;;  %4703 = vmatpush3.bf16.msra.mxu1 %v5359_v53  ;;  %v5378_v53 = vld [vmem:[%s6539_s3 + $0x230] sm:$0xff]  }
  0xb1   : > { %4674 = vmatprep.mubr.bf16.mxu1 %v5826_v59  ;;  %4882 = vmatprep.mubr.msk.bf16.mxu0 %vm6014_vm5, %v5794_v5 }
  0xb2   : > { %4704 = vmatprep.subr.bf16.mxu1 %v5361_v40 }
  0xb4   : > { %4705 = vmatpush3.bf16.msra.mxu1 %v5361_v40 }
  0xb5   : > { %4706 = vmatprep.subr.bf16.mxu1 %v5363_v10 }
  0xb7   : > { %4675 = vmatmul.mubr.bf16.gmra.mrb[4].mxu1 %v5842_v54 }
  0xb8   : > { %4883 = vmatmul.mubr.msk.bf16.gmra.mrb[20].mxu0 %vm6014_vm5, %v5823_v63  ;;  %4678 = vmatprep.mubr.bf16.mxu1 %v5904_v26 }
  0xb9   : > { %4886 = vmatprep.mubr.msk.bf16.mxu0 %vm6014_vm5, %v5867_v52  ;;  %4707 = vmatpush3.bf16.msra.mxu1 %v5363_v10 }
  0xba   : > { %4708 = vmatprep.subr.bf16.mxu1 %v5366_v9 }
  0xbd   : > { %4709 = vmatpush3.bf16.msra.mxu1 %v5366_v9 }
  0xbe   : > { %4710 = vmatprep.subr.bf16.mxu1 %v5368_v13 }
  0xbf   : > { %4679 = vmatmul.mubr.bf16.gmra.mrb[8].mxu1 %v5936_v30 }
  0xc0   : > { %4887 = vmatmul.mubr.msk.bf16.gmra.mrb[24].mxu0 %vm6014_vm5, %v5894_v61  ;;  %4682 = vmatprep.mubr.bf16.mxu1 %v5965_v6 }
  0xc1   : > { %4890 = vmatprep.mubr.msk.bf16.mxu0 %vm6014_vm5, %v6045_v28  ;;  %4711 = vmatpush3.bf16.msra.mxu1 %v5368_v13 }
  0xc2   : > { %4712 = vmatprep.subr.bf16.mxu1 %v5370_v45 }
  0xc5   : > { %4713 = vmatpush3.bf16.msra.mxu1 %v5370_v45 }
  0xc6   : > { %4714 = vmatprep.subr.bf16.mxu1 %v5372_v55 }
  0xc7   : > { %4683 = vmatmul.mubr.bf16.gmra.mrb[12].mxu1 %v5971_v31 }
  0xc8   : > { %4891 = vmatmul.mubr.bf16.gmra.mrb[28].mxu0 %v5429_v25  ;;  %4686 = vmatprep.mubr.bf16.mxu1 %v5991_v50  ;;  %v5375_v25 = vld [vmem:[%s6539_s3 + $0x218] sm:$0xff]  }
  0xc9   : > { %4910 = vmatprep.mubr.bf16.mxu0 %v5633_v24  ;;  %4715 = vmatpush3.bf16.msra.mxu1 %v5372_v55  ;;  %v5373_v24 = vld [vmem:[%s6539_s3 + $0x210] sm:$0xff]  }
  0xca   : > { %4716 = vmatprep.subr.bf16.mxu1 %v5374_v12 }
  0xcd   : > { %4717 = vmatpush3.bf16.msra.mxu1 %v5374_v12 }
  0xce   : > { %4990 = vmatprep.subr.bf16.mxu1 %v5396_v4 }
  0xcf   : > { %4687 = vmatmul.mubr.bf16.gmra.mrb[16].mxu1 %v5997_v49 }
  0xd0   : > { %4911 = vmatmul.mubr.bf16.vlgmr.msra.gmra.mrb[0].mxu0 %v5642_v33  ;;  %4690 = vmatprep.mubr.bf16.mxu1 %v6019_v44  ;;  %v6565_v33 = vld [vmem:[#allocation4_spill] sm:$0xff] }
  0xd1   : > { %4943 = vmatpush3.bf16.msra.mxu0 %v5369_v7  ;;  %4914 = vmatprep.mubr.bf16.mxu0 %v5686_v1  ;;  %v5376_v1 = vld [vmem:[%s6539_s3 + $0x220] sm:$0xff]  }
  0xd2   : > { %4944 = vmatprep.subr.bf16.mxu0 %v5371_v38 }
  0xd5   : > { %4945 = vmatpush3.bf16.msra.mxu0 %v5371_v38 }
  0xd6   : > { %4946 = vmatprep.subr.bf16.mxu0 %v5373_v24 }
  0xd7   : > { %4691 = vmatmul.mubr.bf16.gmra.mrb[20].mxu1 %v6022_v3 }
  0xd8   : > { %4915 = vmatmul.mubr.bf16.gmra.mrb[4].mxu0 %v6564_v51  ;;  %4694 = vmatprep.mubr.bf16.mxu1 %v6049_v19 }
  0xd9   : > { %4918 = vmatprep.mubr.bf16.mxu0 %v6565_v33  ;;  %4947 = vmatpush3.bf16.msra.mxu0 %v5373_v24 }
  0xda   : > { %4948 = vmatprep.subr.bf16.mxu0 %v5375_v25 }
  0xdd   : > { %4949 = vmatpush3.bf16.msra.mxu0 %v5375_v25 }
  0xde   : > { %4950 = vmatprep.subr.bf16.mxu0 %v5376_v1 }
  0xdf   : > { %4695 = vmatmul.mubr.bf16.gmra.mrb[24].mxu1 %v6052_v29 }
  0xe0   : > { %4919 = vmatmul.mubr.bf16.gmra.mrb[8].mxu0 %v6566_v37  ;;  %4698 = vmatprep.mubr.bf16.mxu1 %v6079_v23 }
  0xe1   : > { %4922 = vmatprep.mubr.bf16.mxu0 %v6567_v15  ;;  %4951 = vmatpush3.bf16.msra.mxu0 %v5376_v1 }
  0xe2   : > { %4952 = vmatprep.subr.bf16.mxu0 %v5377_v43 }
  0xe5   : > { %4953 = vmatpush3.bf16.msra.mxu0 %v5377_v43 }
  0xe6   : > { %4954 = vmatprep.subr.bf16.mxu0 %v5378_v53 }
  0xe7   : > { %4699 = vmatmul.mubr.bf16.gmra.mrb[28].mxu1 %v6082_v58 }
  0xe8   : > { %4923 = vmatmul.mubr.bf16.gmra.mrb[12].mxu0 %v6568_v21  ;;  %4718 = vmatprep.mubr.msk.bf16.mxu1 %vm6014_vm5, %v5538_v17  ;;  %v5397_v17 = vld [vmem:[%s6539_s3 + $0x108] sm:$0xff]  }
  0xe9   : > { %4926 = vmatprep.mubr.bf16.mxu0 %v6569_v57  ;;  %4955 = vmatpush3.bf16.msra.mxu0 %v5378_v53 }
  0xea   : > { %4956 = vmatprep.subr.bf16.mxu0 %v5379_v34 }
  0xed   : > { %4957 = vmatpush3.bf16.msra.mxu0 %v5379_v34 }
  0xef   : > { %4719 = vmatmul.mubr.msk.bf16.vlgmr.msra.gmra.mrb[0].mxu1 %vm6014_vm5, %v5546_v22  ;;  %v5399_v22 = vld [vmem:[%s6539_s3 + $0x118] sm:$0xff]  }
  0xf0   : > { %4927 = vmatmul.mubr.bf16.gmra.mrb[16].mxu0 %v6570_v56  ;;  %4998 = vmatpush3.bf16.msra.mxu1 %v5396_v4 }
  0xf1   : > { %4722 = vmatprep.mubr.msk.bf16.mxu1 %vm6014_vm5, %v5563_v32  ;;  %4930 = vmatprep.mubr.bf16.mxu0 %v5926_v11  ;;  %v5400_v32 = vld [vmem:[%s6539_s3 + $0x120] sm:$0xff]  }
  0xf2   : > { %4991 = vmatprep.subr.bf16.mxu1 %v5397_v17 }
  0xf4   : > { %4999 = vmatpush3.bf16.msra.mxu1 %v5397_v17 }
  0xf5   : > { %4992 = vmatprep.subr.bf16.mxu1 %v5398_v47 }
  0xf7   : > { %4723 = vmatmul.mubr.msk.bf16.gmra.mrb[4].mxu1 %vm6014_vm5, %v5591_v48  ;;  %v5401_v48 = vld [vmem:[%s6539_s3 + $0x128] sm:$0xff]  }
  0xf8   : > { %4931 = vmatmul.mubr.bf16.gmra.mrb[20].mxu0 %v5961_v14  ;;  %4726 = vmatprep.mubr.msk.bf16.mxu1 %vm6014_vm5, %v5607_v62  ;;  %v5402_v62 = vld [vmem:[%s6539_s3 + $0x130] sm:$0xff]  }
  0xf9   : > { %4934 = vmatprep.mubr.bf16.mxu0 %v5968_v16  ;;  %5000 = vmatpush3.bf16.msra.mxu1 %v5398_v47 }
  0xfa   : > { %4993 = vmatprep.subr.bf16.mxu1 %v5399_v22 }
  0xfd   : > { %5001 = vmatpush3.bf16.msra.mxu1 %v5399_v22 }
  0xfe   : > { %4994 = vmatprep.subr.bf16.mxu1 %v5400_v32 }
  0xff   : > { %4727 = vmatmul.mubr.msk.bf16.gmra.mrb[8].mxu1 %vm6014_vm5, %v5627_v18  ;;  %v6571_v18 = vld [vmem:[#allocation2_spill] sm:$0xff] }
 0x100   : > { %4935 = vmatmul.mubr.bf16.gmra.mrb[24].mxu0 %v5988_v46  ;;  %4730 = vmatprep.mubr.msk.bf16.mxu1 %vm6014_vm5, %v5657_v42  ;;  %v5403_v42 = vld [vmem:[%s6539_s3 + $0x138] sm:$0xff]  }
 0x101   : > { %4938 = vmatprep.mubr.bf16.mxu0 %v6105_v27  ;;  %5002 = vmatpush3.bf16.msra.mxu1 %v5400_v32 }
 0x102   : > { %4995 = vmatprep.subr.bf16.mxu1 %v5401_v48 }
 0x105   : > { %5003 = vmatpush3.bf16.msra.mxu1 %v5401_v48 }
 0x106   : > { %4996 = vmatprep.subr.bf16.mxu1 %v5402_v62 }
 0x107   : > { %4731 = vmatmul.mubr.msk.bf16.gmra.mrb[12].mxu1 %vm6014_vm5, %v5682_v0  ;;  %v5431_v0 = vmov 0.0  }
 0x108   : > { %4939 = vmatmul.mubr.bf16.gmra.mrb[28].mxu0 %v6571_v18  ;;  %4734 = vmatprep.mubr.msk.bf16.mxu1 %vm6014_vm5, %v5714_v35  ;;  %3635 = vst [vmem:[%s6386_s14 + $0x18] sm:$0xff] %v5431_v0  ;;  %3636 = vst [vmem:[%s6386_s14 + $0x20] sm:$0xff] %v5431_v0 }
 0x109   : > { %4958 = vmatprep.mubr.bf16.mxu0 %v5826_v59  ;;  %5004 = vmatpush3.bf16.msra.mxu1 %v5402_v62  ;;  %3632 = vst [vmem:[%s6386_s14] sm:$0xff] %v5431_v0  ;;  %3633 = vst [vmem:[%s6386_s14 + $0x8] sm:$0xff] %v5431_v0 }
 0x10a   : > { %4997 = vmatprep.subr.bf16.mxu1 %v5403_v42  ;;  %3634 = vst [vmem:[%s6386_s14 + $0x10] sm:$0x3] %v5431_v0  ;;  %3637 = vst [vmem:[%s6386_s14 + $0x28] sm:$0x3] %v5431_v0 }
 0x10b   : > { %3638 = vst [vmem:[%s6386_s14 + $0x30] sm:$0xff] %v5431_v0  ;;  %3639 = vst [vmem:[%s6386_s14 + $0x38] sm:$0xff] %v5431_v0 }
 0x10c   : > { %3640 = vst [vmem:[%s6386_s14 + $0x40] sm:$0x3] %v5431_v0  ;;  %3641 = vst [vmem:[%s6386_s14 + $0x48] sm:$0xff] %v5431_v0 }
 0x10d   : > { %5005 = vmatpush3.bf16.msra.mxu1 %v5403_v42  ;;  %3642 = vst [vmem:[%s6386_s14 + $0x50] sm:$0xff] %v5431_v0  ;;  %3643 = vst [vmem:[%s6386_s14 + $0x58] sm:$0x3] %v5431_v0 }
 0x10e   : > { %3644 = vst [vmem:[%s6386_s14 + $0x60] sm:$0xff] %v5431_v0  ;;  %3645 = vst [vmem:[%s6386_s14 + $0x68] sm:$0xff] %v5431_v0 }
 0x10f   : > { %4735 = vmatmul.mubr.msk.bf16.gmra.mrb[16].mxu1 %vm6014_vm5, %v5744_v8  ;;  %3646 = vst [vmem:[%s6386_s14 + $0x70] sm:$0x3] %v5431_v0  ;;  %3647 = vst [vmem:[%s6386_s14 + $0x78] sm:$0xff] %v5431_v0 }
 0x110   : > { %4959 = vmatmul.mubr.bf16.vlgmr.msra.gmra.mrb[0].mxu0 %v5842_v54  ;;  %4738 = vmatprep.mubr.msk.bf16.mxu1 %vm6014_vm5, %v5769_v36  ;;  %3648 = vst [vmem:[%s6386_s14 + $0x80] sm:$0xff] %v5431_v0  ;;  %3649 = vst [vmem:[%s6386_s14 + $0x88] sm:$0x3] %v5431_v0 }
 0x111   : > { %4962 = vmatprep.mubr.bf16.mxu0 %v5904_v26  ;;  %3650 = vst [vmem:[%s6386_s14 + $0x90] sm:$0xff] %v5431_v0  ;;  %3651 = vst [vmem:[%s6386_s14 + $0x98] sm:$0xff] %v5431_v0 }
 0x112   : > { %3652 = vst [vmem:[%s6386_s14 + $0xa0] sm:$0x3] %v5431_v0  ;;  %3653 = vst [vmem:[%s6386_s14 + $0xa8] sm:$0xff] %v5431_v0 }
 0x113   : > { %3654 = vst [vmem:[%s6386_s14 + $0xb0] sm:$0xff] %v5431_v0  ;;  %3655 = vst [vmem:[%s6386_s14 + $0xb8] sm:$0x3] %v5431_v0 }
 0x114   : > { %3656 = vst [vmem:[%s6386_s14 + $0xc0] sm:$0xff] %v5431_v0  ;;  %3657 = vst [vmem:[%s6386_s14 + $0xc8] sm:$0xff] %v5431_v0 }
 0x115   : > { %3658 = vst [vmem:[%s6386_s14 + $0xd0] sm:$0x3] %v5431_v0  ;;  %3659 = vst [vmem:[%s6386_s14 + $0xd8] sm:$0xff] %v5431_v0 }
 0x116   : > { %3660 = vst [vmem:[%s6386_s14 + $0xe0] sm:$0xff] %v5431_v0  ;;  %3661 = vst [vmem:[%s6386_s14 + $0xe8] sm:$0x3] %v5431_v0 }
 0x117   : > { %4739 = vmatmul.mubr.msk.bf16.gmra.mrb[20].mxu1 %vm6014_vm5, %v5794_v5  ;;  %3662 = vst [vmem:[%s6386_s14 + $0xf0] sm:$0xff] %v5431_v0  ;;  %3663 = vst [vmem:[%s6386_s14 + $0xf8] sm:$0xff] %v5431_v0 }
 0x118   : > { %4963 = vmatmul.mubr.bf16.gmra.mrb[4].mxu0 %v5936_v30  ;;  %4742 = vmatprep.mubr.msk.bf16.mxu1 %vm6014_vm5, %v5823_v63  ;;  %3664 = vst [vmem:[%s6386_s14 + $0x100] sm:$0x3] %v5431_v0  ;;  %3665 = vst [vmem:[%s6386_s14 + $0x108] sm:$0xff] %v5431_v0 }
 0x119   : > { %4966 = vmatprep.mubr.bf16.mxu0 %v5965_v6  ;;  %3666 = vst [vmem:[%s6386_s14 + $0x110] sm:$0xff] %v5431_v0  ;;  %3667 = vst [vmem:[%s6386_s14 + $0x118] sm:$0x3] %v5431_v0 }
 0x11a   : > { %3668 = vst [vmem:[%s6386_s14 + $0x120] sm:$0xff] %v5431_v0  ;;  %3669 = vst [vmem:[%s6386_s14 + $0x128] sm:$0xff] %v5431_v0 }
 0x11b   : > { %3670 = vst [vmem:[%s6386_s14 + $0x130] sm:$0x3] %v5431_v0  ;;  %3671 = vst [vmem:[%s6386_s14 + $0x138] sm:$0xff] %v5431_v0 }
 0x11c   : > { %3672 = vst [vmem:[%s6386_s14 + $0x140] sm:$0xff] %v5431_v0  ;;  %3673 = vst [vmem:[%s6386_s14 + $0x148] sm:$0x3] %v5431_v0 }
 0x11d   : > { %3674 = vst [vmem:[%s6386_s14 + $0x150] sm:$0xff] %v5431_v0  ;;  %3675 = vst [vmem:[%s6386_s14 + $0x158] sm:$0xff] %v5431_v0 }
 0x11e   : > { %3676 = vst [vmem:[%s6386_s14 + $0x160] sm:$0x3] %v5431_v0  ;;  %3677 = vst [vmem:[%s6386_s14 + $0x168] sm:$0xff] %v5431_v0 }
 0x11f   : > { %4743 = vmatmul.mubr.msk.bf16.gmra.mrb[24].mxu1 %vm6014_vm5, %v5867_v52  ;;  %3678 = vst [vmem:[%s6386_s14 + $0x170] sm:$0xff] %v5431_v0  ;;  %3679 = vst [vmem:[%s6386_s14 + $0x178] sm:$0x3] %v5431_v0 }
 0x120   : > { %4967 = vmatmul.mubr.bf16.gmra.mrb[8].mxu0 %v5971_v31  ;;  %4746 = vmatprep.mubr.msk.bf16.mxu1 %vm6014_vm5, %v5894_v61 }
 0x121   : > { %4970 = vmatprep.mubr.bf16.mxu0 %v5991_v50  ;;  %v6451_v50 = vld [vmem:[%s6540_s4] ss:$0 sm:$0xff] }
 0x127   : > { %4747 = vmatmul.mubr.msk.bf16.gmra.mrb[28].mxu1 %vm6014_vm5, %v6045_v28 }
 0x128   : > { %4971 = vmatmul.mubr.bf16.gmra.mrb[12].mxu0 %v5997_v49  ;;  %4782 = vmatprep.mubr.bf16.mxu1 %v6568_v21 }
 0x129   : > { %4974 = vmatprep.mubr.bf16.mxu0 %v6019_v44 }
 0x12f   : > { %4783 = vmatmul.mubr.bf16.vlgmr.msra.gmra.mrb[16].mxu1 %v6569_v57 }
 0x130   : > { %4975 = vmatmul.mubr.bf16.gmra.mrb[16].mxu0 %v6022_v3  ;;  %4786 = vmatprep.mubr.bf16.mxu1 %v6570_v56 }
 0x131   : > { %4978 = vmatprep.mubr.bf16.mxu0 %v6049_v19 }
 0x137   : > { %4787 = vmatmul.mubr.bf16.gmra.mrb[20].mxu1 %v5926_v11 }
 0x138   : > { %4979 = vmatmul.mubr.bf16.gmra.mrb[20].mxu0 %v6052_v29  ;;  %4790 = vmatprep.mubr.bf16.mxu1 %v5961_v14 }
 0x139   : > { %4982 = vmatprep.mubr.bf16.mxu0 %v6079_v23 }
 0x13f   : > { %4791 = vmatmul.mubr.bf16.gmra.mrb[24].mxu1 %v5968_v16 }
 0x140   : > { %4983 = vmatmul.mubr.bf16.gmra.mrb[24].mxu0 %v6082_v58  ;;  %4794 = vmatprep.mubr.bf16.mxu1 %v5988_v46 }
 0x141   : > { %4986 = vmatprep.mubr.bf16.mxu0 %v6099_v41 }
 0x147   : > { %4795 = vmatmul.mubr.bf16.gmra.mrb[28].mxu1 %v6105_v27 }
 0x148   : > { %4987 = vmatmul.mubr.bf16.gmra.mrb[28].mxu0 %v6176_v60 }
 0x1c2   : > { %v4720_v35 = vpop.f32.mrb[0].mxu1 }
 0x1c3   : > { %v1997_v8 = vpop.f32.mrb[1].mxu1 }
 0x1c4   : > { %v4721_v36 = vpop.f32.mrb[2].mxu1 }
 0x1c5   : > { %v2000_v5 = vpop.f32.mrb[3].mxu1 }
 0x1ca   : > { %v4724_v63 = vpop.f32.mrb[4].mxu1 }
 0x1cb   : > { %v2013_v59 = vpop.f32.mrb[5].mxu1 }
 0x1cc   : > { %v4725_v54 = vpop.f32.mrb[6].mxu1 }
 0x1cd   : > { %v2016_v52 = vpop.f32.mrb[7].mxu1 }
 0x1d2   : > { %v4728_v61 = vpop.f32.mrb[8].mxu1 }
 0x1d3   : > { %v2029_v26 = vpop.f32.mrb[9].mxu1 }
 0x1d4   : > { %v6436_v11 = vpop.f32.mrb[10].mxu1 }
 0x1d5   : > { %v6438_v30 = vpop.f32.mrb[11].mxu1 }
 0x1da   : > { %v6440_v14 = vpop.f32.mrb[12].mxu1 }
 0x1db   : > { %v6442_v6 = vpop.f32.mrb[13].mxu1 }
 0x1dc   : > { %v6444_v16 = vpop.f32.mrb[14].mxu1 }
 0x1dd   : > { %v6446_v31 = vpop.f32.mrb[15].mxu1 }
 0x1e3   : > { %v4960_v46 = vpop.f32.mrb[0].mxu0 }
 0x1e4   : > { %v5006_v49 = vadd.f32 %v4960_v46, %v4720_v35  ;;  %v3325_v2 = vpop.f32.mrb[1].mxu0 }
 0x1e5   : > { %v5007_v44 = vadd.f32 %v3325_v2, %v1997_v8  ;;  %v4961_v3 = vpop.f32.mrb[2].mxu0 }
 0x1e6   : > { %v3493_v28 = vadd.f32 %v5006_v49, %v6451_v50  ;;  %v5008_v19 = vadd.f32 %v4961_v3, %v4721_v36  ;;  %v3328_v29 = vpop.f32.mrb[3].mxu0 }
 0x1e7   : > { %v3491_v23 = vadd.f32 %v5007_v44, %v6451_v50  ;;  %v5009_v58 = vadd.f32 %v3328_v29, %v2000_v5 }
 0x1e8   : > { %3682 = vst [vmem:[%s6386_s14 + $0x19] sm:$0xff] %v3493_v28  ;;  %v3494_v41 = vadd.f32 %v5008_v19, %v6451_v50  ;;  %v3562_v9 = vmul.f32 %v3493_v28, %v3493_v28 }
 0x1e9   : > { %3680 = vst [vmem:[%s6386_s14 + $0x1] sm:$0xff] %v3491_v23  ;;  %v3492_v27 = vadd.f32 %v5009_v58, %v6451_v50  ;;  %v3560_v20 = vmul.f32 %v3491_v23, %v3491_v23 }
 0x1ea   : > { %3683 = vst [vmem:[%s6386_s14 + $0x21] sm:$0xff] %v3494_v41  ;;  %v3563_v38 = vmul.f32 %v3494_v41, %v3494_v41 }
 0x1eb   : > { %v3523_v60 = vadd.f32 %v3492_v27, %v3491_v23  ;;  %v3561_v39 = vmul.f32 %v3492_v27, %v3492_v27  ;;  %3681 = vst [vmem:[%s6386_s14 + $0x9] sm:$0xff] %v3492_v27  ;;  %v4964_v7 = vpop.f32.mrb[4].mxu0 }
 0x1ec   : > { %v5010_v40 = vadd.f32 %v4964_v7, %v4724_v63  ;;  %v3341_v10 = vpop.f32.mrb[5].mxu0 }
 0x1ed   : > { %v3524_v13 = vadd.f32 %v3523_v60, %v3493_v28  ;;  %v3592_v45 = vadd.f32 %v3561_v39, %v3560_v20  ;;  %v5011_v55 = vadd.f32 %v3341_v10, %v2013_v59  ;;  %v4965_v12 = vpop.f32.mrb[6].mxu0 }
 0x1ee   : > { %v3497_v4 = vadd.f32 %v5010_v40, %v6451_v50  ;;  %v5012_v24 = vadd.f32 %v4965_v12, %v4725_v54  ;;  %v3344_v25 = vpop.f32.mrb[7].mxu0 }
 0x1ef   : > { %v3593_v51 = vadd.f32 %v3592_v45, %v3562_v9  ;;  %v3495_v33 = vadd.f32 %v5011_v55, %v6451_v50  ;;  %v3525_v1 = vadd.f32 %v3524_v13, %v3494_v41  ;;  %v5013_v43 = vadd.f32 %v3344_v25, %v2016_v52 }
 0x1f0   : > { %3686 = vst [vmem:[%s6386_s14 + $0x49] sm:$0xff] %v3497_v4  ;;  %v3498_v37 = vadd.f32 %v5012_v24, %v6451_v50  ;;  %v3566_v48 = vmul.f32 %v3497_v4, %v3497_v4 }
 0x1f1   : > { %v3526_v15 = vadd.f32 %v3525_v1, %v3495_v33  ;;  %v3564_v53 = vmul.f32 %v3495_v33, %v3495_v33  ;;  %v3594_v34 = vadd.f32 %v3593_v51, %v3563_v38  ;;  %3684 = vst [vmem:[%s6386_s14 + $0x31] sm:$0xff] %v3495_v33  ;;  %v3496_v21 = vadd.f32 %v5013_v43, %v6451_v50 }
 0x1f2   : > { %3687 = vst [vmem:[%s6386_s14 + $0x51] sm:$0xff] %v3498_v37  ;;  %v3567_v35 = vmul.f32 %v3498_v37, %v3498_v37 }
 0x1f3   : > { %v3595_v57 = vadd.f32 %v3594_v34, %v3564_v53  ;;  %v3527_v56 = vadd.f32 %v3526_v15, %v3496_v21  ;;  %v3565_v17 = vmul.f32 %v3496_v21, %v3496_v21  ;;  %3685 = vst [vmem:[%s6386_s14 + $0x39] sm:$0xff] %v3496_v21  ;;  %v4968_v47 = vpop.f32.mrb[8].mxu0 }
 0x1f4   : > { %v5014_v22 = vadd.f32 %v4968_v47, %v4728_v61  ;;  %v3357_v32 = vpop.f32.mrb[9].mxu0 }
 0x1f5   : > { %v3528_v62 = vadd.f32 %v3527_v56, %v3497_v4  ;;  %v3596_v18 = vadd.f32 %v3595_v57, %v3565_v17  ;;  %v5015_v42 = vadd.f32 %v3357_v32, %v2029_v26  ;;  %v4969_v0 = vpop.f32.mrb[10].mxu0 }
 0x1f6   : > { %v3501_v8 = vadd.f32 %v5014_v22, %v6451_v50  ;;  %v5016_v36 = vadd.f32 %v4969_v0, %v6436_v11  ;;  %v3360_v5 = vpop.f32.mrb[11].mxu0 }
 0x1f7   : > { %v3597_v63 = vadd.f32 %v3596_v18, %v3566_v48  ;;  %v3499_v59 = vadd.f32 %v5015_v42, %v6451_v50  ;;  %v3529_v54 = vadd.f32 %v3528_v62, %v3498_v37  ;;  %v5017_v52 = vadd.f32 %v3360_v5, %v6438_v30 }
 0x1f8   : > { %3690 = vst [vmem:[%s6386_s14 + $0x79] sm:$0xff] %v3501_v8  ;;  %v3502_v61 = vadd.f32 %v5016_v36, %v6451_v50  ;;  %v3570_v30 = vmul.f32 %v3501_v8, %v3501_v8 }
 0x1f9   : > { %v3530_v46 = vadd.f32 %v3529_v54, %v3499_v59  ;;  %v3568_v26 = vmul.f32 %v3499_v59, %v3499_v59  ;;  %v3598_v49 = vadd.f32 %v3597_v63, %v3567_v35  ;;  %3688 = vst [vmem:[%s6386_s14 + $0x61] sm:$0xff] %v3499_v59  ;;  %v3500_v2 = vadd.f32 %v5017_v52, %v6451_v50 }
 0x1fa   : > { %3691 = vst [vmem:[%s6386_s14 + $0x81] sm:$0xff] %v3502_v61  ;;  %v3571_v20 = vmul.f32 %v3502_v61, %v3502_v61 }
 0x1fb   : > { %v3599_v44 = vadd.f32 %v3598_v49, %v3568_v26  ;;  %v3531_v11 = vadd.f32 %v3530_v46, %v3500_v2  ;;  %v3569_v3 = vmul.f32 %v3500_v2, %v3500_v2  ;;  %3689 = vst [vmem:[%s6386_s14 + $0x69] sm:$0xff] %v3500_v2  ;;  %v4972_v28 = vpop.f32.mrb[12].mxu0 }
 0x1fc   : > { %v5018_v19 = vadd.f32 %v4972_v28, %v6440_v14  ;;  %v3373_v29 = vpop.f32.mrb[13].mxu0 }
 0x1fd   : > { %v3532_v23 = vadd.f32 %v3531_v11, %v3501_v8  ;;  %v3600_v58 = vadd.f32 %v3599_v44, %v3569_v3  ;;  %v5019_v41 = vadd.f32 %v3373_v29, %v6442_v6  ;;  %v4973_v27 = vpop.f32.mrb[14].mxu0 }
 0x1fe   : > { %v3505_v60 = vadd.f32 %v5018_v19, %v6451_v50  ;;  %v5020_v39 = vadd.f32 %v4973_v27, %v6444_v16  ;;  %v3376_v7 = vpop.f32.mrb[15].mxu0 }
 0x1ff   : > { %v3601_v40 = vadd.f32 %v3600_v58, %v3570_v30  ;;  %v3503_v10 = vadd.f32 %v5019_v41, %v6451_v50  ;;  %v3533_v14 = vadd.f32 %v3532_v23, %v3502_v61  ;;  %v5021_v9 = vadd.f32 %v3376_v7, %v6446_v31 }
 0x200   : > { %3694 = vst [vmem:[%s6386_s14 + $0xa9] sm:$0xff] %v3505_v60  ;;  %v3506_v13 = vadd.f32 %v5020_v39, %v6451_v50  ;;  %v3574_v43 = vmul.f32 %v3505_v60, %v3505_v60 }
 0x201   : > { %v3534_v45 = vadd.f32 %v3533_v14, %v3503_v10  ;;  %v3572_v6 = vmul.f32 %v3503_v10, %v3503_v10  ;;  %v3602_v55 = vadd.f32 %v3601_v40, %v3571_v20  ;;  %3692 = vst [vmem:[%s6386_s14 + $0x91] sm:$0xff] %v3503_v10  ;;  %v3504_v12 = vadd.f32 %v5021_v9, %v6451_v50 }
 0x202   : > { %3695 = vst [vmem:[%s6386_s14 + $0xb1] sm:$0xff] %v3506_v13  ;;  %v4784_v38 = vpop.f32.mrb[16].mxu1  ;;  %v3575_v57 = vmul.f32 %v3506_v13, %v3506_v13 }
 0x203   : > { %v3603_v16 = vadd.f32 %v3602_v55, %v3572_v6  ;;  %v3535_v4 = vadd.f32 %v3534_v45, %v3504_v12  ;;  %v3573_v24 = vmul.f32 %v3504_v12, %v3504_v12  ;;  %3693 = vst [vmem:[%s6386_s14 + $0x99] sm:$0xff] %v3504_v12  ;;  %v4976_v25 = vpop.f32.mrb[16].mxu0  ;;  %v2332_v51 = vpop.f32.mrb[17].mxu1 }
 0x204   : > { %v5022_v33 = vadd.f32 %v4976_v25, %v4784_v38  ;;  %v3389_v1 = vpop.f32.mrb[17].mxu0  ;;  %v4785_v31 = vpop.f32.mrb[18].mxu1 }
 0x205   : > { %v3536_v37 = vadd.f32 %v3535_v4, %v3505_v60  ;;  %v3604_v15 = vadd.f32 %v3603_v16, %v3573_v24  ;;  %v5023_v53 = vadd.f32 %v3389_v1, %v2332_v51  ;;  %v4977_v34 = vpop.f32.mrb[18].mxu0  ;;  %v2335_v21 = vpop.f32.mrb[19].mxu1 }
 0x206   : > { %v3509_v56 = vadd.f32 %v5022_v33, %v6451_v50  ;;  %v5024_v17 = vadd.f32 %v4977_v34, %v4785_v31  ;;  %v3392_v47 = vpop.f32.mrb[19].mxu0 }
 0x207   : > { %v3605_v22 = vadd.f32 %v3604_v15, %v3574_v43  ;;  %v3507_v32 = vadd.f32 %v5023_v53, %v6451_v50  ;;  %v3537_v48 = vadd.f32 %v3536_v37, %v3506_v13  ;;  %v5025_v62 = vadd.f32 %v3392_v47, %v2335_v21 }
 0x208   : > { %3698 = vst [vmem:[%s6386_s14 + $0xd9] sm:$0xff] %v3509_v56  ;;  %v3510_v18 = vadd.f32 %v5024_v17, %v6451_v50  ;;  %v3578_v49 = vmul.f32 %v3509_v56, %v3509_v56 }
 0x209   : > { %v3538_v42 = vadd.f32 %v3537_v48, %v3507_v32  ;;  %v3576_v0 = vmul.f32 %v3507_v32, %v3507_v32  ;;  %v3606_v35 = vadd.f32 %v3605_v22, %v3575_v57  ;;  %3696 = vst [vmem:[%s6386_s14 + $0xc1] sm:$0xff] %v3507_v32  ;;  %v3508_v8 = vadd.f32 %v5025_v62, %v6451_v50 }
 0x20a   : > { %3699 = vst [vmem:[%s6386_s14 + $0xe1] sm:$0xff] %v3510_v18  ;;  %v4788_v36 = vpop.f32.mrb[20].mxu1  ;;  %v3579_v19 = vmul.f32 %v3510_v18, %v3510_v18 }
 0x20b   : > { %v3607_v5 = vadd.f32 %v3606_v35, %v3576_v0  ;;  %v3539_v63 = vadd.f32 %v3538_v42, %v3508_v8  ;;  %v3577_v59 = vmul.f32 %v3508_v8, %v3508_v8  ;;  %3697 = vst [vmem:[%s6386_s14 + $0xc9] sm:$0xff] %v3508_v8  ;;  %v4980_v54 = vpop.f32.mrb[20].mxu0  ;;  %v2348_v52 = vpop.f32.mrb[21].mxu1 }
 0x20c   : > { %v5026_v61 = vadd.f32 %v4980_v54, %v4788_v36  ;;  %v3405_v46 = vpop.f32.mrb[21].mxu0  ;;  %v4789_v26 = vpop.f32.mrb[22].mxu1 }
 0x20d   : > { %v3540_v2 = vadd.f32 %v3539_v63, %v3509_v56  ;;  %v3608_v44 = vadd.f32 %v3607_v5, %v3577_v59  ;;  %v5027_v11 = vadd.f32 %v3405_v46, %v2348_v52  ;;  %v4981_v3 = vpop.f32.mrb[22].mxu0  ;;  %v2351_v28 = vpop.f32.mrb[23].mxu1 }
 0x20e   : > { %v3513_v29 = vadd.f32 %v5026_v61, %v6451_v50  ;;  %v5028_v30 = vadd.f32 %v4981_v3, %v4789_v26  ;;  %v3408_v23 = vpop.f32.mrb[23].mxu0 }
 0x20f   : > { %v3609_v58 = vadd.f32 %v3608_v44, %v3578_v49  ;;  %v3511_v41 = vadd.f32 %v5027_v11, %v6451_v50  ;;  %v3541_v27 = vadd.f32 %v3540_v2, %v3510_v18  ;;  %v5029_v20 = vadd.f32 %v3408_v23, %v2351_v28 }
 0x210   : > { %3702 = vst [vmem:[%s6386_s14 + $0x109] sm:$0xff] %v3513_v29  ;;  %v3514_v60 = vadd.f32 %v5028_v30, %v6451_v50  ;;  %v3582_v4 = vmul.f32 %v3513_v29, %v3513_v29 }
 0x211   : > { %v3542_v39 = vadd.f32 %v3541_v27, %v3511_v41  ;;  %v3580_v7 = vmul.f32 %v3511_v41, %v3511_v41  ;;  %v3610_v40 = vadd.f32 %v3609_v58, %v3579_v19  ;;  %3700 = vst [vmem:[%s6386_s14 + $0xf1] sm:$0xff] %v3511_v41  ;;  %v3512_v10 = vadd.f32 %v5029_v20, %v6451_v50 }
 0x212   : > { %3703 = vst [vmem:[%s6386_s14 + $0x111] sm:$0xff] %v3514_v60  ;;  %v4792_v14 = vpop.f32.mrb[24].mxu1  ;;  %v3583_v31 = vmul.f32 %v3514_v60, %v3514_v60 }
 0x213   : > { %v3611_v9 = vadd.f32 %v3610_v40, %v3580_v7  ;;  %v3543_v13 = vadd.f32 %v3542_v39, %v3512_v10  ;;  %v3581_v45 = vmul.f32 %v3512_v10, %v3512_v10  ;;  %3701 = vst [vmem:[%s6386_s14 + $0xf9] sm:$0xff] %v3512_v10  ;;  %v4984_v6 = vpop.f32.mrb[24].mxu0  ;;  %v2364_v55 = vpop.f32.mrb[25].mxu1 }
 0x214   : > { %v5030_v12 = vadd.f32 %v4984_v6, %v4792_v14  ;;  %v3421_v38 = vpop.f32.mrb[25].mxu0  ;;  %v4793_v16 = vpop.f32.mrb[26].mxu1 }
 0x215   : > { %v3544_v24 = vadd.f32 %v3543_v13, %v3513_v29  ;;  %v3612_v25 = vadd.f32 %v3611_v9, %v3581_v45  ;;  %v5031_v51 = vadd.f32 %v3421_v38, %v2364_v55  ;;  %v4985_v33 = vpop.f32.mrb[26].mxu0  ;;  %v2367_v1 = vpop.f32.mrb[27].mxu1 }
 0x216   : > { %v3517_v43 = vadd.f32 %v5030_v12, %v6451_v50  ;;  %v5032_v37 = vadd.f32 %v4985_v33, %v4793_v16  ;;  %v3424_v15 = vpop.f32.mrb[27].mxu0 }
 0x217   : > { %v3613_v53 = vadd.f32 %v3612_v25, %v3582_v4  ;;  %v3515_v34 = vadd.f32 %v5031_v51, %v6451_v50  ;;  %v3545_v21 = vadd.f32 %v3544_v24, %v3514_v60  ;;  %v5033_v57 = vadd.f32 %v3424_v15, %v2367_v1 }
 0x218   : > { %3706 = vst [vmem:[%s6386_s14 + $0x139] sm:$0xff] %v3517_v43  ;;  %v3518_v56 = vadd.f32 %v5032_v37, %v6451_v50  ;;  %v3586_v63 = vmul.f32 %v3517_v43, %v3517_v43 }
 0x219   : > { %v3546_v17 = vadd.f32 %v3545_v21, %v3515_v34  ;;  %v3584_v47 = vmul.f32 %v3515_v34, %v3515_v34  ;;  %v3614_v22 = vadd.f32 %v3613_v53, %v3583_v31  ;;  %3704 = vst [vmem:[%s6386_s14 + $0x121] sm:$0xff] %v3515_v34  ;;  %v3516_v32 = vadd.f32 %v5033_v57, %v6451_v50 }
 0x21a   : > { %3707 = vst [vmem:[%s6386_s14 + $0x141] sm:$0xff] %v3518_v56  ;;  %v4796_v48 = vpop.f32.mrb[28].mxu1  ;;  %v3587_v26 = vmul.f32 %v3518_v56, %v3518_v56 }
 0x21b   : > { %v3615_v62 = vadd.f32 %v3614_v22, %v3584_v47  ;;  %v3547_v18 = vadd.f32 %v3546_v17, %v3516_v32  ;;  %v3585_v42 = vmul.f32 %v3516_v32, %v3516_v32  ;;  %3705 = vst [vmem:[%s6386_s14 + $0x129] sm:$0xff] %v3516_v32  ;;  %v4988_v0 = vpop.f32.mrb[28].mxu0  ;;  %v2380_v35 = vpop.f32.mrb[29].mxu1 }
 0x21c   : > { %v5034_v8 = vadd.f32 %v4988_v0, %v4796_v48  ;;  %v3437_v36 = vpop.f32.mrb[29].mxu0  ;;  %v4797_v5 = vpop.f32.mrb[30].mxu1 }
 0x21d   : > { %v3548_v59 = vadd.f32 %v3547_v18, %v3517_v43  ;;  %v3616_v54 = vadd.f32 %v3615_v62, %v3585_v42  ;;  %v5035_v52 = vadd.f32 %v3437_v36, %v2380_v35  ;;  %v4989_v61 = vpop.f32.mrb[30].mxu0  ;;  %v2383_v46 = vpop.f32.mrb[31].mxu1 }
 0x21e   : > { %v3521_v49 = vadd.f32 %v5034_v8, %v6451_v50  ;;  %v5036_v2 = vadd.f32 %v4989_v61, %v4797_v5  ;;  %v3440_v44 = vpop.f32.mrb[31].mxu0 }
 0x21f   : > { %v3617_v11 = vadd.f32 %v3616_v54, %v3586_v63  ;;  %v3519_v3 = vadd.f32 %v5035_v52, %v6451_v50  ;;  %v3549_v28 = vadd.f32 %v3548_v59, %v3518_v56  ;;  %v5037_v19 = vadd.f32 %v3440_v44, %v2383_v46 }
 0x220   : > { %3710 = vst [vmem:[%s6386_s14 + $0x169] sm:$0xff] %v3521_v49  ;;  %v3522_v29 = vadd.f32 %v5036_v2, %v6451_v50  ;;  %v3590_v39 = vmul.f32 %v3521_v49, %v3521_v49 }
 0x221   : > { %v3550_v30 = vadd.f32 %v3549_v28, %v3519_v3  ;;  %v3588_v23 = vmul.f32 %v3519_v3, %v3519_v3  ;;  %v3618_v58 = vadd.f32 %v3617_v11, %v3587_v26  ;;  %3708 = vst [vmem:[%s6386_s14 + $0x151] sm:$0xff] %v3519_v3  ;;  %v3520_v41 = vadd.f32 %v5037_v19, %v6451_v50 }
 0x222   : > { %3711 = vst [vmem:[%s6386_s14 + $0x171] sm:$0xff] %v3522_v29  ;;  %v3591_v10 = vmul.f32 %v3522_v29, %v3522_v29 }
 0x223   : > { %v3619_v27 = vadd.f32 %v3618_v58, %v3588_v23  ;;  %v3551_v20 = vadd.f32 %v3550_v30, %v3520_v41  ;;  %v3589_v60 = vmul.f32 %v3520_v41, %v3520_v41  ;;  %3709 = vst [vmem:[%s6386_s14 + $0x159] sm:$0xff] %v3520_v41 }
 0x225   : > { %v3552_v7 = vadd.f32 %v3551_v20, %v3521_v49  ;;  %v3620_v40 = vadd.f32 %v3619_v27, %v3589_v60 }
 0x227   : > { %v3553_v14 = vadd.f32 %v3552_v7, %v3522_v29  ;;  %v3621_v9 = vadd.f32 %v3620_v40, %v3590_v39 }
 0x229   : > { %v3554_v13 = vrot.slane %v3553_v14, 4  ;;  %v3622_v45 = vadd.f32 %v3621_v9, %v3591_v10 }
 0x22b   : > { %v3555_v6 = vadd.f32 %v3554_v13, %v3553_v14  ;;  %v3623_v55 = vrot.slane %v3622_v45, 4 }
 0x22d   : > { %v3556_v12 = vrot.slane %v3555_v6, 2  ;;  %v3624_v38 = vadd.f32 %v3623_v55, %v3622_v45 }
 0x22f   : > { %v3557_v16 = vadd.f32 %v3556_v12, %v3555_v6  ;;  %v3625_v50 = vrot.slane %v3624_v38, 2 }
 0x231   : > { %v3558_v4 = vrot.slane %v3557_v16, 1  ;;  %v3626_v24 = vadd.f32 %v3625_v50, %v3624_v38 }
 0x233   : > { %v3627_v25 = vrot.slane %v3626_v24, 1  ;;  %v3559_v51 = vadd.f32 %v3558_v4, %v3557_v16 }
 0x235   : > { %v3628_v33 = vadd.f32 %v3627_v25, %v3626_v24 }
 0x237   : > { %v3630_v1 = vsel %vm3629_vm6, %v3559_v51, %v3628_v33 }
 0x238   : > { %3631 = vst [vmem:[%s492_s20] sm:$0x3] %v3630_v1 }
 0x239 PF: > { %s17_s22 = sadd.s32 1, %s5426_s22   ;;  %s6572_s21 = smov %s5422_s0 }
 0x23a   : > { %p14_p5 = scmp.ge.s32.totalorder %s17_s22, 4   ;;  %s6573_s0 = smov %s6575_s2 }
 0x23c   :  { %16 = sbr.rel (!%p14_p5) target bundleno = 2 (0x2), region = 102 }

</bundles_post_ra>
